<compile_context>
chip_gen: v7x
topology: tpu7x:2x2x1
jax: 0.10.0
libtpu: 0.0.40
codegen_flags: <defaults>
</compile_context>

<pallas_src>
import jax
import jax.numpy as jnp
from jax.experimental import pallas as pl
from jax.experimental.pallas import tpu as pltpu

LANE = 128
SUBLANE = 8


# --------------------------------------------------------------------------
# Kernel
# --------------------------------------------------------------------------
def make_gated_cnn_kernel(filter_sizes, n_filters, group_cols, seq_len,
                          batch_tile):
    filter_sizes = tuple(filter_sizes)
    max_fs = max(filter_sizes)
    F, S, TB = n_filters, seq_len, batch_tile

    def kernel(ids_ref, fusedw_ref, fcw_ref, fcb_ref, out_ref):
        v_pad, n_total = fusedw_ref.shape

        # ---- fused embedding gather + ALL conv/gate tap projections -------
        # one-hot(ids) @ (table @ packed_W + biases) selects, per token, every
        # tap's conv & gate pre-activation in a single MXU matmul (bf16 in,
        # f32 accumulate).  K = padded vocab, N = 256 (one 128-lane conv group
        # + one 128-lane gate group).
        ids = ids_ref[...]                                      # (TB*S, 1) i32
        vocab = jax.lax.broadcasted_iota(jnp.int32, (TB * S, v_pad), 1)
        onehot = jnp.where(ids == vocab, 1.0, 0.0).astype(fusedw_ref.dtype)
        z = jnp.dot(onehot, fusedw_ref[...],
                    preferred_element_type=jnp.float32)         # (TB*S, 256)
        z = z.reshape(TB, S, n_total)

        # Full-S shifted copies (rows stay 8-aligned); rows >= L are masked
        # before the max-pool so wrap-around / partial sums never leak.
        # TODO(synk): use pltpu.roll here to put the shifts on the XLU slot.
        rolled = [z] + [jnp.roll(z, -j, axis=1) for j in range(1, max_fs)]

        pooled = []
        tap = 0
        for fs in filter_sizes:
            L = S - fs + 1
            c0 = tap * F
            # tap-0 slice carries the folded conv/gate bias exactly once.
            conv = rolled[0][:, :, c0:c0 + F]
            gate = rolled[0][:, :, group_cols + c0:group_cols + c0 + F]
            for j in range(1, fs):
                cj = (tap + j) * F
                conv = conv + rolled[j][:, :, cj:cj + F]
                gate = gate + rolled[j][:, :, group_cols + cj:
                                         group_cols + cj + F]
            tap += fs
            gated = jnp.tanh(conv) * jax.nn.sigmoid(gate)       # (TB, S, F)
            seq = jax.lax.broadcasted_iota(jnp.int32, (TB, S, F), 1)
            gated = jnp.where(seq < L, gated, -1e30)            # mask rows >= L
            pooled.append(jnp.max(gated, axis=1))               # (TB, F)

        # Pooled features of all filter sizes share one lane group -> single
        # fc matmul (TB, n_fs*F) @ (n_fs*F, o_pad).
        feats = jnp.concatenate(pooled, axis=-1)                # (TB, n_fs*F)
        out = jnp.dot(feats, fcw_ref[...],
                      preferred_element_type=jnp.float32)       # (TB, o_pad)
        # TODO(synk): dropout is identity (eval mode); training-mode dropout
        # would need pltpu.prng_seed / prng_random_bits masking here.
        out_ref[...] = out + fcb_ref[...]                       # lane-dense store

    return kernel


# --------------------------------------------------------------------------
# Parameter packing (wrapper-side, once per parameter set)
# --------------------------------------------------------------------------
def _pack_params(params, filter_sizes, n_filters, o_pad, weight_dtype):
    table = params["embedding"].astype(jnp.float32)             # (V, E)
    V, E = table.shape
    F = n_filters
    O = params["fc_b"].shape[-1]
    n_fs = len(filter_sizes)
    taps_total = sum(filter_sizes)

    group_cols = ((taps_total * F + LANE - 1) // LANE) * LANE   # 96 -> 128
    n_total = 2 * group_cols                                    # conv | gate
    v_pad = ((V + SUBLANE - 1) // SUBLANE) * SUBLANE

    # fused_w[v] = [conv taps | pad | gate taps | pad] of table[v] @ W_tap,
    # with conv/gate biases folded into each filter's tap-0 columns (summed
    # exactly once by the kernel's tap accumulation).  padding_idx row of the
    # table is zero, matching nn.Embedding(padding_idx=...).
    fused = jnp.zeros((v_pad, n_total), jnp.float32)
    tap = 0
    for i, fs in enumerate(filter_sizes):
        cw = params["conv_w"][i].astype(jnp.float32)            # (fs*E, F)
        gw = params["gate_w"][i].astype(jnp.float32)
        cb = params["conv_b"][i].reshape(1, F).astype(jnp.float32)
        gb = params["gate_b"][i].reshape(1, F).astype(jnp.float32)
        for j in range(fs):
            c0 = (tap + j) * F
            proj_c = table @ cw[j * E:(j + 1) * E, :]           # (V, F)
            proj_g = table @ gw[j * E:(j + 1) * E, :]
            if j == 0:
                proj_c = proj_c + cb
                proj_g = proj_g + gb
            fused = fused.at[:V, c0:c0 + F].set(proj_c)
            fused = fused.at[:V, group_cols + c0:group_cols + c0 + F].set(proj_g)
        tap += fs

    fc_w = jnp.zeros((n_fs * F, o_pad), jnp.float32).at[:, :O].set(
        params["fc_w"].astype(jnp.float32))
    fc_b = jnp.zeros((1, o_pad), jnp.float32).at[:, :O].set(
        params["fc_b"].astype(jnp.float32))
    return fused.astype(weight_dtype), fc_w, fc_b, group_cols, v_pad, n_total


# --------------------------------------------------------------------------
# Per-generation sizing
# --------------------------------------------------------------------------
def _vmem_capacity_bytes():
    try:
        info = pltpu.get_tpu_info()
        cap = getattr(info, "vmem_capacity_bytes", None)
        if cap:
            return int(cap)
    except Exception:
        pass
    return 64 * 1024 * 1024      # conservative default (v7x per-core VMEM)


def _pick_batch_tile(B, S, n_total, max_fs, vmem_cap):
    # Per-grid-step VMEM (f32): z plus its (max_fs-1) shifted copies dominate
    # (the old 16x-padded layout made z alone the limiter; no longer true).
    per_row_bytes = n_total * 4 * (max_fs + 1)
    budget = max(vmem_cap // 3, 1 << 20)       # room for double-buffered I/O
    rows_vmem = max(budget // per_row_bytes, SUBLANE)
    rows_mxu = 256                             # fill 2x256 MXU M (v6e/v7x); 128 on v5e is a subset
    rows = min(rows_vmem, max(rows_mxu, S))
    tb = max(1, min(B, rows // S))
    if tb >= SUBLANE:                          # keep batch tiles sublane-aligned
        tb -= tb % SUBLANE
    # NOTE(v7x): at large B this leaves cdiv(B, tb) >> 1 grid steps so both
    # TensorCores get several double-buffered steps; impossible at toy B.
    return max(tb, 1)


# --------------------------------------------------------------------------
# Wrapper
# --------------------------------------------------------------------------
def gated_cnn_forward(text, params, filter_sizes, *, batch_tile=None,
                      o_pad=LANE, weight_dtype=jnp.bfloat16):
    B, S = text.shape
    assert S % SUBLANE == 0, "pad seq_len to a multiple of 8 (sublane alignment)"
    assert S >= max(filter_sizes)
    F = params["conv_b"][0].shape[-1]
    O = params["fc_b"].shape[-1]
    n_fs = len(filter_sizes)

    fused_w, fc_w, fc_b, group_cols, v_pad, n_total = _pack_params(
        params, filter_sizes, F, o_pad, weight_dtype)

    vmem_cap = _vmem_capacity_bytes()
    if batch_tile is None:
        batch_tile = _pick_batch_tile(B, S, n_total, max(filter_sizes), vmem_cap)
    TB = min(batch_tile, B)
    grid = (pl.cdiv(B, TB),)

    # Only token ids are streamed from HBM; no materialized (B,S,E) embeddings.
    ids = text.reshape(B * S, 1).astype(jnp.int32)

    kernel = make_gated_cnn_kernel(tuple(filter_sizes), F, group_cols, S, TB)
    out_pad = pl.pallas_call(
        kernel,
        out_shape=jax.ShapeDtypeStruct((B, o_pad), jnp.float32),
        grid=grid,
        in_specs=[
            # streamed activation: token ids for the batch tile
            pl.BlockSpec((TB * S, 1), lambda b: (b, 0)),
            # resident fused table/projection + fc weights/bias
            pl.BlockSpec((v_pad, n_total), lambda b: (0, 0)),
            pl.BlockSpec((n_fs * F, o_pad), lambda b: (0, 0)),
            pl.BlockSpec((1, o_pad), lambda b: (0, 0)),
        ],
        out_specs=pl.BlockSpec((TB, o_pad), lambda b: (b, 0)),
        compiler_params=pltpu.CompilerParams(
            dimension_semantics=("parallel",),              # megacore over batch
            # ~96 MiB on v5e/v6e (128 MiB physical), ~48 MiB on v7x (64 MiB)
            vmem_limit_bytes=min(int(vmem_cap * 0.75), 100 * 1024 * 1024),
        ),
    )(ids, fused_w, fc_w, fc_b)
    return out_pad[:, :O]


# --------------------------------------------------------------------------
# Pure-JAX reference (eval-mode dropout) and parameter init
# --------------------------------------------------------------------------
def reference_forward(text, params, filter_sizes):
    emb = params["embedding"][text].astype(jnp.float32)         # (B, S, E)
    B, S, E = emb.shape
    pooled = []
    for i, fs in enumerate(filter_sizes):
        L = S - fs + 1
        windows = jnp.stack([emb[:, j:j + L, :] for j in range(fs)], axis=2)
        windows = windows.reshape(B, L, fs * E)
        conv = jnp.tanh(windows @ params["conv_w"][i] + params["conv_b"][i])
        gate = jax.nn.sigmoid(windows @ params["gate_w"][i] + params["gate_b"][i])
        pooled.append(jnp.max(conv * gate, axis=1))
    cat = jnp.concatenate(pooled, axis=-1)
    return cat @ params["fc_w"] + params["fc_b"]


def init_params(key, vocab_size, embedding_dim, n_filters, filter_sizes,
                output_dim, pad_idx):
    n = len(filter_sizes)
    keys = iter(jax.random.split(key, 4 * n + 3))
    params = {"conv_w": [], "conv_b": [], "gate_w": [], "gate_b": []}

    emb = jax.random.normal(next(keys), (vocab_size, embedding_dim), jnp.float32)
    params["embedding"] = emb.at[pad_idx].set(0.0)              # padding_idx row = 0

    for fs in filter_sizes:
        fan_in = fs * embedding_dim
        bound = 1.0 / (fan_in ** 0.5)
        params["conv_w"].append(jax.random.uniform(
            next(keys), (fan_in, n_filters), jnp.float32, -bound, bound))
        params["conv_b"].append(jax.random.uniform(
            next(keys), (1, n_filters), jnp.float32, -bound, bound))
    for fs in filter_sizes:
        fan_in = fs * embedding_dim
        bound = 1.0 / (fan_in ** 0.5)
        params["gate_w"].append(jax.random.uniform(
            next(keys), (fan_in, n_filters), jnp.float32, -bound, bound))
        params["gate_b"].append(jax.random.uniform(
            next(keys), (1, n_filters), jnp.float32, -bound, bound))

    fc_in = n * n_filters
    bound = 1.0 / (fc_in ** 0.5)
    params["fc_w"] = jax.random.uniform(
        next(keys), (fc_in, output_dim), jnp.float32, -bound, bound)
    params["fc_b"] = jax.random.uniform(
        next(keys), (1, output_dim), jnp.float32, -bound, bound)
    return params


if __name__ == "__main__":
    vocab_size = 32
    embedding_dim = 16
    n_filters = 8
    filter_sizes = (3, 4, 5)
    output_dim = 4
    pad_idx = 0
    batch, seq_len = 16, 16

    key = jax.random.PRNGKey(0)
    k_text, k_params = jax.random.split(key)
    text = jax.random.randint(k_text, (batch, seq_len), 0, vocab_size,
                              dtype=jnp.int32)
    params = init_params(k_params, vocab_size, embedding_dim, n_filters,
                         filter_sizes, output_dim, pad_idx)

    out = gated_cnn_forward(text, params, filter_sizes)
    out = jax.block_until_ready(out)

    ref = reference_forward(text, params, filter_sizes)
    assert out.shape == (batch, output_dim), out.shape
    # bf16 fused projection weights -> slightly looser tolerance than pure-f32.
    assert jnp.allclose(out, ref, atol=2e-2, rtol=2e-2), (out, ref)
    print("KERNEL_OK")
</pallas_src>

<mosaic_0001>
module attributes {stable_mosaic.version = 11 : i64} {
  func.func @kernel(%arg0: i32, %arg1: memref<256x1xi32, #tpu.memory_space<vmem>>, %arg2: memref<32x256xbf16, #tpu.memory_space<vmem>>, %arg3: memref<24x128xf32, #tpu.memory_space<vmem>>, %arg4: memref<1x128xf32, #tpu.memory_space<vmem>>, %arg5: memref<16x128xf32, #tpu.memory_space<vmem>>) attributes {dimension_semantics = [#tpu.dimension_semantics<parallel>], iteration_bounds = array<i64: 1>, scalar_prefetch = 0 : i64, scratch_operands = 0 : i64, tpu.core_type = #tpu.core_type<tc>, window_params = [{transform_indices = @transform_0, window_bounds = array<i64: 256, 1>}, {pipeline_mode = #tpu.pipeline_mode<synchronous>, transform_indices = @transform_1, window_bounds = array<i64: 32, 256>}, {pipeline_mode = #tpu.pipeline_mode<synchronous>, transform_indices = @transform_2, window_bounds = array<i64: 24, 128>}, {pipeline_mode = #tpu.pipeline_mode<synchronous>, transform_indices = @transform_3, window_bounds = array<i64: 1, 128>}, {transform_indices = @transform_4, window_bounds = array<i64: 16, 128>}]} {
    %c0 = arith.constant 0 : index
    %c0_0 = arith.constant 0 : index
    %0 = vector.load %arg1[%c0, %c0_0] : memref<256x1xi32, #tpu.memory_space<vmem>>, vector<256x1xi32>
    %1 = tpu.iota {dimensions = array<i32: 1>} : vector<256x32xi32>
    %2 = vector.broadcast %0 : vector<256x1xi32> to vector<256x32xi32>
    %3 = arith.cmpi eq, %2, %1 : vector<256x32xi32>
    %cst = arith.constant 1.000000e+00 : f32
    %cst_1 = arith.constant 0.000000e+00 : f32
    %4 = vector.broadcast %cst : f32 to vector<256x32xf32>
    %5 = vector.broadcast %cst_1 : f32 to vector<256x32xf32>
    %6 = arith.select %3, %4, %5 : vector<256x32xi1>, vector<256x32xf32>
    %7 = arith.truncf %6 : vector<256x32xf32> to vector<256x32xbf16>
    %c0_2 = arith.constant 0 : index
    %c0_3 = arith.constant 0 : index
    %8 = vector.load %arg2[%c0_2, %c0_3] : memref<32x256xbf16, #tpu.memory_space<vmem>>, vector<32x256xbf16>
    %cst_4 = arith.constant dense<0.000000e+00> : vector<256x256xf32>
    %9 = tpu.matmul %7, %8, %cst_4 {dimension_numbers = #tpu.dot_dimension_numbers<[1], [0], [0], [1], [0, 0, 1, 1], [], []>} : vector<256x32xbf16>, vector<32x256xbf16>, vector<256x256xf32> -> vector<256x256xf32>
    %10 = vector.shape_cast %9 : vector<256x256xf32> to vector<16x16x256xf32>
    %11 = vector.extract_strided_slice %10 {offsets = [0, 1, 0], sizes = [16, 15, 256], strides = [1, 1, 1]} : vector<16x16x256xf32> to vector<16x15x256xf32>
    %12 = vector.extract_strided_slice %10 {offsets = [0, 0, 0], sizes = [16, 1, 256], strides = [1, 1, 1]} : vector<16x16x256xf32> to vector<16x1x256xf32>
    %13 = tpu.concatenate %11, %12 in 1 : vector<16x15x256xf32>, vector<16x1x256xf32> -> vector<16x16x256xf32>
    %14 = vector.extract_strided_slice %10 {offsets = [0, 2, 0], sizes = [16, 14, 256], strides = [1, 1, 1]} : vector<16x16x256xf32> to vector<16x14x256xf32>
    %15 = vector.extract_strided_slice %10 {offsets = [0, 0, 0], sizes = [16, 2, 256], strides = [1, 1, 1]} : vector<16x16x256xf32> to vector<16x2x256xf32>
    %16 = tpu.concatenate %14, %15 in 1 : vector<16x14x256xf32>, vector<16x2x256xf32> -> vector<16x16x256xf32>
    %17 = vector.extract_strided_slice %10 {offsets = [0, 3, 0], sizes = [16, 13, 256], strides = [1, 1, 1]} : vector<16x16x256xf32> to vector<16x13x256xf32>
    %18 = vector.extract_strided_slice %10 {offsets = [0, 0, 0], sizes = [16, 3, 256], strides = [1, 1, 1]} : vector<16x16x256xf32> to vector<16x3x256xf32>
    %19 = tpu.concatenate %17, %18 in 1 : vector<16x13x256xf32>, vector<16x3x256xf32> -> vector<16x16x256xf32>
    %20 = vector.extract_strided_slice %10 {offsets = [0, 4, 0], sizes = [16, 12, 256], strides = [1, 1, 1]} : vector<16x16x256xf32> to vector<16x12x256xf32>
    %21 = vector.extract_strided_slice %10 {offsets = [0, 0, 0], sizes = [16, 4, 256], strides = [1, 1, 1]} : vector<16x16x256xf32> to vector<16x4x256xf32>
    %22 = tpu.concatenate %20, %21 in 1 : vector<16x12x256xf32>, vector<16x4x256xf32> -> vector<16x16x256xf32>
    %23 = vector.extract_strided_slice %10 {offsets = [0, 0, 0], sizes = [16, 16, 8], strides = [1, 1, 1]} : vector<16x16x256xf32> to vector<16x16x8xf32>
    %24 = vector.extract_strided_slice %10 {offsets = [0, 0, 128], sizes = [16, 16, 8], strides = [1, 1, 1]} : vector<16x16x256xf32> to vector<16x16x8xf32>
    %25 = vector.extract_strided_slice %13 {offsets = [0, 0, 8], sizes = [16, 16, 8], strides = [1, 1, 1]} : vector<16x16x256xf32> to vector<16x16x8xf32>
    %26 = arith.addf %23, %25 : vector<16x16x8xf32>
    %27 = vector.extract_strided_slice %13 {offsets = [0, 0, 136], sizes = [16, 16, 8], strides = [1, 1, 1]} : vector<16x16x256xf32> to vector<16x16x8xf32>
    %28 = arith.addf %24, %27 : vector<16x16x8xf32>
    %29 = vector.extract_strided_slice %16 {offsets = [0, 0, 16], sizes = [16, 16, 8], strides = [1, 1, 1]} : vector<16x16x256xf32> to vector<16x16x8xf32>
    %30 = arith.addf %26, %29 : vector<16x16x8xf32>
    %31 = vector.extract_strided_slice %16 {offsets = [0, 0, 144], sizes = [16, 16, 8], strides = [1, 1, 1]} : vector<16x16x256xf32> to vector<16x16x8xf32>
    %32 = arith.addf %28, %31 : vector<16x16x8xf32>
    %33 = math.tanh %30 : vector<16x16x8xf32>
    %34 = arith.negf %32 : vector<16x16x8xf32>
    %35 = math.exp %34 : vector<16x16x8xf32>
    %cst_5 = arith.constant 1.000000e+00 : f32
    %36 = vector.broadcast %cst_5 : f32 to vector<16x16x8xf32>
    %37 = arith.addf %36, %35 : vector<16x16x8xf32>
    %38 = arith.divf %36, %37 : vector<16x16x8xf32>
    %39 = arith.mulf %33, %38 : vector<16x16x8xf32>
    %40 = tpu.iota {dimensions = array<i32: 1>} : vector<16x16x8xi32>
    %c14_i32 = arith.constant 14 : i32
    %41 = vector.broadcast %c14_i32 : i32 to vector<16x16x8xi32>
    %42 = arith.cmpi slt, %40, %41 : vector<16x16x8xi32>
    %cst_6 = arith.constant -1.000000e+30 : f32
    %43 = vector.broadcast %cst_6 : f32 to vector<16x16x8xf32>
    %44 = arith.select %42, %39, %43 : vector<16x16x8xi1>, vector<16x16x8xf32>
    %cst_7 = arith.constant dense<0xFF800000> : vector<16x8xf32>
    %45 = vector.multi_reduction <maximumf>, %44, %cst_7 [1] : vector<16x16x8xf32> to vector<16x8xf32>
    %46 = vector.extract_strided_slice %10 {offsets = [0, 0, 24], sizes = [16, 16, 8], strides = [1, 1, 1]} : vector<16x16x256xf32> to vector<16x16x8xf32>
    %47 = vector.extract_strided_slice %10 {offsets = [0, 0, 152], sizes = [16, 16, 8], strides = [1, 1, 1]} : vector<16x16x256xf32> to vector<16x16x8xf32>
    %48 = vector.extract_strided_slice %13 {offsets = [0, 0, 32], sizes = [16, 16, 8], strides = [1, 1, 1]} : vector<16x16x256xf32> to vector<16x16x8xf32>
    %49 = arith.addf %46, %48 : vector<16x16x8xf32>
    %50 = vector.extract_strided_slice %13 {offsets = [0, 0, 160], sizes = [16, 16, 8], strides = [1, 1, 1]} : vector<16x16x256xf32> to vector<16x16x8xf32>
    %51 = arith.addf %47, %50 : vector<16x16x8xf32>
    %52 = vector.extract_strided_slice %16 {offsets = [0, 0, 40], sizes = [16, 16, 8], strides = [1, 1, 1]} : vector<16x16x256xf32> to vector<16x16x8xf32>
    %53 = arith.addf %49, %52 : vector<16x16x8xf32>
    %54 = vector.extract_strided_slice %16 {offsets = [0, 0, 168], sizes = [16, 16, 8], strides = [1, 1, 1]} : vector<16x16x256xf32> to vector<16x16x8xf32>
    %55 = arith.addf %51, %54 : vector<16x16x8xf32>
    %56 = vector.extract_strided_slice %19 {offsets = [0, 0, 48], sizes = [16, 16, 8], strides = [1, 1, 1]} : vector<16x16x256xf32> to vector<16x16x8xf32>
    %57 = arith.addf %53, %56 : vector<16x16x8xf32>
    %58 = vector.extract_strided_slice %19 {offsets = [0, 0, 176], sizes = [16, 16, 8], strides = [1, 1, 1]} : vector<16x16x256xf32> to vector<16x16x8xf32>
    %59 = arith.addf %55, %58 : vector<16x16x8xf32>
    %60 = math.tanh %57 : vector<16x16x8xf32>
    %61 = arith.negf %59 : vector<16x16x8xf32>
    %62 = math.exp %61 : vector<16x16x8xf32>
    %cst_8 = arith.constant 1.000000e+00 : f32
    %63 = vector.broadcast %cst_8 : f32 to vector<16x16x8xf32>
    %64 = arith.addf %63, %62 : vector<16x16x8xf32>
    %65 = arith.divf %63, %64 : vector<16x16x8xf32>
    %66 = arith.mulf %60, %65 : vector<16x16x8xf32>
    %67 = tpu.iota {dimensions = array<i32: 1>} : vector<16x16x8xi32>
    %c13_i32 = arith.constant 13 : i32
    %68 = vector.broadcast %c13_i32 : i32 to vector<16x16x8xi32>
    %69 = arith.cmpi slt, %67, %68 : vector<16x16x8xi32>
    %cst_9 = arith.constant -1.000000e+30 : f32
    %70 = vector.broadcast %cst_9 : f32 to vector<16x16x8xf32>
    %71 = arith.select %69, %66, %70 : vector<16x16x8xi1>, vector<16x16x8xf32>
    %cst_10 = arith.constant dense<0xFF800000> : vector<16x8xf32>
    %72 = vector.multi_reduction <maximumf>, %71, %cst_10 [1] : vector<16x16x8xf32> to vector<16x8xf32>
    %73 = vector.extract_strided_slice %10 {offsets = [0, 0, 56], sizes = [16, 16, 8], strides = [1, 1, 1]} : vector<16x16x256xf32> to vector<16x16x8xf32>
    %74 = vector.extract_strided_slice %10 {offsets = [0, 0, 184], sizes = [16, 16, 8], strides = [1, 1, 1]} : vector<16x16x256xf32> to vector<16x16x8xf32>
    %75 = vector.extract_strided_slice %13 {offsets = [0, 0, 64], sizes = [16, 16, 8], strides = [1, 1, 1]} : vector<16x16x256xf32> to vector<16x16x8xf32>
    %76 = arith.addf %73, %75 : vector<16x16x8xf32>
    %77 = vector.extract_strided_slice %13 {offsets = [0, 0, 192], sizes = [16, 16, 8], strides = [1, 1, 1]} : vector<16x16x256xf32> to vector<16x16x8xf32>
    %78 = arith.addf %74, %77 : vector<16x16x8xf32>
    %79 = vector.extract_strided_slice %16 {offsets = [0, 0, 72], sizes = [16, 16, 8], strides = [1, 1, 1]} : vector<16x16x256xf32> to vector<16x16x8xf32>
    %80 = arith.addf %76, %79 : vector<16x16x8xf32>
    %81 = vector.extract_strided_slice %16 {offsets = [0, 0, 200], sizes = [16, 16, 8], strides = [1, 1, 1]} : vector<16x16x256xf32> to vector<16x16x8xf32>
    %82 = arith.addf %78, %81 : vector<16x16x8xf32>
    %83 = vector.extract_strided_slice %19 {offsets = [0, 0, 80], sizes = [16, 16, 8], strides = [1, 1, 1]} : vector<16x16x256xf32> to vector<16x16x8xf32>
    %84 = arith.addf %80, %83 : vector<16x16x8xf32>
    %85 = vector.extract_strided_slice %19 {offsets = [0, 0, 208], sizes = [16, 16, 8], strides = [1, 1, 1]} : vector<16x16x256xf32> to vector<16x16x8xf32>
    %86 = arith.addf %82, %85 : vector<16x16x8xf32>
    %87 = vector.extract_strided_slice %22 {offsets = [0, 0, 88], sizes = [16, 16, 8], strides = [1, 1, 1]} : vector<16x16x256xf32> to vector<16x16x8xf32>
    %88 = arith.addf %84, %87 : vector<16x16x8xf32>
    %89 = vector.extract_strided_slice %22 {offsets = [0, 0, 216], sizes = [16, 16, 8], strides = [1, 1, 1]} : vector<16x16x256xf32> to vector<16x16x8xf32>
    %90 = arith.addf %86, %89 : vector<16x16x8xf32>
    %91 = math.tanh %88 : vector<16x16x8xf32>
    %92 = arith.negf %90 : vector<16x16x8xf32>
    %93 = math.exp %92 : vector<16x16x8xf32>
    %cst_11 = arith.constant 1.000000e+00 : f32
    %94 = vector.broadcast %cst_11 : f32 to vector<16x16x8xf32>
    %95 = arith.addf %94, %93 : vector<16x16x8xf32>
    %96 = arith.divf %94, %95 : vector<16x16x8xf32>
    %97 = arith.mulf %91, %96 : vector<16x16x8xf32>
    %98 = tpu.iota {dimensions = array<i32: 1>} : vector<16x16x8xi32>
    %c12_i32 = arith.constant 12 : i32
    %99 = vector.broadcast %c12_i32 : i32 to vector<16x16x8xi32>
    %100 = arith.cmpi slt, %98, %99 : vector<16x16x8xi32>
    %cst_12 = arith.constant -1.000000e+30 : f32
    %101 = vector.broadcast %cst_12 : f32 to vector<16x16x8xf32>
    %102 = arith.select %100, %97, %101 : vector<16x16x8xi1>, vector<16x16x8xf32>
    %cst_13 = arith.constant dense<0xFF800000> : vector<16x8xf32>
    %103 = vector.multi_reduction <maximumf>, %102, %cst_13 [1] : vector<16x16x8xf32> to vector<16x8xf32>
    %104 = tpu.concatenate %45, %72, %103 in 1 : vector<16x8xf32>, vector<16x8xf32>, vector<16x8xf32> -> vector<16x24xf32>
    %c0_14 = arith.constant 0 : index
    %c0_15 = arith.constant 0 : index
    %105 = vector.load %arg3[%c0_14, %c0_15] : memref<24x128xf32, #tpu.memory_space<vmem>>, vector<24x128xf32>
    %cst_16 = arith.constant dense<0.000000e+00> : vector<16x128xf32>
    %106 = tpu.matmul %104, %105, %cst_16 {dimension_numbers = #tpu.dot_dimension_numbers<[1], [0], [0], [1], [0, 0, 1, 1], [], []>} : vector<16x24xf32>, vector<24x128xf32>, vector<16x128xf32> -> vector<16x128xf32>
    %c0_17 = arith.constant 0 : index
    %c0_18 = arith.constant 0 : index
    %107 = vector.load %arg4[%c0_17, %c0_18] : memref<1x128xf32, #tpu.memory_space<vmem>>, vector<1x128xf32>
    %108 = vector.broadcast %107 : vector<1x128xf32> to vector<16x128xf32>
    %109 = arith.addf %106, %108 : vector<16x128xf32>
    %c0_19 = arith.constant 0 : index
    %c0_20 = arith.constant 0 : index
    %110 = vector.load %arg5[%c0_19, %c0_20] : memref<16x128xf32, #tpu.memory_space<vmem>>, vector<16x128xf32>
    tpu.vector_store %arg5[%c0_19, %c0_20], %109 {strides = array<i32>} : memref<16x128xf32, #tpu.memory_space<vmem>>, vector<16x128xf32>,
    return
  }
  func.func @transform_0(%arg0: i32) -> (i32, i32) {
    %c0_i32 = arith.constant 0 : i32
    %c0_i32_0 = arith.constant 0 : i32
    return %arg0, %c0_i32 : i32, i32
  }
  func.func @transform_1(%arg0: i32) -> (i32, i32) {
    %c0_i32 = arith.constant 0 : i32
    %c0_i32_0 = arith.constant 0 : i32
    %c0_i32_1 = arith.constant 0 : i32
    return %c0_i32, %c0_i32_0 : i32, i32
  }
  func.func @transform_2(%arg0: i32) -> (i32, i32) {
    %c0_i32 = arith.constant 0 : i32
    %c0_i32_0 = arith.constant 0 : i32
    %c0_i32_1 = arith.constant 0 : i32
    return %c0_i32, %c0_i32_0 : i32, i32
  }
  func.func @transform_3(%arg0: i32) -> (i32, i32) {
    %c0_i32 = arith.constant 0 : i32
    %c0_i32_0 = arith.constant 0 : i32
    %c0_i32_1 = arith.constant 0 : i32
    return %c0_i32, %c0_i32_0 : i32, i32
  }
  func.func @transform_4(%arg0: i32) -> (i32, i32) {
    %c0_i32 = arith.constant 0 : i32
    %c0_i32_0 = arith.constant 0 : i32
    return %arg0, %c0_i32 : i32, i32
  }
}

</mosaic_0001>

<bundles_post_ra>
// kernel: tpu_custom_call.1
= control target key start
LH: loop header
LB: loop body
LE: loop exit
PB: predicated region body
PF: predicated region fallthrough
CT: control target
= control target key end

     0   :  { %v4776_v2 = vmov 0   ;;  %s8280_s0 = inlined_call_operand.vmem [shape: s32[256,1], index: 0, kind: input, shape index: {}]   ;;  %s8281_s1 = inlined_call_operand.vmem [shape: bf16[32,256], index: 1, kind: input, shape index: {}]   ;;  %s8282_s2 = inlined_call_operand.vmem [shape: f32[24,128], index: 2, kind: input, shape index: {}]   ;;  %s8283_s3 = inlined_call_operand.vmem [shape: f32[1,128], index: 3, kind: input, shape index: {}]   ;;  %s8284_s4 = inlined_call_operand.hbm [shape: f32[16,128], index: 4, kind: output, shape index: {}]  }
   0x1   :  { %v21_v0 = vld [vmem:[%s8280_s0 + $0x10] sm:$0xff]  ;;  %v19_v1 = vld [vmem:[%s8280_s0] sm:$0xff]  ;;  %4169 = vset.pattern.permute.xlu1 %v4776_v2  ;;  %4168 = vset.pattern.permute.xlu0 %v4776_v2  ;;  %v22_v3 = vld [vmem:[%s8280_s0 + $0x18] sm:$0xff] }
   0x2   :  { %60 = vperm.xlu1 %4169, %v21_v0   ;;  %54 = vperm.xlu0 %4168, %v19_v1   ;;  %v20_v4 = vld [vmem:[%s8280_s0 + $0x8] sm:$0xff]  ;;  %v23_v6 = vld [vmem:[%s8280_s0 + $0x20] sm:$0xff]  ;;  %v38_v7 = vld [vmem:[%s8280_s0 + $0x98] sm:$0xff] }
   0x3   :  { %334 = vmatprep.mubr.bf16.mxu0 %v4776_v2  ;;  %424 = vmatprep.mubr.bf16.mxu1 %v4776_v2  ;;  %v24_v5 = vld [vmem:[%s8280_s0 + $0x28] sm:$0xff]  ;;  %v37_v8 = vld [vmem:[%s8280_s0 + $0x90] sm:$0xff] }
   0x4   :  { %v4170_v9 = vld [vmem:[%s8281_s1 + $0x4] ss:$8 sps:$4 sm:$0xff]   ;;  %v4172_v10 = vld [vmem:[%s8281_s1] ss:$8 sps:$4 sm:$0xff]   ;;  %v4173_v11 = vld [vmem:[%s8281_s1 + $0x14] ss:$8 sps:$4 sm:$0xff]  }
   0x5   :  { %302 = vmatprep.subr.bf16.mxu0 %v4170_v9  ;;  %4154 = vmatprep.subr.bf16.mxu1 %v4170_v9 }
   0x6   :  { %63 = vperm.xlu1 %4169, %v22_v3   ;;  %57 = vperm.xlu0 %4168, %v20_v4  }
   0xa   :  { %69 = vperm.xlu1 %4169, %v24_v5   ;;  %66 = vperm.xlu0 %4168, %v23_v6  }
   0xb   :  { %9 = vsyncpa [#allocation3], 0  ;;  %v26_v12 = vld [vmem:[%s8280_s0 + $0x38] sm:$0xff]  ;;  %v25_v13 = vld [vmem:[%s8280_s0 + $0x30] sm:$0xff]  ;;  %303 = vmatpush1.bf16.msra.mxu0 %v4172_v10  ;;  %4156 = vmatpush1.bf16.msra.mxu1 %v4172_v10  ;;  %v8285_v37 = vlaneseq  ;;  %v4777_v43 = vmov 0.0   ;;  %vm253_vm2 = vcmask 261120  }
   0xc   :  { %v4175_v14 = vld [vmem:[%s8281_s1 + $0x10] ss:$8 sps:$4 sm:$0xff]   ;;  %304 = vmatprep.subr.bf16.mxu0 %v4173_v11  ;;  %4155 = vmatprep.subr.bf16.mxu1 %v4173_v11  ;;  %v40_v15 = vld [vmem:[%s8280_s0 + $0xa8] sm:$0xff]  ;;  %v39_v16 = vld [vmem:[%s8280_s0 + $0xa0] sm:$0xff]  ;;  %s4779_s7 = smov 112   ;;  %s4780_s8 = smov 104  }
   0xd   :  { %v28_v17 = vld [vmem:[%s8280_s0 + $0x48] sm:$0xff]  ;;  %v27_v18 = vld [vmem:[%s8280_s0 + $0x40] sm:$0xff]  ;;  %v42_v19 = vld [vmem:[%s8280_s0 + $0xb8] sm:$0xff]  ;;  %v4924_v38 = vand.u32 127, %v8285_v37  ;;  %s4781_s9 = smov 96   ;;  %s4783_s18 = smov [#allocation2]  }
   0xe   :  { %111 = vperm.xlu1 %4169, %v38_v7   ;;  %108 = vperm.xlu0 %4168, %v37_v8   ;;  %v41_v20 = vld [vmem:[%s8280_s0 + $0xb0] sm:$0xff]  ;;  %v30_v21 = vld [vmem:[%s8280_s0 + $0x58] sm:$0xff]  ;;  %v44_v23 = vld [vmem:[%s8280_s0 + $0xc8] sm:$0xff]  ;;  %s4006_s19 = sshll.u32 %s4783_s18, 4  ;;  %s4007_s19 = int_to_ptr.vmem [resolvable:$true] %s4006_s19 }
   0xf   :  { %305 = vmatpush1.bf16.msra.mxu0 %v4175_v14  ;;  %4157 = vmatpush1.bf16.msra.mxu1 %v4175_v14  ;;  %v29_v22 = vld [vmem:[%s8280_s0 + $0x50] sm:$0xff]  ;;  %v43_v24 = vld [vmem:[%s8280_s0 + $0xc0] sm:$0xff]  ;;  %v32_v25 = vld [vmem:[%s8280_s0 + $0x68] sm:$0xff]  ;;  %s4752_s20 = scalar_lea.vmem %s4007_s19, 256  ;;  %p4757_p1 = scmp.lt.s32.totalorder %s4007_s19, %s4007_s19 }
  0x10   :  { %v31_v26 = vld [vmem:[%s8280_s0 + $0x60] sm:$0xff]  ;;  %v46_v27 = vld [vmem:[%s8280_s0 + $0xd8] sm:$0xff]  ;;  %v45_v28 = vld [vmem:[%s8280_s0 + $0xd0] sm:$0xff]  ;;  %p4753_p0 = scmp.ne.s32.totalorder %s4007_s19, %s4752_s20  ;;  %p4758_p2 = scmp.lt.s32.totalorder %s4752_s20, %s4752_s20 }
  0x11   :  { %v34_v29 = vld [vmem:[%s8280_s0 + $0x78] sm:$0xff]  ;;  %v33_v30 = vld [vmem:[%s8280_s0 + $0x70] sm:$0xff]  ;;  %v48_v31 = vld [vmem:[%s8280_s0 + $0xe8] sm:$0xff] }
  0x12   :  { %75 = vperm.xlu1 %4169, %v26_v12   ;;  %72 = vperm.xlu0 %4168, %v25_v13   ;;  %v47_v32 = vld [vmem:[%s8280_s0 + $0xe0] sm:$0xff]  ;;  %v36_v33 = vld [vmem:[%s8280_s0 + $0x88] sm:$0xff]  ;;  %v50_v35 = vld [vmem:[%s8280_s0 + $0xf8] sm:$0xff]  ;;  %p4759_p3 = por %p4758_p2, %p4757_p1 }
  0x13   :  { %v35_v34 = vld [vmem:[%s8280_s0 + $0x80] sm:$0xff]  ;;  %v49_v36 = vld [vmem:[%s8280_s0 + $0xf0] sm:$0xff]  ;;  %s4778_s0 = smov 120  }
  0x14   :  { %p4760_p4 = pnand %p4759_p3, %p4753_p0 }
  0x16   :  { %117 = vperm.xlu1 %4169, %v40_v15   ;;  %114 = vperm.xlu0 %4168, %v39_v16  }
  0x1a   :  { %81 = vperm.xlu1 %4169, %v28_v17   ;;  %78 = vperm.xlu0 %4168, %v27_v18  }
  0x1e   :  { %123 = vperm.xlu1 %4169, %v42_v19   ;;  %120 = vperm.xlu0 %4168, %v41_v20  }
  0x22   :  { %87 = vperm.xlu1 %4169, %v30_v21   ;;  %84 = vperm.xlu0 %4168, %v29_v22  }
  0x26   :  { %129 = vperm.xlu1 %4169, %v44_v23   ;;  %126 = vperm.xlu0 %4168, %v43_v24  }
  0x2a   :  { %93 = vperm.xlu1 %4169, %v32_v25   ;;  %90 = vperm.xlu0 %4168, %v31_v26  }
  0x2e   :  { %135 = vperm.xlu1 %4169, %v46_v27   ;;  %132 = vperm.xlu0 %4168, %v45_v28  }
  0x32   :  { %99 = vperm.xlu1 %4169, %v34_v29   ;;  %96 = vperm.xlu0 %4168, %v33_v30  }
  0x36   :  { %141 = vperm.xlu1 %4169, %v48_v31   ;;  %138 = vperm.xlu0 %4168, %v47_v32  }
  0x3a   :  { %105 = vperm.xlu1 %4169, %v36_v33   ;;  %102 = vperm.xlu0 %4168, %v35_v34  }
  0x3e   :  { %147 = vperm.xlu1 %4169, %v50_v35   ;;  %144 = vperm.xlu0 %4168, %v49_v36  }
  0x81   :  { %v61_v39 = vpop.permute.xlu1 %60  ;;  %v55_v40 = vpop.permute.xlu0 %54 }
  0x82   :  { %vm149_vm0 = vcmp.eq.s32.totalorder %v55_v40, %v4924_v38  ;;  %vm151_vm4 = vcmp.eq.s32.totalorder %v61_v39, %v4924_v38 }
  0x83   :  { %v181_v44 = vsel %vm149_vm0, 1.0, %v4777_v43  ;;  %v183_v52 = vsel %vm151_vm4, 1.0, %v4777_v43 }
  0x85   :  { %v64_v41 = vpop.permute.xlu1 %63  ;;  %v58_v42 = vpop.permute.xlu0 %57 }
  0x86   :  { %vm150_vm1 = vcmp.eq.s32.totalorder %v58_v42, %v4924_v38  ;;  %vm152_vm3 = vcmp.eq.s32.totalorder %v64_v41, %v4924_v38 }
  0x87   :  { %v182_v45 = vsel %vm150_vm1, 1.0, %v4777_v43  ;;  %v184_v49 = vsel %vm152_vm3, 1.0, %v4777_v43 }
  0x88   :  { %v213_v46 = vpack.c.bf16 %v182_v45, %v181_v44  ;;  %v214_v55 = vpack.c.bf16 %v184_v49, %v183_v52 }
  0x89   :  { %v70_v47 = vpop.permute.xlu1 %69  ;;  %v67_v48 = vpop.permute.xlu0 %66 }
  0x8a   :  { %4021 = vmatmul.mubr.msk.bf16.vlgmr.msra.gmra.mrb[0].mxu0 %vm253_vm2, %v213_v46  ;;  %vm154_vm7 = vcmp.eq.s32.totalorder %v70_v47, %v4924_v38  ;;  %vm153_vm8 = vcmp.eq.s32.totalorder %v67_v48, %v4924_v38 }
  0x8b   :  { %344 = vmatprep.mubr.bf16.mxu0 %v4776_v2  ;;  %v186_v59 = vsel %vm154_vm7, 1.0, %v4777_v43  ;;  %v185_v60 = vsel %vm153_vm8, 1.0, %v4777_v43 }
  0x8c   :  { %v215_v1 = vpack.c.bf16 %v186_v59, %v185_v60 }
  0x8d   :  { %v112_v50 = vpop.permute.xlu1 %111  ;;  %v109_v51 = vpop.permute.xlu0 %108 }
  0x8e   :  { %vm168_vm5 = vcmp.eq.s32.totalorder %v112_v50, %v4924_v38  ;;  %vm167_vm6 = vcmp.eq.s32.totalorder %v109_v51, %v4924_v38 }
  0x8f   :  { %v200_v53 = vsel %vm168_vm5, 1.0, %v4777_v43  ;;  %v199_v54 = vsel %vm167_vm6, 1.0, %v4777_v43 }
  0x90   :  { %v222_v56 = vpack.c.bf16 %v200_v53, %v199_v54 }
  0x91   :  { %v76_v57 = vpop.permute.xlu1 %75  ;;  %v73_v58 = vpop.permute.xlu0 %72 }
  0x92   :  { %4022 = vmatmul.mubr.msk.bf16.gmra.mrb[4].mxu0 %vm253_vm2, %v214_v55  ;;  %4030 = vmatmul.mubr.msk.bf16.vlgmr.msra.gmra.mrb[0].mxu1 %vm253_vm2, %v222_v56  ;;  %vm156_vm11 = vcmp.eq.s32.totalorder %v76_v57, %v4924_v38  ;;  %vm155_vm12 = vcmp.eq.s32.totalorder %v73_v58, %v4924_v38 }
  0x93   :  { %354 = vmatprep.mubr.bf16.mxu0 %v4776_v2  ;;  %434 = vmatprep.mubr.bf16.mxu1 %v4776_v2  ;;  %v188_v6 = vsel %vm156_vm11, 1.0, %v4777_v43  ;;  %v187_v7 = vsel %vm155_vm12, 1.0, %v4777_v43 }
  0x94   :  { %v216_v12 = vpack.c.bf16 %v188_v6, %v187_v7 }
  0x95   :  { %v118_v61 = vpop.permute.xlu1 %117  ;;  %v115_v62 = vpop.permute.xlu0 %114 }
  0x96   :  { %vm170_vm9 = vcmp.eq.s32.totalorder %v118_v61, %v4924_v38  ;;  %vm169_vm10 = vcmp.eq.s32.totalorder %v115_v62, %v4924_v38 }
  0x97   :  { %v202_v63 = vsel %vm170_vm9, 1.0, %v4777_v43  ;;  %v201_v0 = vsel %vm169_vm10, 1.0, %v4777_v43 }
  0x98   :  { %v223_v3 = vpack.c.bf16 %v202_v63, %v201_v0 }
  0x99   :  { %v82_v4 = vpop.permute.xlu1 %81  ;;  %v79_v5 = vpop.permute.xlu0 %78 }
  0x9a   :  { %4023 = vmatmul.mubr.msk.bf16.gmra.mrb[8].mxu0 %vm253_vm2, %v215_v1  ;;  %4031 = vmatmul.mubr.msk.bf16.gmra.mrb[4].mxu1 %vm253_vm2, %v223_v3  ;;  %vm158_vm15 = vcmp.eq.s32.totalorder %v82_v4, %v4924_v38  ;;  %vm157_vm0 = vcmp.eq.s32.totalorder %v79_v5, %v4924_v38 }
  0x9b   :  { %364 = vmatprep.mubr.bf16.mxu0 %v4776_v2  ;;  %444 = vmatprep.mubr.bf16.mxu1 %v4776_v2  ;;  %v190_v16 = vsel %vm158_vm15, 1.0, %v4777_v43  ;;  %v189_v17 = vsel %vm157_vm0, 1.0, %v4777_v43 }
  0x9c   :  { %v217_v22 = vpack.c.bf16 %v190_v16, %v189_v17 }
  0x9d   :  { %v124_v8 = vpop.permute.xlu1 %123  ;;  %v121_v9 = vpop.permute.xlu0 %120 }
  0x9e   :  { %vm172_vm13 = vcmp.eq.s32.totalorder %v124_v8, %v4924_v38  ;;  %vm171_vm14 = vcmp.eq.s32.totalorder %v121_v9, %v4924_v38 }
  0x9f   :  { %v204_v10 = vsel %vm172_vm13, 1.0, %v4777_v43  ;;  %v203_v11 = vsel %vm171_vm14, 1.0, %v4777_v43 }
  0xa0   :  { %v224_v13 = vpack.c.bf16 %v204_v10, %v203_v11 }
  0xa1   :  { %v88_v14 = vpop.permute.xlu1 %87  ;;  %v85_v15 = vpop.permute.xlu0 %84 }
  0xa2   :  { %4024 = vmatmul.mubr.msk.bf16.gmra.mrb[12].mxu0 %vm253_vm2, %v216_v12  ;;  %4032 = vmatmul.mubr.msk.bf16.gmra.mrb[8].mxu1 %vm253_vm2, %v224_v13  ;;  %vm160_vm4 = vcmp.eq.s32.totalorder %v88_v14, %v4924_v38  ;;  %vm159_vm5 = vcmp.eq.s32.totalorder %v85_v15, %v4924_v38 }
  0xa3   :  { %374 = vmatprep.mubr.bf16.mxu0 %v4776_v2  ;;  %454 = vmatprep.mubr.bf16.mxu1 %v4776_v2  ;;  %v192_v26 = vsel %vm160_vm4, 1.0, %v4777_v43  ;;  %v191_v27 = vsel %vm159_vm5, 1.0, %v4777_v43  ;;  %vm752_vm4 = vcmask 1045504   ;;  %vm945_vm5 = vcmask 1044480  }
  0xa4   :  { %v218_v32 = vpack.c.bf16 %v192_v26, %v191_v27 }
  0xa5   :  { %v130_v18 = vpop.permute.xlu1 %129  ;;  %v127_v19 = vpop.permute.xlu0 %126 }
  0xa6   :  { %vm174_vm1 = vcmp.eq.s32.totalorder %v130_v18, %v4924_v38  ;;  %vm173_vm3 = vcmp.eq.s32.totalorder %v127_v19, %v4924_v38 }
  0xa7   :  { %v206_v20 = vsel %vm174_vm1, 1.0, %v4777_v43  ;;  %v205_v21 = vsel %vm173_vm3, 1.0, %v4777_v43  ;;  %vm559_vm3 = vcmask 1046528  }
  0xa8   :  { %v225_v23 = vpack.c.bf16 %v206_v20, %v205_v21 }
  0xa9   :  { %v94_v24 = vpop.permute.xlu1 %93  ;;  %v91_v25 = vpop.permute.xlu0 %90 }
  0xaa   :  { %4025 = vmatmul.mubr.msk.bf16.gmra.mrb[16].mxu0 %vm253_vm2, %v217_v22  ;;  %4033 = vmatmul.mubr.msk.bf16.gmra.mrb[12].mxu1 %vm253_vm2, %v225_v23  ;;  %vm162_vm8 = vcmp.eq.s32.totalorder %v94_v24, %v4924_v38  ;;  %vm161_vm9 = vcmp.eq.s32.totalorder %v91_v25, %v4924_v38 }
  0xab   :  { %384 = vmatprep.mubr.bf16.mxu0 %v4776_v2  ;;  %464 = vmatprep.mubr.bf16.mxu1 %v4776_v2  ;;  %v194_v36 = vsel %vm162_vm8, 1.0, %v4777_v43  ;;  %v193_v39 = vsel %vm161_vm9, 1.0, %v4777_v43  ;;  %vm3807_vm8 = vcmask 1041409   ;;  %vm3809_vm9 = vcmask 1042434  }
  0xac   :  { %v219_v45 = vpack.c.bf16 %v194_v36, %v193_v39 }
  0xad   :  { %v136_v28 = vpop.permute.xlu1 %135  ;;  %v133_v29 = vpop.permute.xlu0 %132 }
  0xae   :  { %vm176_vm6 = vcmp.eq.s32.totalorder %v136_v28, %v4924_v38  ;;  %vm175_vm7 = vcmp.eq.s32.totalorder %v133_v29, %v4924_v38 }
  0xaf   :  { %v208_v30 = vsel %vm176_vm6, 1.0, %v4777_v43  ;;  %v207_v31 = vsel %vm175_vm7, 1.0, %v4777_v43  ;;  %vm1138_vm6 = vcmask 1043456   ;;  %vm2200_vm7 = vcmask 64512  }
  0xb0   :  { %v226_v33 = vpack.c.bf16 %v208_v30, %v207_v31 }
  0xb1   :  { %v100_v34 = vpop.permute.xlu1 %99  ;;  %v97_v35 = vpop.permute.xlu0 %96 }
  0xb2   :  { %4026 = vmatmul.mubr.msk.bf16.gmra.mrb[20].mxu0 %vm253_vm2, %v218_v32  ;;  %4034 = vmatmul.mubr.msk.bf16.gmra.mrb[16].mxu1 %vm253_vm2, %v226_v33  ;;  %vm164_vm12 = vcmp.eq.s32.totalorder %v100_v34, %v4924_v38  ;;  %vm163_vm13 = vcmp.eq.s32.totalorder %v97_v35, %v4924_v38 }
  0xb3   :  { %394 = vmatprep.mubr.bf16.mxu0 %v4776_v2  ;;  %474 = vmatprep.mubr.bf16.mxu1 %v4776_v2  ;;  %v196_v52 = vsel %vm164_vm12, 1.0, %v4777_v43  ;;  %v195_v53 = vsel %vm163_vm13, 1.0, %v4777_v43  ;;  %vm2923_vm12 = vcmask 261312  }
  0xb4   :  { %v220_v58 = vpack.c.bf16 %v196_v52, %v195_v53 }
  0xb5   :  { %v142_v40 = vpop.permute.xlu1 %141  ;;  %v139_v41 = vpop.permute.xlu0 %138 }
  0xb6   :  { %vm178_vm10 = vcmp.eq.s32.totalorder %v142_v40, %v4924_v38  ;;  %vm177_vm11 = vcmp.eq.s32.totalorder %v139_v41, %v4924_v38 }
  0xb7   :  { %v210_v42 = vsel %vm178_vm10, 1.0, %v4777_v43  ;;  %v209_v44 = vsel %vm177_vm11, 1.0, %v4777_v43  ;;  %vm3811_vm10 = vcmask 1043459  }
  0xb8   :  { %v227_v46 = vpack.c.bf16 %v210_v42, %v209_v44 }
  0xb9   :  { %v106_v47 = vpop.permute.xlu1 %105  ;;  %v103_v48 = vpop.permute.xlu0 %102 }
  0xba   :  { %vm166_vm14 = vcmp.eq.s32.totalorder %v106_v47, %v4924_v38  ;;  %vm165_vm15 = vcmp.eq.s32.totalorder %v103_v48, %v4924_v38  ;;  %4027 = vmatmul.mubr.msk.bf16.gmra.mrb[24].mxu0 %vm253_vm2, %v219_v45  ;;  %4035 = vmatmul.mubr.msk.bf16.gmra.mrb[20].mxu1 %vm253_vm2, %v227_v46 }
  0xbb   :  { %v198_v49 = vsel %vm166_vm14, 1.0, %v4777_v43  ;;  %v197_v50 = vsel %vm165_vm15, 1.0, %v4777_v43  ;;  %404 = vmatprep.mubr.bf16.mxu0 %v4776_v2  ;;  %484 = vmatprep.mubr.bf16.mxu1 %v4776_v2  ;;  %vm3646_vm14 = vcmask 523712   ;;  %vm3813_vm15 = vcmask 1044484  }
  0xbc   :  { %v221_v51 = vpack.c.bf16 %v198_v49, %v197_v50 }
  0xbd   :  { %v148_v54 = vpop.permute.xlu1 %147  ;;  %v145_v55 = vpop.permute.xlu0 %144 }
  0xbe   :  { %vm180_vm0 = vcmp.eq.s32.totalorder %v148_v54, %v4924_v38  ;;  %vm179_vm1 = vcmp.eq.s32.totalorder %v145_v55, %v4924_v38 }
  0xbf   :  { %v212_v56 = vsel %vm180_vm0, 1.0, %v4777_v43  ;;  %v211_v57 = vsel %vm179_vm1, 1.0, %v4777_v43  ;;  %vm3815_vm0 = vcmask 1045509   ;;  %vm3817_vm1 = vcmask 1046534  }
  0xc0   :  { %v228_v59 = vpack.c.bf16 %v212_v56, %v211_v57 }
  0xc2   :  { %4028 = vmatmul.mubr.msk.bf16.gmra.mrb[28].mxu0 %vm253_vm2, %v220_v58  ;;  %4036 = vmatmul.mubr.msk.bf16.gmra.mrb[24].mxu1 %vm253_vm2, %v228_v59 }
  0xc3   :  { %414 = vmatprep.mubr.bf16.mxu0 %v4776_v2 }
  0xca   :  { %4029 = vmatmul.mubr.msk.bf16.gmra.mrb[32].mxu0 %vm253_vm2, %v221_v51 }
 0x15d   :  { %v5020_v60 = vpop.f32.mrb[0].mxu0 }
 0x15e   :  { %8382 = vst [vmem:[#allocation5_spill] sm:$0xff] %v5020_v60  ;;  %v5022_v38 = vpop.f32.mrb[1].mxu0  ;;  %v560_v61 = vrot.slane %v5020_v60, 1  ;;  %v753_v43 = vrot.slane %v5020_v60, 2  ;;  %v946_v62 = vrot.slane %v5020_v60, 3  ;;  %v8286_v3 = vrot.slane %v5020_v60, 4 }
 0x15f   :  { %8383 = vst [vmem:[#allocation6_spill] sm:$0xff] %v5022_v38  ;;  %v5027_v63 = vpop.f32.mrb[2].mxu0  ;;  %v563_v2 = vrot.slane %v5022_v38, 1  ;;  %v756_v0 = vrot.slane %v5022_v38, 2  ;;  %v949_v1 = vrot.slane %v5022_v38, 3  ;;  %v1142_v20 = vrot.slane %v5022_v38, 4 }
 0x160   :  { %8384 = vst [vmem:[#allocation7_spill] sm:$0xff] %v5027_v63  ;;  %v5033_v4 = vpop.f32.mrb[3].mxu0  ;;  %v561_v5 = vrot.slane %v5027_v63, 1  ;;  %v754_v6 = vrot.slane %v5027_v63, 2  ;;  %v947_v7 = vrot.slane %v5027_v63, 3  ;;  %v8287_v8 = vrot.slane %v5027_v63, 4 }
 0x161   :  { %8385 = vst [vmem:[#allocation8_spill] sm:$0xff] %v5033_v4  ;;  %v564_v9 = vrot.slane %v5033_v4, 1  ;;  %v757_v10 = vrot.slane %v5033_v4, 2  ;;  %v950_v11 = vrot.slane %v5033_v4, 3  ;;  %v1143_v12 = vrot.slane %v5033_v4, 4 }
 0x162   :  { %v720_v13 = vsel %vm559_vm3, %v561_v5, %v560_v61  ;;  %v562_v14 = vsel %vm559_vm3, %v560_v61, %v561_v5  ;;  %v5046_v15 = vsel %vm752_vm4, %v754_v6, %v753_v43  ;;  %v5049_v16 = vsel %vm752_vm4, %v753_v43, %v754_v6 }
 0x163   :  { %1349 = vrot.lane.b32.xlu1 %v720_v13, %s4778_s0  ;;  %1347 = vrot.lane.b32.xlu0 %v562_v14, %s4778_s0  ;;  %v5054_v17 = vsel %vm559_vm3, %v564_v9, %v563_v2  ;;  %v5057_v18 = vsel %vm945_vm5, %v947_v7, %v946_v62  ;;  %v5060_v19 = vsel %vm752_vm4, %v757_v10, %v756_v0 }
 0x164   :  { %v5064_v21 = vsel %vm559_vm3, %v563_v2, %v564_v9  ;;  %v5067_v22 = vsel %vm752_vm4, %v756_v0, %v757_v10  ;;  %v5070_v23 = vsel %vm945_vm5, %v950_v11, %v949_v1  ;;  %v5073_v24 = vsel %vm945_vm5, %v949_v1, %v950_v11 }
 0x165   :  { %v5075_v25 = vpop.f32.mrb[4].mxu0  ;;  %v5077_v26 = vpop.f32.mrb[0].mxu1  ;;  %v5080_v27 = vsel %vm1138_vm6, %v1143_v12, %v1142_v20  ;;  %v5083_v28 = vsel %vm1138_vm6, %v1142_v20, %v1143_v12  ;;  %v5086_v29 = vsel %vm945_vm5, %v946_v62, %v947_v7  ;;  %v5093_v30 = vsel %vm1138_vm6, %v8287_v8, %v8286_v3 }
 0x166   :  { %8386 = vst [vmem:[#allocation9_spill] sm:$0xff] %v5075_v25  ;;  %8387 = vst [vmem:[#allocation10_spill] sm:$0xff] %v5077_v26  ;;  %v5095_v31 = vpop.f32.mrb[5].mxu0  ;;  %v5097_v32 = vpop.f32.mrb[1].mxu1  ;;  %v614_v33 = vrot.slane %v5077_v26, 1  ;;  %v807_v34 = vrot.slane %v5077_v26, 2 }
 0x167   :  { %8388 = vst [vmem:[#allocation11_spill] sm:$0xff] %v5086_v29  ;;  %8389 = vst [vmem:[#allocation12_spill] sm:$0xff] %v5093_v30  ;;  %v566_v35 = vrot.slane %v5075_v25, 1  ;;  %v759_v36 = vrot.slane %v5075_v25, 2  ;;  %v5103_v39 = vpop.f32.mrb[6].mxu0  ;;  %v5105_v40 = vpop.f32.mrb[2].mxu1 }
 0x168   :  { %8390 = vst [vmem:[#allocation13_spill] sm:$0xff] %v5095_v31  ;;  %8391 = vst [vmem:[#allocation14_spill] sm:$0xff] %v5097_v32  ;;  %v617_v41 = vrot.slane %v5097_v32, 1  ;;  %v810_v42 = vrot.slane %v5097_v32, 2  ;;  %v1003_v44 = vrot.slane %v5097_v32, 3  ;;  %v8289_v45 = vrot.slane %v5095_v31, 1 }
 0x169   :  { %8392 = vst [vmem:[#allocation15_spill] sm:$0xff] %v5103_v39  ;;  %8393 = vst [vmem:[#allocation16_spill] sm:$0xff] %v5105_v40  ;;  %v5111_v46 = vpop.f32.mrb[7].mxu0  ;;  %v5113_v47 = vpop.f32.mrb[3].mxu1  ;;  %v615_v48 = vrot.slane %v5105_v40, 1  ;;  %v808_v49 = vrot.slane %v5105_v40, 2 }
 0x16a   :  { %8394 = vst [vmem:[#allocation17_spill] sm:$0xff] %v5111_v46  ;;  %8395 = vst [vmem:[#allocation18_spill] sm:$0xff] %v5113_v47  ;;  %v567_v50 = vrot.slane %v5103_v39, 1  ;;  %v760_v51 = vrot.slane %v5103_v39, 2  ;;  %v618_v52 = vrot.slane %v5113_v47, 1  ;;  %v811_v53 = vrot.slane %v5113_v47, 2 }
 0x16b   :  { %v1004_v54 = vrot.slane %v5113_v47, 3  ;;  %v8288_v55 = vrot.slane %v5111_v46, 1  ;;  %v738_v56 = vsel %vm559_vm3, %v615_v48, %v614_v33  ;;  %v616_v57 = vsel %vm559_vm3, %v614_v33, %v615_v48 }
 0x16c   :  { %v931_v58 = vsel %vm752_vm4, %v808_v49, %v807_v34  ;;  %v5127_v59 = vsel %vm752_vm4, %v807_v34, %v808_v49  ;;  %1385 = vrot.lane.b32.xlu1 %v738_v56, %s4778_s0  ;;  %1383 = vrot.lane.b32.xlu0 %v616_v57, %s4778_s0  ;;  %v5132_v61 = vsel %vm559_vm3, %v618_v52, %v617_v41  ;;  %v762_v2 = vrot.slane %v5095_v31, 2 }
 0x16d   :  { %v5135_v43 = vsel %vm752_vm4, %v811_v53, %v810_v42  ;;  %v5138_v62 = vsel %vm559_vm3, %v617_v41, %v618_v52  ;;  %v5142_v0 = vsel %vm752_vm4, %v810_v42, %v811_v53  ;;  %v5145_v1 = vsel %vm559_vm3, %v566_v35, %v567_v50  ;;  %v5155_v7 = vpop.f32.mrb[8].mxu0  ;;  %v5157_v9 = vpop.f32.mrb[4].mxu1 }
 0x16e   :  { %v5150_v5 = vsel %vm752_vm4, %v760_v51, %v759_v36  ;;  %v5153_v6 = vsel %vm945_vm5, %v1004_v54, %v1003_v44  ;;  %8396 = vst [vmem:[#allocation19_spill] sm:$0xff] %v5157_v9  ;;  %v5160_v10 = vsel %vm945_vm5, %v1003_v44, %v1004_v54  ;;  %v5167_v11 = vsel %vm559_vm3, %v8289_v45, %v8288_v55  ;;  %v5171_v14 = vpop.f32.mrb[9].mxu0  ;;  %v5173_v20 = vpop.f32.mrb[5].mxu1 }
 0x16f   :  { %v763_v12 = vrot.slane %v5111_v46, 2  ;;  %v1196_v13 = vrot.slane %v5097_v32, 4  ;;  %8397 = vst [vmem:[#allocation20_spill] sm:$0xff] %v5171_v14  ;;  %8398 = vst [vmem:[#allocation21_spill] sm:$0xff] %v5173_v20  ;;  %v620_v33 = vrot.slane %v5157_v9, 1  ;;  %v813_v34 = vrot.slane %v5157_v9, 2 }
 0x170   :  { %v1197_v41 = vrot.slane %v5113_v47, 4  ;;  %v5179_v42 = vsel %vm559_vm3, %v567_v50, %v566_v35  ;;  %v5181_v44 = vpop.f32.mrb[10].mxu0  ;;  %1637 = vrot.lane.b32.xlu1 %v5046_v15, %s4779_s7  ;;  %1635 = vrot.lane.b32.xlu0 %v5049_v16, %s4779_s7  ;;  %v5187_v48 = vpop.f32.mrb[6].mxu1  ;;  %v623_v49 = vrot.slane %v5173_v20, 1  ;;  %v816_v35 = vrot.slane %v5173_v20, 2 }
 0x171   :  { %8399 = vst [vmem:[#allocation22_spill] sm:$0xff] %v5187_v48  ;;  %v5191_v52 = vsel %vm752_vm4, %v763_v12, %v762_v2  ;;  %v5194_v53 = vsel %vm752_vm4, %v762_v2, %v763_v12  ;;  %v5197_v50 = vpop.f32.mrb[11].mxu0  ;;  %v5199_v54 = vpop.f32.mrb[7].mxu1  ;;  %v621_v15 = vrot.slane %v5187_v48, 1  ;;  %v814_v16 = vrot.slane %v5187_v48, 2 }
 0x172   :  { %8400 = vst [vmem:[#allocation23_spill] sm:$0xff] %v5197_v50  ;;  %8401 = vst [vmem:[#allocation24_spill] sm:$0xff] %v5199_v54  ;;  %v5204_v56 = vsel %vm1138_vm6, %v1197_v41, %v1196_v13  ;;  %v5207_v57 = vsel %vm1138_vm6, %v1196_v13, %v1197_v41  ;;  %v624_v37 = vrot.slane %v5199_v54, 1  ;;  %v817_v2 = vrot.slane %v5199_v54, 2 }
 0x173   :  { %v955_v12 = vrot.slane %v5095_v31, 3  ;;  %v956_v3 = vrot.slane %v5111_v46, 3  ;;  %v5214_v8 = vsel %vm559_vm3, %v620_v33, %v621_v15  ;;  %v5217_v55 = vsel %vm752_vm4, %v813_v34, %v814_v16 }
 0x174   :  { %v5220_v45 = vsel %vm559_vm3, %v621_v15, %v620_v33  ;;  %v5225_v13 = vsel %vm752_vm4, %v759_v36, %v760_v51  ;;  %1493 = vrot.lane.b32.xlu1 %v5054_v17, %s4778_s0  ;;  %1673 = vrot.lane.b32.xlu0 %v931_v58, %s4779_s7  ;;  %v5231_v41 = vsel %vm559_vm3, %v623_v49, %v624_v37  ;;  %v1009_v36 = vrot.slane %v5173_v20, 3 }
 0x175   :  { %v5234_v30 = vsel %vm752_vm4, %v817_v2, %v816_v35  ;;  %v5237_v29 = vsel %vm945_vm5, %v956_v3, %v955_v12  ;;  %v5240_v33 = vsel %vm945_vm5, %v955_v12, %v956_v3  ;;  %v1010_v51 = vrot.slane %v5199_v54, 3  ;;  %v5247_v58 = vpop.f32.mrb[12].mxu0  ;;  %v5249_v15 = vpop.f32.mrb[8].mxu1 }
 0x176   :  { %v5245_v17 = vsel %vm752_vm4, %v814_v16, %v813_v34  ;;  %8402 = vst [vmem:[#allocation25_spill] sm:$0xff] %v5247_v58  ;;  %8403 = vst [vmem:[#allocation26_spill] sm:$0xff] %v5249_v15  ;;  %v1148_v32 = vrot.slane %v5095_v31, 4  ;;  %v1149_v47 = vrot.slane %v5111_v46, 4  ;;  %v8404_v38 = vrot.slane %v5095_v31, 1  ;;  %v5260_v4 = vpop.f32.mrb[13].mxu0 }
 0x177   :  { %v8405_v3 = vrot.slane %v5111_v46, 1  ;;  %8407 = vst [vmem:[#allocation28_spill] sm:$0xff] %v5260_v4  ;;  %v5262_v60 = vpop.f32.mrb[9].mxu1  ;;  %v5265_v34 = vsel %vm945_vm5, %v1010_v51, %v1009_v36  ;;  %v1202_v16 = vrot.slane %v5173_v20, 4  ;;  %v1203_v63 = vrot.slane %v5199_v54, 4 }
 0x178   :  { %8408 = vst [vmem:[#allocation29_spill] sm:$0xff] %v5262_v60  ;;  %v5270_v48 = vsel %vm559_vm3, %v624_v37, %v623_v49  ;;  %1671 = vrot.lane.b32.xlu0 %v5127_v59, %s4779_s7  ;;  %1529 = vrot.lane.b32.xlu1 %v5132_v61, %s4778_s0  ;;  %v5281_v46 = vsel %vm1138_vm6, %v1149_v47, %v1148_v32  ;;  %v572_v54 = vrot.slane %v5155_v7, 1 }
 0x179   :  { %v5258_v12 = vsel %vm559_vm3, %v8405_v3, %v8404_v38  ;;  %8409 = vst [vmem:[#allocation30_spill] sm:$0xff] %v5270_v48  ;;  %v5276_v38 = vpop.f32.mrb[14].mxu0  ;;  %v5278_v3 = vpop.f32.mrb[10].mxu1  ;;  %v5284_v20 = vsel %vm1138_vm6, %v1148_v32, %v1149_v47  ;;  %v5292_v59 = vsel %vm1138_vm6, %v1203_v63, %v1202_v16  ;;  %v5295_v61 = vsel %vm1138_vm6, %v1202_v16, %v1203_v63 }
 0x17a   :  { %8406 = vst [vmem:[#allocation27_spill] sm:$0xff] %v5258_v12  ;;  %8410 = vst [vmem:[#allocation31_spill] sm:$0xff] %v5276_v38  ;;  %v5287_v37 = vpop.f32.mrb[15].mxu0  ;;  %v5289_v49 = vpop.f32.mrb[11].mxu1  ;;  %v5298_v31 = vsel %vm752_vm4, %v816_v35, %v817_v2  ;;  %v573_v48 = vrot.slane %v5181_v44, 1  ;;  %v5302_v32 = vsel %vm945_vm5, %v1009_v36, %v1010_v51  ;;  %v626_v47 = vrot.slane %v5249_v15, 1 }
 0x17b   :  { %8411 = vst [vmem:[#allocation32_spill] sm:$0xff] %v5278_v3  ;;  %8412 = vst [vmem:[#allocation33_spill] sm:$0xff] %v5287_v37  ;;  %v627_v9 = vrot.slane %v5278_v3, 1  ;;  %v765_v12 = vrot.slane %v5155_v7, 2  ;;  %v766_v35 = vrot.slane %v5181_v44, 2  ;;  %v575_v2 = vrot.slane %v5171_v14, 1 }
 0x17c   :  { %8413 = vst [vmem:[#allocation34_spill] sm:$0xff] %v5289_v49  ;;  %8414 = vst [vmem:[#allocation35_spill] sm:$0xff] %v5292_v59  ;;  %v5308_v40 = vsel %vm559_vm3, %v572_v54, %v573_v48  ;;  %v5311_v63 = vsel %vm559_vm3, %v573_v48, %v572_v54  ;;  %2363 = vrot.lane.b32.xlu0 %v5057_v18, %s4780_s8  ;;  %1781 = vrot.lane.b32.xlu1 %v5060_v19, %s4779_s7  ;;  %v576_v48 = vrot.slane %v5197_v50, 1 }
 0x17d   :  { %8415 = vst [vmem:[#allocation36_spill] sm:$0xff] %v5295_v61  ;;  %8416 = vst [vmem:[#allocation37_spill] sm:$0xff] %v5298_v31  ;;  %v5320_v36 = vsel %vm559_vm3, %v626_v47, %v627_v9  ;;  %v5323_v51 = vsel %vm559_vm3, %v627_v9, %v626_v47  ;;  %v629_v54 = vrot.slane %v5262_v60, 1  ;;  %v5328_v16 = vsel %vm752_vm4, %v766_v35, %v765_v12 }
 0x17e   :  { %8417 = vst [vmem:[#allocation38_spill] sm:$0xff] %v5302_v32  ;;  %8418 = vst [vmem:[#allocation39_spill] sm:$0xff] %v5308_v40  ;;  %v630_v18 = vrot.slane %v5289_v49, 1  ;;  %v5335_v32 = vpop.f32.mrb[16].mxu0  ;;  %v5340_v9 = vsel %vm559_vm3, %v575_v2, %v576_v48  ;;  %v5353_v19 = vsel %vm559_vm3, %v576_v48, %v575_v2  ;;  %v8433_v61 = vrot.slane %v5249_v15, 2 }
 0x17f   :  { %8419 = vst [vmem:[#allocation40_spill] sm:$0xff] %v5311_v63  ;;  %8420 = vst [vmem:[#allocation41_spill] sm:$0xff] %v5320_v36  ;;  %v5331_v63 = vsel %vm752_vm4, %v765_v12, %v766_v35  ;;  %v5337_v36 = vpop.f32.mrb[12].mxu1  ;;  %v5345_v40 = vpop.f32.mrb[17].mxu0 }
 0x180   :  { %8421 = vst [vmem:[#allocation42_spill] sm:$0xff] %v5323_v51  ;;  %8422 = vst [vmem:[#allocation43_spill] sm:$0xff] %v5328_v16  ;;  %v768_v51 = vrot.slane %v5171_v14, 2  ;;  %v769_v16 = vrot.slane %v5197_v50, 2  ;;  %v5347_v12 = vpop.f32.mrb[13].mxu1  ;;  %v5350_v35 = vsel %vm559_vm3, %v629_v54, %v630_v18  ;;  %1491 = vrot.lane.b32.xlu0 %v5064_v21, %s4778_s0  ;;  %1779 = vrot.lane.b32.xlu1 %v5067_v22, %s4779_s7  ;;  %v5361_v47 = vpop.f32.mrb[18].mxu0 }
 0x181   :  { %8423 = vst [vmem:[#allocation44_spill] sm:$0xff] %v5331_v63  ;;  %8424 = vst [vmem:[#allocation45_spill] sm:$0xff] %v5335_v32  ;;  %v822_v63 = vrot.slane %v5262_v60, 2  ;;  %v5363_v31 = vpop.f32.mrb[14].mxu1  ;;  %v961_v21 = vrot.slane %v5171_v14, 3  ;;  %v5379_v22 = vpop.f32.mrb[19].mxu0 }
 0x182   :  { %8425 = vst [vmem:[#allocation46_spill] sm:$0xff] %v5337_v36  ;;  %8426 = vst [vmem:[#allocation47_spill] sm:$0xff] %v5340_v9  ;;  %v823_v9 = vrot.slane %v5289_v49, 2  ;;  %v5373_v48 = vsel %vm752_vm4, %v768_v51, %v769_v16  ;;  %v5381_v59 = vpop.f32.mrb[15].mxu1 }
 0x183   :  { %8427 = vst [vmem:[#allocation48_spill] sm:$0xff] %v5345_v40  ;;  %8428 = vst [vmem:[#allocation49_spill] sm:$0xff] %v5347_v12 }
 0x184   :  { %8429 = vst [vmem:[#allocation50_spill] sm:$0xff] %v5350_v35  ;;  %8430 = vst [vmem:[#allocation51_spill] sm:$0xff] %v5353_v19  ;;  %v8434_v35 = vrot.slane %v5278_v3, 2  ;;  %v5376_v19 = vsel %vm559_vm3, %v630_v18, %v629_v54  ;;  %v5384_v26 = vsel %vm752_vm4, %v823_v9, %v822_v63  ;;  %v5387_v15 = vsel %vm752_vm4, %v822_v63, %v823_v9 }
 0x185   :  { %8431 = vst [vmem:[#allocation52_spill] sm:$0xff] %v5361_v47  ;;  %8432 = vst [vmem:[#allocation53_spill] sm:$0xff] %v5363_v31  ;;  %v1015_v54 = vrot.slane %v5262_v60, 3  ;;  %v1016_v18 = vrot.slane %v5289_v49, 3  ;;  %v1155_v63 = vrot.slane %v5197_v50, 4  ;;  %1817 = vrot.lane.b32.xlu1 %v5135_v43, %s4779_s7  ;;  %1527 = vrot.lane.b32.xlu0 %v5138_v62, %s4778_s0  ;;  %v1209_v43 = vrot.slane %v5289_v49, 4 }
 0x186   :  { %v5370_v2 = vsel %vm752_vm4, %v8434_v35, %v8433_v61  ;;  %8436 = vst [vmem:[#allocation55_spill] sm:$0xff] %v5373_v48  ;;  %8437 = vst [vmem:[#allocation56_spill] sm:$0xff] %v5376_v19  ;;  %v5390_v61 = vsel %vm752_vm4, %v769_v16, %v768_v51  ;;  %v962_v35 = vrot.slane %v5197_v50, 3  ;;  %v1208_v50 = vrot.slane %v5262_v60, 4  ;;  %v5423_v62 = vpop.f32.mrb[20].mxu0  ;;  %v5425_v51 = vpop.f32.mrb[16].mxu1 }
 0x187   :  { %8435 = vst [vmem:[#allocation54_spill] sm:$0xff] %v5370_v2  ;;  %8438 = vst [vmem:[#allocation57_spill] sm:$0xff] %v5379_v22  ;;  %v5410_v9 = vsel %vm945_vm5, %v1016_v18, %v1015_v54  ;;  %v578_v16 = vrot.slane %v5247_v58, 1  ;;  %v5433_v60 = vpop.f32.mrb[17].mxu1 }
 0x188   :  { %8439 = vst [vmem:[#allocation58_spill] sm:$0xff] %v5381_v59  ;;  %8440 = vst [vmem:[#allocation59_spill] sm:$0xff] %v5384_v26  ;;  %v5396_v19 = vsel %vm945_vm5, %v961_v21, %v962_v35  ;;  %v5399_v48 = vsel %vm945_vm5, %v962_v35, %v961_v21  ;;  %v1154_v26 = vrot.slane %v5171_v14, 4  ;;  %v5413_v21 = vsel %vm945_vm5, %v1015_v54, %v1016_v18 }
 0x189   :  { %8441 = vst [vmem:[#allocation60_spill] sm:$0xff] %v5387_v15  ;;  %8442 = vst [vmem:[#allocation61_spill] sm:$0xff] %v5390_v61  ;;  %v632_v54 = vrot.slane %v5337_v36, 1  ;;  %v633_v18 = vrot.slane %v5363_v31, 1  ;;  %v5436_v49 = vsel %vm1138_vm6, %v1209_v43, %v1208_v50  ;;  %1815 = vrot.lane.b32.xlu1 %v5142_v0, %s4779_s7  ;;  %1351 = vrot.lane.b32.xlu0 %v5145_v1, %s4778_s0  ;;  %v775_v15 = vrot.slane %v5287_v37, 2 }
 0x18a   :  { %8443 = vst [vmem:[#allocation62_spill] sm:$0xff] %v5396_v19  ;;  %8444 = vst [vmem:[#allocation63_spill] sm:$0xff] %v5399_v48  ;;  %v5416_v35 = vsel %vm1138_vm6, %v1155_v63, %v1154_v26  ;;  %v5421_v14 = vsel %vm1138_vm6, %v1154_v26, %v1155_v63  ;;  %v5439_v26 = vsel %vm1138_vm6, %v1208_v50, %v1209_v43  ;;  %v771_v63 = vrot.slane %v5247_v58, 2  ;;  %v5449_v48 = vpop.f32.mrb[18].mxu1 }
 0x18b   :  { %8445 = vst [vmem:[#allocation64_spill] sm:$0xff] %v5410_v9  ;;  %8446 = vst [vmem:[#allocation65_spill] sm:$0xff] %v5413_v21  ;;  %v579_v9 = vrot.slane %v5276_v38, 1  ;;  %v5431_v21 = vpop.f32.mrb[21].mxu0  ;;  %v5458_v43 = vsel %vm559_vm3, %v632_v54, %v633_v18  ;;  %v5463_v0 = vpop.f32.mrb[19].mxu1  ;;  %v5466_v1 = vsel %vm559_vm3, %v633_v18, %v632_v54  ;;  %v1021_v18 = vrot.slane %v5347_v12, 3 }
 0x18c   :  { %8447 = vst [vmem:[#allocation66_spill] sm:$0xff] %v5416_v35  ;;  %8448 = vst [vmem:[#allocation67_spill] sm:$0xff] %v5421_v14  ;;  %v772_v14 = vrot.slane %v5276_v38, 2  ;;  %v5447_v35 = vpop.f32.mrb[22].mxu0  ;;  %v584_v38 = vrot.slane %v5335_v32, 1  ;;  %v587_v58 = vrot.slane %v5345_v40, 1 }
 0x18d   :  { %8449 = vst [vmem:[#allocation68_spill] sm:$0xff] %v5423_v62  ;;  %8450 = vst [vmem:[#allocation69_spill] sm:$0xff] %v5425_v51  ;;  %v5452_v19 = vsel %vm559_vm3, %v578_v16, %v579_v9  ;;  %v5455_v50 = vsel %vm559_vm3, %v579_v9, %v578_v16  ;;  %v635_v9 = vrot.slane %v5347_v12, 1  ;;  %2507 = vrot.lane.b32.xlu1 %v5070_v23, %s4780_s8  ;;  %1387 = vrot.lane.b32.xlu0 %v5214_v8, %s4778_s0 }
 0x18e   :  { %8451 = vst [vmem:[#allocation70_spill] sm:$0xff] %v5431_v21  ;;  %8452 = vst [vmem:[#allocation71_spill] sm:$0xff] %v5433_v60  ;;  %v5469_v61 = vsel %vm752_vm4, %v772_v14, %v771_v63  ;;  %v5473_v16 = vsel %vm752_vm4, %v771_v63, %v772_v14  ;;  %v829_v23 = vrot.slane %v5381_v59, 2  ;;  %v1160_v8 = vrot.slane %v5260_v4, 4 }
 0x18f   :  { %8453 = vst [vmem:[#allocation72_spill] sm:$0xff] %v5436_v49  ;;  %8454 = vst [vmem:[#allocation73_spill] sm:$0xff] %v5439_v26  ;;  %v581_v26 = vrot.slane %v5260_v4, 1  ;;  %v5461_v49 = vpop.f32.mrb[23].mxu0 }
 0x190   :  { %8455 = vst [vmem:[#allocation74_spill] sm:$0xff] %v5447_v35  ;;  %8456 = vst [vmem:[#allocation75_spill] sm:$0xff] %v5449_v48 }
 0x191   :  { %8457 = vst [vmem:[#allocation76_spill] sm:$0xff] %v5452_v19  ;;  %8458 = vst [vmem:[#allocation77_spill] sm:$0xff] %v5455_v50  ;;  %v582_v19 = vrot.slane %v5287_v37, 1  ;;  %v774_v50 = vrot.slane %v5260_v4, 2  ;;  %2505 = vrot.lane.b32.xlu1 %v5073_v24, %s4780_s8  ;;  %1641 = vrot.lane.b32.xlu0 %v5150_v5, %s4779_s7 }
 0x192   :  { %8459 = vst [vmem:[#allocation78_spill] sm:$0xff] %v5458_v43  ;;  %8460 = vst [vmem:[#allocation79_spill] sm:$0xff] %v5461_v49  ;;  %v636_v43 = vrot.slane %v5381_v59, 1 }
 0x193   :  { %8461 = vst [vmem:[#allocation80_spill] sm:$0xff] %v5463_v0  ;;  %8462 = vst [vmem:[#allocation81_spill] sm:$0xff] %v5466_v1  ;;  %v5480_v2 = vsel %vm559_vm3, %v582_v19, %v581_v26  ;;  %v5483_v54 = vsel %vm559_vm3, %v581_v26, %v582_v19  ;;  %v5495_v63 = vsel %vm752_vm4, %v775_v15, %v774_v50  ;;  %v828_v19 = vrot.slane %v5347_v12, 2 }
 0x194   :  { %8463 = vst [vmem:[#allocation82_spill] sm:$0xff] %v5469_v61  ;;  %8464 = vst [vmem:[#allocation83_spill] sm:$0xff] %v5473_v16  ;;  %v1022_v61 = vrot.slane %v5381_v59, 3  ;;  %v5492_v14 = vsel %vm559_vm3, %v636_v43, %v635_v9  ;;  %v5498_v16 = vsel %vm559_vm3, %v635_v9, %v636_v43  ;;  %v5502_v26 = vsel %vm752_vm4, %v774_v50, %v775_v15 }
 0x195   :  { %8465 = vst [vmem:[#allocation84_spill] sm:$0xff] %v5480_v2  ;;  %8466 = vst [vmem:[#allocation85_spill] sm:$0xff] %v5483_v54  ;;  %v5509_v2 = vpop.f32.mrb[24].mxu0  ;;  %v967_v43 = vrot.slane %v5260_v4, 3  ;;  %v968_v9 = vrot.slane %v5287_v37, 3  ;;  %v1214_v15 = vrot.slane %v5347_v12, 4  ;;  %v5526_v1 = vsel %vm752_vm4, %v828_v19, %v829_v23  ;;  %2543 = vrot.lane.b32.xlu1 %v5153_v6, %s4780_s8  ;;  %1675 = vrot.lane.b32.xlu0 %v5217_v55, %s4779_s7 }
 0x196   :  { %8467 = vst [vmem:[#allocation86_spill] sm:$0xff] %v5492_v14  ;;  %8468 = vst [vmem:[#allocation87_spill] sm:$0xff] %v5495_v63  ;;  %v5505_v54 = vsel %vm945_vm5, %v1021_v18, %v1022_v61  ;;  %v5511_v14 = vpop.f32.mrb[20].mxu1  ;;  %v1161_v63 = vrot.slane %v5287_v37, 4  ;;  %v5517_v50 = vpop.f32.mrb[25].mxu0  ;;  %v8502_v55 = vrot.slane %v5335_v32, 2 }
 0x197   :  { %8469 = vst [vmem:[#allocation88_spill] sm:$0xff] %v5498_v16  ;;  %8470 = vst [vmem:[#allocation89_spill] sm:$0xff] %v5502_v26  ;;  %v5519_v26 = vpop.f32.mrb[21].mxu1  ;;  %v1215_v16 = vrot.slane %v5381_v59, 4  ;;  %v5533_v12 = vpop.f32.mrb[26].mxu0  ;;  %v5541_v59 = vsel %vm945_vm5, %v968_v9, %v967_v43 }
 0x198   :  { %8471 = vst [vmem:[#allocation90_spill] sm:$0xff] %v5505_v54  ;;  %8472 = vst [vmem:[#allocation91_spill] sm:$0xff] %v5509_v2  ;;  %v5522_v54 = vsel %vm752_vm4, %v829_v23, %v828_v19  ;;  %v5535_v4 = vpop.f32.mrb[22].mxu1  ;;  %v5538_v37 = vsel %vm1138_vm6, %v1160_v8, %v1161_v63  ;;  %v5544_v19 = vsel %vm945_vm5, %v967_v43, %v968_v9  ;;  %v585_v23 = vrot.slane %v5361_v47, 1 }
 0x199   :  { %8473 = vst [vmem:[#allocation92_spill] sm:$0xff] %v5511_v14  ;;  %8474 = vst [vmem:[#allocation93_spill] sm:$0xff] %v5517_v50  ;;  %v5549_v24 = vpop.f32.mrb[23].mxu1  ;;  %v5552_v5 = vsel %vm1138_vm6, %v1215_v16, %v1214_v15  ;;  %v639_v9 = vrot.slane %v5449_v48, 1  ;;  %2541 = vrot.lane.b32.xlu1 %v5160_v10, %s4780_s8  ;;  %1495 = vrot.lane.b32.xlu0 %v5167_v11, %s4778_s0 }
 0x19a   :  { %8475 = vst [vmem:[#allocation94_spill] sm:$0xff] %v5519_v26  ;;  %8476 = vst [vmem:[#allocation95_spill] sm:$0xff] %v5522_v54  ;;  %v5555_v54 = vsel %vm1138_vm6, %v1214_v15, %v1215_v16  ;;  %v5562_v43 = vsel %vm559_vm3, %v584_v38, %v585_v23  ;;  %v5571_v16 = vsel %vm559_vm3, %v585_v23, %v584_v38  ;;  %v780_v15 = vrot.slane %v5345_v40, 2 }
 0x19b   :  { %8477 = vst [vmem:[#allocation96_spill] sm:$0xff] %v5526_v1  ;;  %8478 = vst [vmem:[#allocation97_spill] sm:$0xff] %v5533_v12  ;;  %v5547_v1 = vpop.f32.mrb[27].mxu0  ;;  %v781_v38 = vrot.slane %v5379_v22, 2 }
 0x19c   :  { %8479 = vst [vmem:[#allocation98_spill] sm:$0xff] %v5535_v4  ;;  %8480 = vst [vmem:[#allocation99_spill] sm:$0xff] %v5538_v37  ;;  %v5558_v37 = vsel %vm945_vm5, %v1022_v61, %v1021_v18  ;;  %v641_v61 = vrot.slane %v5433_v60, 1  ;;  %v642_v18 = vrot.slane %v5463_v0, 1 }
 0x19d   :  { %8481 = vst [vmem:[#allocation100_spill] sm:$0xff] %v5541_v59  ;;  %8482 = vst [vmem:[#allocation101_spill] sm:$0xff] %v5544_v19  ;;  %v638_v59 = vrot.slane %v5425_v51, 1  ;;  %v5566_v19 = vsel %vm1138_vm6, %v1161_v63, %v1160_v8  ;;  %3230 = vrot.lane.b32.xlu1 %v5080_v27, %s4781_s9  ;;  %1531 = vrot.lane.b32.xlu0 %v5231_v41, %s4778_s0  ;;  %v648_v27 = vrot.slane %v5549_v24, 1 }
 0x19e   :  { %8483 = vst [vmem:[#allocation102_spill] sm:$0xff] %v5547_v1  ;;  %8484 = vst [vmem:[#allocation103_spill] sm:$0xff] %v5549_v24 }
 0x19f   :  { %8485 = vst [vmem:[#allocation104_spill] sm:$0xff] %v5552_v5  ;;  %8486 = vst [vmem:[#allocation105_spill] sm:$0xff] %v5555_v54  ;;  %v588_v5 = vrot.slane %v5379_v22, 1  ;;  %v5580_v63 = vsel %vm559_vm3, %v638_v59, %v639_v9  ;;  %v5583_v8 = vsel %vm559_vm3, %v639_v9, %v638_v59  ;;  %v5600_v59 = vsel %vm752_vm4, %v781_v38, %v780_v15 }
 0x1a0   :  { %8487 = vst [vmem:[#allocation106_spill] sm:$0xff] %v5558_v37  ;;  %8488 = vst [vmem:[#allocation107_spill] sm:$0xff] %v5562_v43  ;;  %v5603_v9 = vsel %vm752_vm4, %v780_v15, %v781_v38  ;;  %v8503_v37 = vrot.slane %v5361_v47, 2  ;;  %v5622_v15 = vsel %vm559_vm3, %v642_v18, %v641_v61 }
 0x1a1   :  { %8489 = vst [vmem:[#allocation108_spill] sm:$0xff] %v5566_v19  ;;  %8490 = vst [vmem:[#allocation109_spill] sm:$0xff] %v5571_v16  ;;  %v5588_v23 = vsel %vm559_vm3, %v587_v58, %v588_v5  ;;  %v5591_v16 = vsel %vm559_vm3, %v641_v61, %v642_v18  ;;  %v5595_v19 = vpop.f32.mrb[28].mxu0  ;;  %v1166_v61 = vrot.slane %v5345_v40, 4  ;;  %3228 = vrot.lane.b32.xlu1 %v5083_v28, %s4781_s9  ;;  %1785 = vrot.lane.b32.xlu0 %v5191_v52, %s4779_s7 }
 0x1a2   :  { %8491 = vst [vmem:[#allocation110_spill] sm:$0xff] %v5580_v63  ;;  %8492 = vst [vmem:[#allocation111_spill] sm:$0xff] %v5583_v8  ;;  %v5597_v63 = vpop.f32.mrb[24].mxu1  ;;  %v5606_v8 = vsel %vm559_vm3, %v588_v5, %v587_v58  ;;  %v5618_v43 = vsel %vm752_vm4, %v8503_v37, %v8502_v55  ;;  %v973_v58 = vrot.slane %v5345_v40, 3  ;;  %v974_v37 = vrot.slane %v5379_v22, 3 }
 0x1a3   :  { %8493 = vst [vmem:[#allocation112_spill] sm:$0xff] %v5588_v23  ;;  %8494 = vst [vmem:[#allocation113_spill] sm:$0xff] %v5591_v16  ;;  %v834_v23 = vrot.slane %v5433_v60, 2  ;;  %v5609_v16 = vpop.f32.mrb[29].mxu0  ;;  %v5611_v6 = vpop.f32.mrb[25].mxu1  ;;  %v1027_v55 = vrot.slane %v5433_v60, 3 }
 0x1a4   :  { %8495 = vst [vmem:[#allocation114_spill] sm:$0xff] %v5595_v19  ;;  %8496 = vst [vmem:[#allocation115_spill] sm:$0xff] %v5597_v63  ;;  %v5629_v5 = vpop.f32.mrb[30].mxu0  ;;  %v5631_v38 = vpop.f32.mrb[26].mxu1  ;;  %v5650_v54 = vsel %vm945_vm5, %v974_v37, %v973_v58  ;;  %v5656_v40 = vsel %vm945_vm5, %v973_v58, %v974_v37  ;;  %v1220_v58 = vrot.slane %v5433_v60, 4  ;;  %v1221_v37 = vrot.slane %v5463_v0, 4 }
 0x1a5   :  { %8497 = vst [vmem:[#allocation116_spill] sm:$0xff] %v5600_v59  ;;  %8498 = vst [vmem:[#allocation117_spill] sm:$0xff] %v5603_v9  ;;  %v835_v59 = vrot.slane %v5463_v0, 2  ;;  %v5637_v18 = vpop.f32.mrb[31].mxu0  ;;  %v1167_v9 = vrot.slane %v5379_v22, 4  ;;  %v644_v22 = vrot.slane %v5511_v14, 1  ;;  %3266 = vrot.lane.b32.xlu1 %v5204_v56, %s4781_s9  ;;  %1783 = vrot.lane.b32.xlu0 %v5194_v53, %s4779_s7 }
 0x1a6   :  { %8499 = vst [vmem:[#allocation118_spill] sm:$0xff] %v5606_v8  ;;  %8500 = vst [vmem:[#allocation119_spill] sm:$0xff] %v5609_v16  ;;  %v1028_v8 = vrot.slane %v5463_v0, 3  ;;  %v5689_v60 = vsel %vm1138_vm6, %v1221_v37, %v1220_v58  ;;  %v5692_v0 = vsel %vm1138_vm6, %v1220_v58, %v1221_v37  ;;  %v979_v58 = vrot.slane %v5431_v21, 3 }
 0x1a7   :  { %8501 = vst [vmem:[#allocation120_spill] sm:$0xff] %v5611_v6  ;;  %8504 = vst [vmem:[#allocation121_spill] sm:$0xff] %v5618_v43  ;;  %v5642_v10 = vsel %vm752_vm4, %v835_v59, %v834_v23  ;;  %v5645_v11 = vsel %vm752_vm4, %v834_v23, %v835_v59  ;;  %v590_v43 = vrot.slane %v5423_v62, 1  ;;  %v591_v23 = vrot.slane %v5447_v35, 1 }
 0x1a8   :  { %8505 = vst [vmem:[#allocation122_spill] sm:$0xff] %v5622_v15  ;;  %8506 = vst [vmem:[#allocation123_spill] sm:$0xff] %v5629_v5  ;;  %v5639_v15 = vpop.f32.mrb[27].mxu1  ;;  %v5653_v48 = vsel %vm945_vm5, %v1028_v8, %v1027_v55  ;;  %v5659_v51 = vsel %vm945_vm5, %v1027_v55, %v1028_v8  ;;  %v5666_v59 = vsel %vm1138_vm6, %v1166_v61, %v1167_v9  ;;  %v645_v8 = vrot.slane %v5535_v4, 1 }
 0x1a9   :  { %8507 = vst [vmem:[#allocation124_spill] sm:$0xff] %v5631_v38  ;;  %8508 = vst [vmem:[#allocation125_spill] sm:$0xff] %v5637_v18  ;;  %v593_v55 = vrot.slane %v5431_v21, 1  ;;  %v980_v37 = vrot.slane %v5461_v49, 3  ;;  %v1033_v28 = vrot.slane %v5519_v26, 3  ;;  %v1034_v52 = vrot.slane %v5549_v24, 3  ;;  %3264 = vrot.lane.b32.xlu1 %v5207_v57, %s4781_s9  ;;  %1821 = vrot.lane.b32.xlu0 %v5234_v30, %s4779_s7 }
 0x1aa   :  { %8509 = vst [vmem:[#allocation126_spill] sm:$0xff] %v5639_v15  ;;  %8510 = vst [vmem:[#allocation127_spill] sm:$0xff] %v5642_v10  ;;  %v5662_v10 = vsel %vm1138_vm6, %v1167_v9, %v1166_v61  ;;  %v5678_v9 = vsel %vm559_vm3, %v590_v43, %v591_v23  ;;  %v594_v61 = vrot.slane %v5461_v49, 1  ;;  %v5686_v41 = vsel %vm559_vm3, %v644_v22, %v645_v8 }
 0x1ab   :  { %8511 = vst [vmem:[#allocation128_spill] sm:$0xff] %v5645_v11  ;;  %8512 = vst [vmem:[#allocation129_spill] sm:$0xff] %v5653_v48  ;;  %v840_v48 = vrot.slane %v5519_v26, 2  ;;  %v1226_v56 = vrot.slane %v5519_v26, 4  ;;  %v1227_v53 = vrot.slane %v5549_v24, 4  ;;  %v846_v57 = vrot.slane %v5611_v6, 2 }
 0x1ac   :  { %8513 = vst [vmem:[#allocation130_spill] sm:$0xff] %v5656_v40  ;;  %8514 = vst [vmem:[#allocation131_spill] sm:$0xff] %v5659_v51  ;;  %v5683_v51 = vpop.f32.mrb[32].mxu0  ;;  %v5695_v40 = vsel %vm559_vm3, %v591_v23, %v590_v43  ;;  %v5714_v23 = vsel %vm559_vm3, %v645_v8, %v644_v22 }
 0x1ad   :  { %8515 = vst [vmem:[#allocation132_spill] sm:$0xff] %v5662_v10  ;;  %8516 = vst [vmem:[#allocation133_spill] sm:$0xff] %v5666_v59  ;;  %v647_v59 = vrot.slane %v5519_v26, 1  ;;  %v5700_v10 = vsel %vm559_vm3, %v593_v55, %v594_v61  ;;  %1353 = vrot.lane.b32.xlu1 %v5179_v42, %s4778_s0  ;;  %2511 = vrot.lane.b32.xlu0 %v5237_v29, %s4780_s8  ;;  %v1178_v42 = vrot.slane %v5517_v50, 4 }
 0x1ae   :  { %8517 = vst [vmem:[#allocation134_spill] sm:$0xff] %v5678_v9  ;;  %8518 = vst [vmem:[#allocation135_spill] sm:$0xff] %v5683_v51  ;;  %v5697_v9 = vpop.f32.mrb[33].mxu0 }
 0x1af   :  { %8519 = vst [vmem:[#allocation136_spill] sm:$0xff] %v5686_v41  ;;  %8520 = vst [vmem:[#allocation137_spill] sm:$0xff] %v5689_v60  ;;  %v5703_v11 = vsel %vm559_vm3, %v647_v59, %v648_v27  ;;  %v841_v41 = vrot.slane %v5549_v24, 2  ;;  %v5711_v43 = vpop.f32.mrb[34].mxu0  ;;  %v1173_v60 = vrot.slane %v5461_v49, 4  ;;  %v654_v24 = vrot.slane %v5639_v15, 1 }
 0x1b0   :  { %8521 = vst [vmem:[#allocation138_spill] sm:$0xff] %v5692_v0  ;;  %8522 = vst [vmem:[#allocation139_spill] sm:$0xff] %v5695_v40  ;;  %v5719_v40 = vsel %vm559_vm3, %v594_v61, %v593_v55  ;;  %v5736_v61 = vsel %vm945_vm5, %v979_v58, %v980_v37  ;;  %v5750_v55 = vsel %vm945_vm5, %v1033_v28, %v1034_v52 }
 0x1b1   :  { %8523 = vst [vmem:[#allocation140_spill] sm:$0xff] %v5697_v9  ;;  %8524 = vst [vmem:[#allocation141_spill] sm:$0xff] %v5700_v10  ;;  %v5724_v0 = vsel %vm752_vm4, %v840_v48, %v841_v41  ;;  %v5729_v10 = vsel %vm559_vm3, %v648_v27, %v647_v59  ;;  %v786_v59 = vrot.slane %v5431_v21, 2  ;;  %v787_v27 = vrot.slane %v5461_v49, 2  ;;  %1389 = vrot.lane.b32.xlu1 %v5220_v45, %s4778_s0 }
 0x1b2   :  { %8525 = vst [vmem:[#allocation142_spill] sm:$0xff] %v5703_v11  ;;  %8526 = vst [vmem:[#allocation143_spill] sm:$0xff] %v5711_v43  ;;  %v5721_v11 = vpop.f32.mrb[35].mxu0  ;;  %2509 = vrot.lane.b32.xlu0 %v5240_v33, %s4780_s8  ;;  %v991_v45 = vrot.slane %v5609_v16, 3 }
 0x1b3   :  { %8527 = vst [vmem:[#allocation144_spill] sm:$0xff] %v5714_v23  ;;  %8528 = vst [vmem:[#allocation145_spill] sm:$0xff] %v5719_v40  ;;  %v5739_v40 = vsel %vm945_vm5, %v1034_v52, %v1033_v28  ;;  %v5753_v23 = vsel %vm752_vm4, %v841_v41, %v840_v48  ;;  %v5767_v49 = vsel %vm752_vm4, %v786_v59, %v787_v27  ;;  %v596_v48 = vrot.slane %v5509_v2, 1 }
 0x1b4   :  { %8529 = vst [vmem:[#allocation146_spill] sm:$0xff] %v5721_v11  ;;  %8530 = vst [vmem:[#allocation147_spill] sm:$0xff] %v5724_v0  ;;  %v1172_v0 = vrot.slane %v5431_v21, 4  ;;  %v5764_v21 = vsel %vm752_vm4, %v787_v27, %v786_v59  ;;  %v5770_v28 = vsel %vm945_vm5, %v980_v37, %v979_v58  ;;  %v5774_v41 = vsel %vm1138_vm6, %v1227_v53, %v1226_v56 }
 0x1b5   :  { %8531 = vst [vmem:[#allocation148_spill] sm:$0xff] %v5770_v28  ;;  %v650_v52 = vrot.slane %v5597_v63, 1  ;;  %v651_v58 = vrot.slane %v5631_v38, 1  ;;  %v599_v37 = vrot.slane %v5517_v50, 1  ;;  %v600_v59 = vrot.slane %v5547_v1, 1  ;;  %1639 = vrot.lane.b32.xlu1 %v5225_v13, %s4779_s7 }
 0x1b6   :  { %v5756_v8 = vsel %vm1138_vm6, %v1173_v60, %v1172_v0  ;;  %v5759_v22 = vsel %vm1138_vm6, %v1172_v0, %v1173_v60  ;;  %v5777_v60 = vsel %vm1138_vm6, %v1226_v56, %v1227_v53  ;;  %v597_v0 = vrot.slane %v5533_v12, 1  ;;  %2547 = vrot.lane.b32.xlu0 %v5265_v34, %s4780_s8 }
 0x1b7   :  { %8532 = vst [vmem:[#allocation149_spill] sm:$0xff] %v5777_v60  ;;  %v653_v27 = vrot.slane %v5611_v6, 1  ;;  %v5798_v30 = vsel %vm559_vm3, %v651_v58, %v650_v52  ;;  %v5801_v26 = vsel %vm559_vm3, %v650_v52, %v651_v58  ;;  %v5804_v60 = vsel %vm559_vm3, %v600_v59, %v599_v37 }
 0x1b8   :  { %v5790_v56 = vsel %vm559_vm3, %v597_v0, %v596_v48  ;;  %v5793_v53 = vsel %vm559_vm3, %v596_v48, %v597_v0  ;;  %8535 = vst [vmem:[#allocation152_spill] sm:$0xff] %v5801_v26  ;;  %8536 = vst [vmem:[#allocation153_spill] sm:$0xff] %v5804_v60  ;;  %v5807_v28 = vsel %vm559_vm3, %v599_v37, %v600_v59  ;;  %v847_v0 = vrot.slane %v5639_v15, 2  ;;  %v8624_v26 = vld [vmem:[#allocation5_spill] sm:$0xff] }
 0x1b9   :  { %8533 = vst [vmem:[#allocation150_spill] sm:$0xff] %v5790_v56  ;;  %8534 = vst [vmem:[#allocation151_spill] sm:$0xff] %v5793_v53  ;;  %v5810_v56 = vsel %vm559_vm3, %v654_v24, %v653_v27  ;;  %v5813_v48 = vsel %vm559_vm3, %v653_v27, %v654_v24  ;;  %v792_v53 = vrot.slane %v5517_v50, 2  ;;  %v793_v52 = vrot.slane %v5547_v1, 2  ;;  %1677 = vrot.lane.b32.xlu1 %v5245_v17, %s4779_s7 }
 0x1ba   :  { %8537 = vst [vmem:[#allocation154_spill] sm:$0xff] %v5807_v28  ;;  %8538 = vst [vmem:[#allocation155_spill] sm:$0xff] %v5810_v56  ;;  %v985_v58 = vrot.slane %v5517_v50, 3  ;;  %v986_v37 = vrot.slane %v5547_v1, 3  ;;  %v1039_v59 = vrot.slane %v5611_v6, 3  ;;  %v5826_v24 = vsel %vm752_vm4, %v847_v0, %v846_v57  ;;  %3234 = vrot.lane.b32.xlu0 %v5281_v46, %s4781_s9 }
 0x1bb   :  { %8539 = vst [vmem:[#allocation156_spill] sm:$0xff] %v5813_v48  ;;  %8540 = vst [vmem:[#allocation157_spill] sm:$0xff] %v5826_v24  ;;  %v5829_v27 = vsel %vm752_vm4, %v846_v57, %v847_v0  ;;  %v1040_v48 = vrot.slane %v5639_v15, 3  ;;  %v5834_v29 = vsel %vm752_vm4, %v793_v52, %v792_v53  ;;  %v5840_v28 = vsel %vm752_vm4, %v792_v53, %v793_v52 }
 0x1bc   :  { %8541 = vst [vmem:[#allocation158_spill] sm:$0xff] %v5829_v27  ;;  %8542 = vst [vmem:[#allocation159_spill] sm:$0xff] %v5834_v29  ;;  %v5837_v56 = vsel %vm945_vm5, %v986_v37, %v985_v58  ;;  %v5843_v60 = vsel %vm945_vm5, %v985_v58, %v986_v37  ;;  %v1179_v0 = vrot.slane %v5547_v1, 4  ;;  %v1232_v50 = vrot.slane %v5611_v6, 4 }
 0x1bd   :  { %8543 = vst [vmem:[#allocation160_spill] sm:$0xff] %v5837_v56  ;;  %8544 = vst [vmem:[#allocation161_spill] sm:$0xff] %v5840_v28  ;;  %v5846_v24 = vsel %vm945_vm5, %v1040_v48, %v1039_v59  ;;  %v5849_v57 = vsel %vm945_vm5, %v1039_v59, %v1040_v48  ;;  %v1233_v53 = vrot.slane %v5639_v15, 4  ;;  %v602_v52 = vrot.slane %v5595_v19, 1  ;;  %v8613_v28 = vld [vmem:[#allocation30_spill] sm:$0xff] }
 0x1be   :  { %8545 = vst [vmem:[#allocation162_spill] sm:$0xff] %v5843_v60  ;;  %8546 = vst [vmem:[#allocation163_spill] sm:$0xff] %v5846_v24  ;;  %v603_v58 = vrot.slane %v5629_v5, 1  ;;  %v605_v37 = vrot.slane %v5609_v16, 1  ;;  %v5862_v48 = vsel %vm1138_vm6, %v1179_v0, %v1178_v42  ;;  %v5865_v59 = vsel %vm1138_vm6, %v1178_v42, %v1179_v0  ;;  %3232 = vrot.lane.b32.xlu0 %v5284_v20, %s4781_s9 }
 0x1bf   :  { %8547 = vst [vmem:[#allocation164_spill] sm:$0xff] %v5849_v57  ;;  %8548 = vst [vmem:[#allocation165_spill] sm:$0xff] %v5862_v48  ;;  %v606_v6 = vrot.slane %v5637_v18, 1  ;;  %v5870_v33 = vsel %vm1138_vm6, %v1232_v50, %v1233_v53  ;;  %v5876_v15 = vsel %vm1138_vm6, %v1233_v53, %v1232_v50  ;;  %v992_v42 = vrot.slane %v5637_v18, 3 }
 0x1c0   :  { %8549 = vst [vmem:[#allocation166_spill] sm:$0xff] %v5865_v59  ;;  %8550 = vst [vmem:[#allocation167_spill] sm:$0xff] %v5870_v33  ;;  %v5873_v1 = vsel %vm559_vm3, %v602_v52, %v603_v58  ;;  %v5879_v57 = vsel %vm559_vm3, %v603_v58, %v602_v52  ;;  %v1184_v59 = vrot.slane %v5609_v16, 4  ;;  %v1185_v50 = vrot.slane %v5637_v18, 4 }
 0x1c1   :  { %8551 = vst [vmem:[#allocation168_spill] sm:$0xff] %v5873_v1  ;;  %8552 = vst [vmem:[#allocation169_spill] sm:$0xff] %v5876_v15  ;;  %v5882_v48 = vsel %vm559_vm3, %v605_v37, %v606_v6  ;;  %v5886_v0 = vsel %vm559_vm3, %v606_v6, %v605_v37  ;;  %v798_v53 = vrot.slane %v5609_v16, 2  ;;  %v799_v52 = vrot.slane %v5637_v18, 2 }
 0x1c2   :  { %8553 = vst [vmem:[#allocation170_spill] sm:$0xff] %v5879_v57  ;;  %8554 = vst [vmem:[#allocation171_spill] sm:$0xff] %v5882_v48  ;;  %v608_v58 = vrot.slane %v5683_v51, 1  ;;  %v5898_v57 = vsel %vm945_vm5, %v992_v42, %v991_v45  ;;  %v609_v6 = vrot.slane %v5711_v43, 1  ;;  %v611_v37 = vrot.slane %v5697_v9, 1 }
 0x1c3   :  { %8555 = vst [vmem:[#allocation172_spill] sm:$0xff] %v5886_v0  ;;  %8556 = vst [vmem:[#allocation173_spill] sm:$0xff] %v5898_v57  ;;  %v5903_v13 = vsel %vm945_vm5, %v991_v45, %v992_v42  ;;  %v5906_v34 = vsel %vm1138_vm6, %v1185_v50, %v1184_v59  ;;  %v5909_v0 = vsel %vm752_vm4, %v799_v52, %v798_v53  ;;  %v804_v18 = vrot.slane %v5697_v9, 2 }
 0x1c4   :  { %8557 = vst [vmem:[#allocation174_spill] sm:$0xff] %v5903_v13  ;;  %8558 = vst [vmem:[#allocation175_spill] sm:$0xff] %v5906_v34  ;;  %v5912_v16 = vsel %vm752_vm4, %v798_v53, %v799_v52  ;;  %v5916_v57 = vsel %vm559_vm3, %v608_v58, %v609_v6  ;;  %v8562_v48 = vrot.slane %v5721_v11, 1  ;;  %v5924_v45 = vsel %vm1138_vm6, %v1184_v59, %v1185_v50  ;;  %v8604_v34 = vld [vmem:[#allocation22_spill] sm:$0xff] }
 0x1c5   :  { %8559 = vst [vmem:[#allocation176_spill] sm:$0xff] %v5909_v0  ;;  %8560 = vst [vmem:[#allocation177_spill] sm:$0xff] %v5912_v16  ;;  %v5927_v42 = vsel %vm559_vm3, %v609_v6, %v608_v58  ;;  %v8566_v53 = vrot.slane %v5075_v25, 3  ;;  %v8567_v52 = vrot.slane %v5103_v39, 3  ;;  %v997_v17 = vrot.slane %v5697_v9, 3  ;;  %v8603_v0 = vld [vmem:[#allocation19_spill] sm:$0xff] }
 0x1c6   :  { %8561 = vst [vmem:[#allocation178_spill] sm:$0xff] %v5916_v57  ;;  %v5921_v15 = vsel %vm559_vm3, %v611_v37, %v8562_v48  ;;  %8564 = vst [vmem:[#allocation180_spill] sm:$0xff] %v5924_v45  ;;  %v8568_v48 = vrot.slane %v5721_v11, 2  ;;  %v801_v46 = vrot.slane %v5683_v51, 2  ;;  %v802_v6 = vrot.slane %v5711_v43, 2  ;;  %v8599_v57 = vld [vmem:[#allocation27_spill] sm:$0xff] }
 0x1c7   :  { %8563 = vst [vmem:[#allocation179_spill] sm:$0xff] %v5921_v15  ;;  %8565 = vst [vmem:[#allocation181_spill] sm:$0xff] %v5927_v42  ;;  %v1108_v13 = vsel %vm945_vm5, %v8567_v52, %v8566_v53  ;;  %v1190_v42 = vrot.slane %v5697_v9, 4  ;;  %v8572_v53 = vrot.slane %v5721_v11, 1  ;;  %v8590_v20 = vrot.slane %v5278_v3, 2 }
 0x1c8   :  { %v5941_v59 = vsel %vm752_vm4, %v8568_v48, %v804_v18  ;;  %v8570_v50 = vmov %v8568_v48  ;;  %v8574_v48 = vrot.slane %v5721_v11, 3  ;;  %v5970_v9 = vsel %vm752_vm4, %v802_v6, %v801_v46  ;;  %2367 = vrot.lane.b32.xlu1 %v1108_v13, %s4780_s8  ;;  %v8589_v13 = vld [vmem:[#allocation16_spill] sm:$0xff] }
 0x1c9   :  { %8569 = vst [vmem:[#allocation182_spill] sm:$0xff] %v5941_v59  ;;  %v5946_v58 = vsel %vm752_vm4, %v804_v18, %v8570_v50  ;;  %v5955_v52 = vsel %vm559_vm3, %v8572_v53, %v611_v37  ;;  %v995_v59 = vrot.slane %v5711_v43, 3  ;;  %8578 = vst [vmem:[#allocation187_spill] sm:$0xff] %v5970_v9  ;;  %v5973_v37 = vsel %vm752_vm4, %v801_v46, %v802_v6 }
 0x1ca   :  { %8571 = vst [vmem:[#allocation183_spill] sm:$0xff] %v5946_v58  ;;  %8573 = vst [vmem:[#allocation184_spill] sm:$0xff] %v5955_v52  ;;  %v5960_v45 = vsel %vm945_vm5, %v8574_v48, %v997_v17  ;;  %v8576_v18 = vmov %v8574_v48  ;;  %v994_v58 = vrot.slane %v5683_v51, 3  ;;  %v8580_v53 = vrot.slane %v5721_v11, 4 }
 0x1cb   :  { %8575 = vst [vmem:[#allocation185_spill] sm:$0xff] %v5960_v45  ;;  %v5965_v50 = vsel %vm945_vm5, %v997_v17, %v8576_v18  ;;  %8579 = vst [vmem:[#allocation188_spill] sm:$0xff] %v5973_v37  ;;  %v958_v46 = vrot.slane %v5155_v7, 3  ;;  %v959_v6 = vrot.slane %v5181_v44, 3  ;;  %v8591_v37 = vld [vmem:[#allocation26_spill] sm:$0xff]  ;;  %v783_v9 = vrot.slane %v5423_v62, 2 }
 0x1cc   :  { %8577 = vst [vmem:[#allocation186_spill] sm:$0xff] %v5965_v50  ;;  %v5978_v48 = vsel %vm1138_vm6, %v8580_v53, %v1190_v42  ;;  %v8582_v52 = vmov %v8580_v53  ;;  %v5989_v18 = vsel %vm945_vm5, %v995_v59, %v994_v58  ;;  %v8585_v53 = vrot.slane %v5361_v47, 2  ;;  %1497 = vrot.lane.b32.xlu1 %v8599_v57, %s4778_s0 }
 0x1cd   :  { %8581 = vst [vmem:[#allocation189_spill] sm:$0xff] %v5978_v48  ;;  %v5983_v17 = vsel %vm1138_vm6, %v1190_v42, %v8582_v52  ;;  %8584 = vst [vmem:[#allocation191_spill] sm:$0xff] %v5989_v18  ;;  %v8586_v48 = vrot.slane %v5335_v32, 2  ;;  %v8588_v42 = vld [vmem:[#allocation10_spill] sm:$0xff]  ;;  %v8592_v50 = vrot.slane %v8591_v37, 2  ;;  %v6011_v45 = vsel %vm945_vm5, %v959_v6, %v958_v46 }
 0x1ce   :  { %8583 = vst [vmem:[#allocation190_spill] sm:$0xff] %v5983_v17  ;;  %v1000_v52 = vrot.slane %v8588_v42, 3  ;;  %v1001_v17 = vrot.slane %v8589_v13, 3  ;;  %8594 = vst [vmem:[#allocation16_spill] sm:$0xff] %v6011_v45  ;;  %v784_v15 = vrot.slane %v5447_v35, 2  ;;  %v826_v16 = vrot.slane %v5363_v31, 2 }
 0x1cf   :  { %v5998_v11 = vsel %vm752_vm4, %v8586_v48, %v8585_v53  ;;  %v6007_v18 = vsel %vm752_vm4, %v8592_v50, %v8590_v20  ;;  %v6015_v48 = vsel %vm945_vm5, %v958_v46, %v959_v6  ;;  %v825_v53 = vrot.slane %v5337_v36, 2  ;;  %v8598_v20 = vld [vmem:[#allocation25_spill] sm:$0xff]  ;;  %v8600_v45 = vld [vmem:[#allocation35_spill] sm:$0xff] }
 0x1d0   :  { %8587 = vst [vmem:[#allocation192_spill] sm:$0xff] %v5998_v11  ;;  %8593 = vst [vmem:[#allocation10_spill] sm:$0xff] %v6007_v18  ;;  %v6019_v11 = vsel %vm945_vm5, %v1001_v17, %v1000_v52  ;;  %v6023_v50 = vsel %vm945_vm5, %v994_v58, %v995_v59  ;;  %v964_v18 = vrot.slane %v8598_v20, 3  ;;  %3270 = vrot.lane.b32.xlu0 %v8600_v45, %s4781_s9  ;;  %v8602_v6 = vld [vmem:[#allocation31_spill] sm:$0xff]  ;;  %v1007_v1 = vrot.slane %v8604_v34, 3 }
 0x1d1   :  { %8595 = vst [vmem:[#allocation193_spill] sm:$0xff] %v6015_v48  ;;  %8596 = vst [vmem:[#allocation194_spill] sm:$0xff] %v6019_v11  ;;  %v6031_v46 = vsel %vm752_vm4, %v784_v15, %v783_v9  ;;  %v965_v48 = vrot.slane %v8602_v6, 3  ;;  %v1006_v11 = vrot.slane %v8603_v0, 3  ;;  %v6037_v59 = vsel %vm752_vm4, %v826_v16, %v825_v53  ;;  %1533 = vrot.lane.b32.xlu1 %v8613_v28, %s4778_s0 }
 0x1d2   :  { %8597 = vst [vmem:[#allocation195_spill] sm:$0xff] %v6023_v50  ;;  %8601 = vst [vmem:[#allocation25_spill] sm:$0xff] %v6031_v46  ;;  %v6040_v58 = vsel %vm945_vm5, %v1000_v52, %v1001_v17  ;;  %v1145_v57 = vrot.slane %v5075_v25, 4  ;;  %v1146_v50 = vrot.slane %v5103_v39, 4  ;;  %v789_v33 = vrot.slane %v5509_v2, 2  ;;  %v8611_v52 = vld [vmem:[#allocation69_spill] sm:$0xff] }
 0x1d3   :  { %8605 = vst [vmem:[#allocation27_spill] sm:$0xff] %v6037_v59  ;;  %8606 = vst [vmem:[#allocation35_spill] sm:$0xff] %v6040_v58  ;;  %v6045_v45 = vsel %vm945_vm5, %v965_v48, %v964_v18  ;;  %v6048_v46 = vsel %vm945_vm5, %v1007_v1, %v1006_v11  ;;  %v790_v24 = vrot.slane %v5533_v12, 2  ;;  %v6056_v17 = vsel %vm752_vm4, %v783_v9, %v784_v15  ;;  %v8612_v59 = vld [vmem:[#allocation75_spill] sm:$0xff] }
 0x1d4   :  { %8607 = vst [vmem:[#allocation31_spill] sm:$0xff] %v6045_v45  ;;  %8608 = vst [vmem:[#allocation19_spill] sm:$0xff] %v6048_v46  ;;  %v6053_v27 = vsel %vm1138_vm6, %v1146_v50, %v1145_v57  ;;  %v831_v58 = vrot.slane %v8611_v52, 2  ;;  %v832_v60 = vrot.slane %v8612_v59, 2  ;;  %v8614_v45 = vld [vmem:[#allocation36_spill] sm:$0xff]  ;;  %v6068_v56 = vsel %vm752_vm4, %v825_v53, %v826_v16 }
 0x1d5   :  { %8609 = vst [vmem:[#allocation22_spill] sm:$0xff] %v6053_v27  ;;  %8610 = vst [vmem:[#allocation196_spill] sm:$0xff] %v6056_v17  ;;  %3268 = vrot.lane.b32.xlu0 %v8614_v45, %s4781_s9  ;;  %v6065_v46 = vsel %vm752_vm4, %v790_v24, %v789_v33  ;;  %v970_v27 = vrot.slane %v5335_v32, 3  ;;  %v971_v15 = vrot.slane %v5361_v47, 3  ;;  %v6076_v17 = vsel %vm945_vm5, %v964_v18, %v965_v48 }
 0x1d6   :  { %8615 = vst [vmem:[#allocation30_spill] sm:$0xff] %v6065_v46  ;;  %8616 = vst [vmem:[#allocation36_spill] sm:$0xff] %v6068_v56  ;;  %v6073_v9 = vsel %vm752_vm4, %v832_v60, %v831_v58  ;;  %v1012_v28 = vrot.slane %v8591_v37, 3  ;;  %v1013_v45 = vrot.slane %v5278_v3, 3  ;;  %v6084_v16 = vsel %vm945_vm5, %v1006_v11, %v1007_v1  ;;  %v8622_v56 = vld [vmem:[#allocation7_spill] sm:$0xff]  ;;  %v8628_v11 = vld [vmem:[#allocation37_spill] sm:$0xff] }
 0x1d7   :  { %8617 = vst [vmem:[#allocation197_spill] sm:$0xff] %v6073_v9  ;;  %8618 = vst [vmem:[#allocation198_spill] sm:$0xff] %v6076_v17  ;;  %v6081_v29 = vsel %vm945_vm5, %v971_v15, %v970_v27  ;;  %v6087_v53 = vsel %vm1138_vm6, %v1145_v57, %v1146_v50  ;;  %v8623_v46 = vrot.slane %v8622_v56, 4  ;;  %v8625_v9 = vrot.slane %v8624_v26, 4  ;;  %1819 = vrot.lane.b32.xlu1 %v8628_v11, %s4779_s7  ;;  %v8629_v50 = vld [vmem:[#allocation39_spill] sm:$0xff] }
 0x1d8   :  { %8619 = vst [vmem:[#allocation199_spill] sm:$0xff] %v6081_v29  ;;  %8620 = vst [vmem:[#allocation200_spill] sm:$0xff] %v6084_v16  ;;  %v6097_v48 = vsel %vm945_vm5, %v1013_v45, %v1012_v28  ;;  %v1187_v17 = vrot.slane %v5683_v51, 4  ;;  %v1188_v29 = vrot.slane %v5711_v43, 4  ;;  %v1151_v1 = vrot.slane %v5155_v7, 4 }
 0x1d9   :  { %8621 = vst [vmem:[#allocation201_spill] sm:$0xff] %v6087_v53  ;;  %v6094_v18 = vsel %vm1138_vm6, %v8625_v9, %v8623_v46  ;;  %8627 = vst [vmem:[#allocation5_spill] sm:$0xff] %v6097_v48  ;;  %1355 = vrot.lane.b32.xlu0 %v8629_v50, %s4778_s0  ;;  %v1152_v57 = vrot.slane %v5181_v44, 4  ;;  %v6108_v46 = vsel %vm752_vm4, %v789_v33, %v790_v24  ;;  %v1193_v9 = vrot.slane %v8588_v42, 4 }
 0x1da   :  { %8626 = vst [vmem:[#allocation7_spill] sm:$0xff] %v6094_v18  ;;  %8630 = vst [vmem:[#allocation37_spill] sm:$0xff] %v6108_v46  ;;  %v1194_v18 = vrot.slane %v8589_v13, 4  ;;  %v6113_v51 = vsel %vm1138_vm6, %v1188_v29, %v1187_v17  ;;  %v6116_v43 = vsel %vm752_vm4, %v831_v58, %v832_v60  ;;  %v795_v11 = vrot.slane %v5595_v19, 2 }
 0x1db   :  { %8631 = vst [vmem:[#allocation39_spill] sm:$0xff] %v6113_v51  ;;  %8632 = vst [vmem:[#allocation202_spill] sm:$0xff] %v6116_v43  ;;  %v796_v53 = vrot.slane %v5629_v5, 2  ;;  %v6121_v50 = vsel %vm1138_vm6, %v1152_v57, %v1151_v1  ;;  %v6127_v33 = vsel %vm945_vm5, %v970_v27, %v971_v15  ;;  %v837_v46 = vrot.slane %v5511_v14, 2 }
 0x1dc   :  { %8633 = vst [vmem:[#allocation203_spill] sm:$0xff] %v6121_v50  ;;  %v6124_v24 = vsel %vm1138_vm6, %v1194_v18, %v1193_v9  ;;  %8635 = vst [vmem:[#allocation205_spill] sm:$0xff] %v6127_v33  ;;  %v838_v60 = vrot.slane %v5535_v4, 2  ;;  %v6135_v58 = vsel %vm945_vm5, %v1012_v28, %v1013_v45  ;;  %v976_v43 = vrot.slane %v5423_v62, 3  ;;  %v8638_v50 = vld [vmem:[#allocation38_spill] sm:$0xff] }
 0x1dd   :  { %8634 = vst [vmem:[#allocation204_spill] sm:$0xff] %v6124_v24  ;;  %v6131_v51 = vsel %vm752_vm4, %v796_v53, %v795_v11  ;;  %8637 = vst [vmem:[#allocation207_spill] sm:$0xff] %v6135_v58  ;;  %2545 = vrot.lane.b32.xlu1 %v8638_v50, %s4780_s8  ;;  %v8639_v24 = vld [vmem:[#allocation41_spill] sm:$0xff]  ;;  %v977_v27 = vrot.slane %v5447_v35, 3  ;;  %v6144_v15 = vsel %vm1138_vm6, %v1151_v1, %v1152_v57  ;;  %v1018_v33 = vrot.slane %v5337_v36, 3 }
 0x1de   :  { %8636 = vst [vmem:[#allocation206_spill] sm:$0xff] %v6131_v51  ;;  %1391 = vrot.lane.b32.xlu0 %v8639_v24, %s4778_s0  ;;  %8640 = vst [vmem:[#allocation38_spill] sm:$0xff] %v6144_v15  ;;  %v1019_v51 = vrot.slane %v5363_v31, 3  ;;  %v6149_v28 = vsel %vm752_vm4, %v838_v60, %v837_v46  ;;  %v6152_v45 = vsel %vm1138_vm6, %v1187_v17, %v1188_v29  ;;  %v1157_v50 = vrot.slane %v8598_v20, 4 }
 0x1df   :  { %8641 = vst [vmem:[#allocation41_spill] sm:$0xff] %v6149_v28  ;;  %8642 = vst [vmem:[#allocation208_spill] sm:$0xff] %v6152_v45  ;;  %v1158_v58 = vrot.slane %v8602_v6, 4  ;;  %v6157_v24 = vsel %vm945_vm5, %v977_v27, %v976_v43  ;;  %v1199_v57 = vrot.slane %v8603_v0, 4  ;;  %v1200_v15 = vrot.slane %v8604_v34, 4 }
 0x1e0   :  { %8643 = vst [vmem:[#allocation209_spill] sm:$0xff] %v6157_v24  ;;  %v6160_v1 = vsel %vm945_vm5, %v1019_v51, %v1018_v33  ;;  %v6168_v29 = vsel %vm1138_vm6, %v1193_v9, %v1194_v18  ;;  %v6171_v17 = vsel %vm752_vm4, %v837_v46, %v838_v60  ;;  %v6174_v45 = vsel %vm752_vm4, %v795_v11, %v796_v53  ;;  %v8649_v24 = vld [vmem:[#allocation40_spill] sm:$0xff] }
 0x1e1   :  { %8644 = vst [vmem:[#allocation210_spill] sm:$0xff] %v6160_v1  ;;  %v6165_v16 = vsel %vm1138_vm6, %v1158_v58, %v1157_v50  ;;  %8646 = vst [vmem:[#allocation212_spill] sm:$0xff] %v6168_v29  ;;  %1357 = vrot.lane.b32.xlu1 %v8649_v24, %s4778_s0  ;;  %v8650_v1 = vld [vmem:[#allocation43_spill] sm:$0xff]  ;;  %v6181_v28 = vsel %vm1138_vm6, %v1200_v15, %v1199_v57  ;;  %v843_v18 = vrot.slane %v5597_v63, 2  ;;  %v844_v46 = vrot.slane %v5631_v38, 2  ;;  %v8748_v29 = vld [vmem:[#allocation121_spill] sm:$0xff] }
 0x1e2   :  { %8645 = vst [vmem:[#allocation211_spill] sm:$0xff] %v6165_v16  ;;  %8647 = vst [vmem:[#allocation213_spill] sm:$0xff] %v6171_v17  ;;  %1645 = vrot.lane.b32.xlu0 %v8650_v1, %s4779_s7  ;;  %v6184_v16 = vsel %vm945_vm5, %v976_v43, %v977_v27  ;;  %v6189_v9 = vsel %vm945_vm5, %v1018_v33, %v1019_v51  ;;  %v982_v53 = vrot.slane %v5509_v2, 3  ;;  %v983_v11 = vrot.slane %v5533_v12, 3  ;;  %v8747_v17 = vld [vmem:[#allocation17_spill] sm:$0xff] }
 0x1e3   :  { %8648 = vst [vmem:[#allocation214_spill] sm:$0xff] %v6174_v45  ;;  %8651 = vst [vmem:[#allocation40_spill] sm:$0xff] %v6181_v28  ;;  %v6194_v60 = vsel %vm1138_vm6, %v1157_v50, %v1158_v58  ;;  %v6197_v24 = vsel %vm752_vm4, %v844_v46, %v843_v18  ;;  %v1024_v43 = vrot.slane %v8611_v52, 3  ;;  %v1025_v27 = vrot.slane %v8612_v59, 3  ;;  %v8659_v50 = vld [vmem:[#allocation42_spill] sm:$0xff] }
 0x1e4   :  { %8652 = vst [vmem:[#allocation43_spill] sm:$0xff] %v6184_v16  ;;  %8653 = vst [vmem:[#allocation215_spill] sm:$0xff] %v6189_v9  ;;  %v6202_v1 = vsel %vm1138_vm6, %v1199_v57, %v1200_v15  ;;  %v6205_v51 = vsel %vm945_vm5, %v983_v11, %v982_v53  ;;  %v1163_v33 = vrot.slane %v5335_v32, 4  ;;  %v1164_v9 = vrot.slane %v5361_v47, 4 }
 0x1e5   :  { %8654 = vst [vmem:[#allocation216_spill] sm:$0xff] %v6194_v60  ;;  %8655 = vst [vmem:[#allocation217_spill] sm:$0xff] %v6197_v24  ;;  %v6210_v58 = vsel %vm752_vm4, %v843_v18, %v844_v46  ;;  %1393 = vrot.lane.b32.xlu1 %v8659_v50, %s4778_s0  ;;  %v8660_v60 = vld [vmem:[#allocation47_spill] sm:$0xff]  ;;  %v6217_v24 = vsel %vm945_vm5, %v1025_v27, %v1024_v43  ;;  %v1205_v15 = vrot.slane %v8591_v37, 4  ;;  %v1206_v57 = vrot.slane %v5278_v3, 4 }
 0x1e6   :  { %8656 = vst [vmem:[#allocation218_spill] sm:$0xff] %v6202_v1  ;;  %8657 = vst [vmem:[#allocation219_spill] sm:$0xff] %v6205_v51  ;;  %1499 = vrot.lane.b32.xlu0 %v8660_v60, %s4778_s0  ;;  %v6222_v32 = vsel %vm1138_vm6, %v1164_v9, %v1163_v33  ;;  %v988_v1 = vrot.slane %v5595_v19, 3  ;;  %v989_v18 = vrot.slane %v5629_v5, 3  ;;  %v6227_v46 = vsel %vm945_vm5, %v982_v53, %v983_v11  ;;  %v8667_v53 = vld [vmem:[#allocation44_spill] sm:$0xff]  ;;  %v8668_v11 = vld [vmem:[#allocation50_spill] sm:$0xff] }
 0x1e7   :  { %8658 = vst [vmem:[#allocation220_spill] sm:$0xff] %v6210_v58  ;;  %8661 = vst [vmem:[#allocation42_spill] sm:$0xff] %v6217_v24  ;;  %v6230_v50 = vsel %vm1138_vm6, %v1206_v57, %v1205_v15  ;;  %v1030_v60 = vrot.slane %v5511_v14, 3  ;;  %v1031_v58 = vrot.slane %v5535_v4, 3  ;;  %v6235_v37 = vsel %vm945_vm5, %v1024_v43, %v1025_v27 }
 0x1e8   :  { %8662 = vst [vmem:[#allocation47_spill] sm:$0xff] %v6222_v32  ;;  %8663 = vst [vmem:[#allocation221_spill] sm:$0xff] %v6227_v46  ;;  %v6238_v24 = vsel %vm945_vm5, %v989_v18, %v988_v1  ;;  %v1169_v32 = vrot.slane %v5423_v62, 4  ;;  %v1170_v51 = vrot.slane %v5447_v35, 4  ;;  %v1211_v43 = vrot.slane %v5337_v36, 4 }
 0x1e9   :  { %8664 = vst [vmem:[#allocation222_spill] sm:$0xff] %v6230_v50  ;;  %8665 = vst [vmem:[#allocation223_spill] sm:$0xff] %v6235_v37  ;;  %1643 = vrot.lane.b32.xlu1 %v8667_v53, %s4779_s7  ;;  %v6247_v46 = vsel %vm945_vm5, %v1031_v58, %v1030_v60  ;;  %v6250_v50 = vsel %vm1138_vm6, %v1163_v33, %v1164_v9  ;;  %v1212_v27 = vrot.slane %v5363_v31, 4  ;;  %v6266_v37 = vpop.permute.xlu1 %1349  ;;  %v6268_v9 = vpop.permute.xlu0 %1347  ;;  %v1036_v36 = vrot.slane %v5597_v63, 3 }
 0x1ea   :  { %8666 = vst [vmem:[#allocation224_spill] sm:$0xff] %v6238_v24  ;;  %1535 = vrot.lane.b32.xlu0 %v8668_v11, %s4778_s0  ;;  %8669 = vst [vmem:[#allocation44_spill] sm:$0xff] %v6247_v46  ;;  %v6255_v62 = vsel %vm1138_vm6, %v1170_v51, %v1169_v32  ;;  %v6258_v35 = vsel %vm1138_vm6, %v1205_v15, %v1206_v57  ;;  %v6261_v53 = vsel %vm945_vm5, %v1030_v60, %v1031_v58  ;;  %v8679_v60 = vld [vmem:[#allocation55_spill] sm:$0xff]  ;;  %vm3819_vm3 = vcmask 1047559  }
 0x1eb   :  { %8670 = vst [vmem:[#allocation50_spill] sm:$0xff] %v6250_v50  ;;  %8671 = vst [vmem:[#allocation225_spill] sm:$0xff] %v6255_v62  ;;  %v6264_v11 = vsel %vm945_vm5, %v988_v1, %v989_v18  ;;  %v6271_v33 = vsel %vm1138_vm6, %v1212_v27, %v1211_v43  ;;  %v6274_v31 = vsel %vm1138_vm6, %v1169_v32, %v1170_v51  ;;  %v1037_v15 = vrot.slane %v5631_v38, 3  ;;  %v8678_v18 = vld [vmem:[#allocation54_spill] sm:$0xff] }
 0x1ec   :  { %8672 = vst [vmem:[#allocation226_spill] sm:$0xff] %v6258_v35  ;;  %8673 = vst [vmem:[#allocation227_spill] sm:$0xff] %v6261_v53  ;;  %v6279_v58 = vsel %vm1138_vm6, %v1211_v43, %v1212_v27  ;;  %v1175_v1 = vrot.slane %v5509_v2, 4  ;;  %v1176_v57 = vrot.slane %v5533_v12, 4  ;;  %v1218_v43 = vrot.slane %v8612_v59, 4 }
 0x1ed   :  { %8674 = vst [vmem:[#allocation228_spill] sm:$0xff] %v6264_v11  ;;  %8675 = vst [vmem:[#allocation229_spill] sm:$0xff] %v6271_v33  ;;  %1681 = vrot.lane.b32.xlu1 %v8678_v18, %s4779_s7  ;;  %v6288_v32 = vsel %vm945_vm5, %v1037_v15, %v1036_v36  ;;  %v6291_v51 = vsel %vm945_vm5, %v1036_v36, %v1037_v15  ;;  %v1182_v18 = vrot.slane %v5629_v5, 4  ;;  %v6305_v12 = vpop.permute.xlu0 %1383  ;;  %v1223_v15 = vrot.slane %v5511_v14, 4 }
 0x1ee   :  { %8676 = vst [vmem:[#allocation230_spill] sm:$0xff] %v6274_v31  ;;  %8677 = vst [vmem:[#allocation231_spill] sm:$0xff] %v6279_v58  ;;  %1787 = vrot.lane.b32.xlu0 %v8679_v60, %s4779_s7  ;;  %v1217_v31 = vrot.slane %v8611_v52, 4  ;;  %v6296_v27 = vsel %vm1138_vm6, %v1176_v57, %v1175_v1  ;;  %v1181_v58 = vrot.slane %v5595_v19, 4  ;;  %v6301_v2 = vsel %vm1138_vm6, %v1175_v1, %v1176_v57  ;;  %v6303_v60 = vpop.permute.xlu1 %1385  ;;  %v8688_v57 = vld [vmem:[#allocation51_spill] sm:$0xff] }
 0x1ef   :  { %8680 = vst [vmem:[#allocation54_spill] sm:$0xff] %v6288_v32  ;;  %8681 = vst [vmem:[#allocation55_spill] sm:$0xff] %v6291_v51  ;;  %v1224_v51 = vrot.slane %v5535_v4, 4  ;;  %vm3904_vm4 = vcmask 130048  }
 0x1f0   :  { %8682 = vst [vmem:[#allocation232_spill] sm:$0xff] %v6296_v27  ;;  %8683 = vst [vmem:[#allocation233_spill] sm:$0xff] %v6301_v2  ;;  %v6308_v36 = vsel %vm1138_vm6, %v1218_v43, %v1217_v31  ;;  %v6313_v27 = vsel %vm1138_vm6, %v1217_v31, %v1218_v43  ;;  %v6316_v19 = vsel %vm1138_vm6, %v1182_v18, %v1181_v58  ;;  %v8689_v2 = vld [vmem:[#allocation59_spill] sm:$0xff]  ;;  %v1229_v31 = vrot.slane %v5597_v63, 4 }
 0x1f1   :  { %8684 = vst [vmem:[#allocation234_spill] sm:$0xff] %v6308_v36  ;;  %8685 = vst [vmem:[#allocation235_spill] sm:$0xff] %v6313_v27  ;;  %v6319_v1 = vsel %vm1138_vm6, %v1181_v58, %v1182_v18  ;;  %1501 = vrot.lane.b32.xlu1 %v8688_v57, %s4778_s0  ;;  %v6326_v36 = vsel %vm1138_vm6, %v1224_v51, %v1223_v15  ;;  %v6329_v5 = vsel %vm1138_vm6, %v1223_v15, %v1224_v51  ;;  %v8695_v57 = vld [vmem:[#allocation60_spill] sm:$0xff] }
 0x1f2   :  { %8686 = vst [vmem:[#allocation236_spill] sm:$0xff] %v6316_v19  ;;  %8687 = vst [vmem:[#allocation237_spill] sm:$0xff] %v6319_v1  ;;  %1825 = vrot.lane.b32.xlu0 %v8689_v2, %s4779_s7  ;;  %v1230_v43 = vrot.slane %v5631_v38, 4  ;;  %v1638_v27 = vpop.permute.xlu1 %1637  ;;  %v1636_v19 = vpop.permute.xlu0 %1635  ;;  %v8694_v2 = vld [vmem:[#allocation56_spill] sm:$0xff]  ;;  %v8696_v1 = vld [vmem:[#allocation61_spill] sm:$0xff] }
 0x1f3   :  { %8690 = vst [vmem:[#allocation51_spill] sm:$0xff] %v6326_v36  ;;  %8691 = vst [vmem:[#allocation59_spill] sm:$0xff] %v6329_v5  ;;  %v8697_v5 = vld [vmem:[#allocation62_spill] sm:$0xff] }
 0x1f4   :  { %v6334_v58 = vsel %vm1138_vm6, %v1229_v31, %v1230_v43  ;;  %v6337_v18 = vsel %vm1138_vm6, %v1230_v43, %v1229_v31  ;;  %v8698_v31 = vld [vmem:[#allocation63_spill] sm:$0xff]  ;;  %v8699_v43 = vld [vmem:[#allocation64_spill] sm:$0xff] }
 0x1f5   :  { %8692 = vst [vmem:[#allocation238_spill] sm:$0xff] %v6334_v58  ;;  %8693 = vst [vmem:[#allocation239_spill] sm:$0xff] %v6337_v18  ;;  %1537 = vrot.lane.b32.xlu1 %v8694_v2, %s4778_s0  ;;  %v8700_v2 = vld [vmem:[#allocation8_spill] sm:$0xff] }
 0x1f6   :  { %1823 = vrot.lane.b32.xlu0 %v8695_v57, %s4779_s7  ;;  %v1494_v51 = vpop.permute.xlu1 %1493  ;;  %v1674_v15 = vpop.permute.xlu0 %1673 }
 0x1f7   :  { %v1588_v18 = vadd.f32 %v1494_v51, %v8700_v2  ;;  %v8705_v51 = vld [vmem:[#allocation67_spill] sm:$0xff]  ;;  %v8706_v2 = vld [vmem:[#allocation18_spill] sm:$0xff] }
 0x1f9   :  { %1789 = vrot.lane.b32.xlu1 %v8696_v1, %s4779_s7  ;;  %v8701_v1 = vld [vmem:[#allocation66_spill] sm:$0xff] }
 0x1fa   :  { %2513 = vrot.lane.b32.xlu0 %v8697_v5, %s4780_s8  ;;  %v1530_v36 = vpop.permute.xlu1 %1529  ;;  %v6347_v63 = vpop.permute.xlu0 %1671  ;;  %v8702_v5 = vld [vmem:[#allocation65_spill] sm:$0xff] }
 0x1fd   :  { %2515 = vrot.lane.b32.xlu1 %v8698_v31, %s4780_s8  ;;  %v8703_v31 = vld [vmem:[#allocation6_spill] sm:$0xff] }
 0x1fe   :  { %2551 = vrot.lane.b32.xlu0 %v8699_v43, %s4780_s8  ;;  %v1782_v57 = vpop.permute.xlu1 %1781  ;;  %v6354_v58 = vpop.permute.xlu0 %2363  ;;  %v8704_v43 = vld [vmem:[#allocation72_spill] sm:$0xff] }
 0x1ff   :  { %v1876_v38 = vadd.f32 %v1782_v57, %v1588_v18  ;;  %v1606_v18 = vadd.f32 %v1530_v36, %v8706_v2  ;;  %v8709_v36 = vld [vmem:[#allocation14_spill] sm:$0xff] }
 0x201   :  { %3238 = vrot.lane.b32.xlu1 %v8701_v1, %s4781_s9  ;;  %v4038_v4 = vmul.f32 -1.442695, %v1876_v38 }
 0x202   :  { %2549 = vrot.lane.b32.xlu0 %v8702_v5, %s4780_s8  ;;  %v1780_v32 = vpop.permute.xlu1 %1779  ;;  %v1492_v14 = vpop.permute.xlu0 %1491 }
 0x203   :  { %4176 = vpow2.f32 %v4038_v4  ;;  %v1587_v59 = vadd.f32 %v1492_v14, %v8703_v31  ;;  %v1444_v4 = vadd.f32 %v6266_v37, %v8622_v56  ;;  %v8707_v14 = vld [vmem:[#allocation73_spill] sm:$0xff]  ;;  %v8708_v31 = vld [vmem:[#allocation76_spill] sm:$0xff]  ;;  %v8711_v37 = vld [vmem:[#allocation78_spill] sm:$0xff] }
 0x204   :  { %v8710_v56 = vld [vmem:[#allocation77_spill] sm:$0xff] }
 0x205   :  { %3274 = vrot.lane.b32.xlu1 %v8704_v43, %s4781_s9  ;;  %v6366_v57 = vadd.f32 %v1780_v32, %v1587_v59  ;;  %v1732_v32 = vadd.f32 %v1638_v27, %v1444_v4  ;;  %v1443_v27 = vadd.f32 %v6268_v9, %v8624_v26 }
 0x206   :  { %3236 = vrot.lane.b32.xlu0 %v8705_v51, %s4781_s9  ;;  %v1818_v1 = vpop.permute.xlu1 %1817  ;;  %v1528_v52 = vpop.permute.xlu0 %1527 }
 0x207   :  { %v6368_v11 = vadd.f32 %v1818_v1, %v1606_v18  ;;  %v4037_v5 = vmul.f32 -1.442695, %v6366_v57  ;;  %v1605_v59 = vadd.f32 %v1528_v52, %v8709_v36  ;;  %v8713_v36 = vld [vmem:[#allocation82_spill] sm:$0xff] }
 0x209   :  { %3272 = vrot.lane.b32.xlu1 %v8707_v14, %s4781_s9  ;;  %v4056_v43 = vmul.f32 -1.442695, %v6368_v11  ;;  %4178 = vpow2.f32 %v4037_v5 }
 0x20a   :  { %1359 = vrot.lane.b32.xlu0 %v8708_v31, %s4778_s0  ;;  %v1816_v51 = vpop.permute.xlu1 %1815  ;;  %v6379_v2 = vpop.permute.xlu0 %1351 }
 0x20b   :  { %4180 = vpow2.f32 %v4056_v43  ;;  %v6381_v18 = vadd.f32 %v1816_v51, %v1605_v59  ;;  %v8712_v43 = vld [vmem:[#allocation81_spill] sm:$0xff]  ;;  %v1462_v59 = vadd.f32 %v6303_v60, %v8589_v13  ;;  %v6400_v51 = vadd.f32 %v1636_v19, %v1443_v27 }
 0x20c   :  { %4182 = vtanh.f32 %v1732_v32  ;;  %v1461_v19 = vadd.f32 %v6305_v12, %v8588_v42  ;;  %v8718_v60 = vlaneseq  ;;  %v8721_v12 = vld [vmem:[#allocation86_spill] sm:$0xff] }
 0x20d   :  { %1361 = vrot.lane.b32.xlu1 %v8710_v56, %s4778_s0  ;;  %v4177_v1 = vpop.eup %4176  ;;  %v4055_v14 = vmul.f32 -1.442695, %v6381_v18  ;;  %8714 = vst [vmem:[#allocation56_spill] sm:$0xff] %v6400_v51  ;;  %v6407_v9 = vadd.f32 %v1674_v15, %v1462_v59 }
 0x20e   :  { %1395 = vrot.lane.b32.xlu0 %v8711_v37, %s4778_s0  ;;  %v2036_v31 = vadd.f32 1.0, %v4177_v1  ;;  %v2508_v52 = vpop.permute.xlu1 %2507  ;;  %v6388_v5 = vpop.permute.xlu0 %1387 }
 0x20f   :  { %4184 = vpow2.f32 %v4055_v14  ;;  %v6392_v4 = vadd.f32 %v2508_v52, %v1876_v38  ;;  %8715 = vst [vmem:[#allocation60_spill] sm:$0xff] %v6407_v9  ;;  %v8716_v14 = vld [vmem:[#allocation84_spill] sm:$0xff]  ;;  %v2164_v52 = vshrl.u32 %v8718_v60, 7  ;;  %v8723_v60 = vld [vmem:[#allocation87_spill] sm:$0xff] }
 0x210   :  { %4186 = vrcp.f32 %v2036_v31  ;;  %v8717_v31 = vld [vmem:[#allocation83_spill] sm:$0xff] }
 0x211   :  { %1397 = vrot.lane.b32.xlu1 %v8712_v43, %s4778_s0  ;;  %v4070_v56 = vmul.f32 -1.442695, %v6392_v4 }
 0x212   :  { %1649 = vrot.lane.b32.xlu0 %v8713_v36, %s4779_s7  ;;  %v6403_v37 = vpop.permute.xlu1 %2505  ;;  %v6405_v26 = vpop.permute.xlu0 %1641  ;;  %v6423_v36 = vadd.f32 %v6347_v63, %v1461_v19  ;;  %v6435_v19 = vadd.f32 %v6354_v58, %v1732_v32 }
 0x213   :  { %v4179_v38 = vpop.eup %4178  ;;  %4188 = vpow2.f32 %v4070_v56  ;;  %v8720_v56 = vld [vmem:[#allocation85_spill] sm:$0xff] }
 0x214   :  { %v2035_v1 = vadd.f32 1.0, %v4179_v38  ;;  %4190 = vtanh.f32 %v6400_v51  ;;  %8719 = vst [vmem:[#allocation61_spill] sm:$0xff] %v6423_v36  ;;  %v6429_v38 = vadd.s32 8, %v2164_v52  ;;  %8722 = vst [vmem:[#allocation62_spill] sm:$0xff] %v6435_v19 }
 0x215   :  { %1505 = vrot.lane.b32.xlu1 %v8716_v14, %s4778_s0  ;;  %v4181_v13 = vpop.eup %4180 }
 0x216   :  { %1647 = vrot.lane.b32.xlu0 %v8717_v31, %s4779_s7  ;;  %v2054_v27 = vadd.f32 1.0, %v4181_v13  ;;  %4192 = vrcp.f32 %v2035_v1  ;;  %v6417_v15 = vpop.permute.xlu1 %2543  ;;  %v6419_v43 = vpop.permute.xlu0 %1675  ;;  %vm2167_vm2 = vcmp.lt.s32.totalorder %v6429_v38, 14  ;;  %vm2890_vm11 = vcmp.lt.s32.totalorder %v6429_v38, 13 }
 0x217   :  { %4194 = vtanh.f32 %v6407_v9  ;;  %v4183_v59 = vpop.eup %4182  ;;  %vm3613_vm13 = vcmp.lt.s32.totalorder %v6429_v38, 12 }
 0x218   :  { %4196 = vrcp.f32 %v2054_v27  ;;  %v8724_v27 = vld [vmem:[#allocation88_spill] sm:$0xff] }
 0x219   :  { %1541 = vrot.lane.b32.xlu1 %v8721_v12, %s4778_s0  ;;  %v4185_v42 = vpop.eup %4184  ;;  %4198 = vtanh.f32 %v6423_v36 }
 0x21a   :  { %1503 = vrot.lane.b32.xlu0 %v8720_v56, %s4778_s0  ;;  %v4187_v1 = vpop.eup %4186  ;;  %v2053_v14 = vadd.f32 1.0, %v4185_v42  ;;  %v6431_v31 = vpop.permute.xlu1 %2541 }
 0x21b   :  { %v1496_v13 = vpop.permute.xlu0 %1495  ;;  %v2132_v63 = vmul.f32 %v4187_v1, %v4183_v59  ;;  %v8725_v59 = vld [vmem:[#allocation89_spill] sm:$0xff]  ;;  %v8726_v1 = vld [vmem:[#allocation90_spill] sm:$0xff] }
 0x21c   :  { %4200 = vrcp.f32 %v2053_v14 }
 0x21d   :  { %1793 = vrot.lane.b32.xlu1 %v8723_v60, %s4779_s7  ;;  %v4189_v52 = vpop.eup %4188  ;;  %4202 = vtanh.f32 %v6435_v19  ;;  %v2169_v32 = vsel %vm2167_vm2, %v2132_v63, -1e+30  ;;  %v8727_v63 = vld [vmem:[#allocation95_spill] sm:$0xff] }
 0x21e   :  { %1539 = vrot.lane.b32.xlu0 %v8724_v27, %s4778_s0  ;;  %v2762_v56 = vadd.f32 1.0, %v4189_v52  ;;  %v6442_v12 = vpop.permute.xlu1 %3230  ;;  %v4191_v36 = vpop.eup %4190  ;;  %v2202_v19 = vsel %vm2200_vm7, %v2169_v32, -inf }
 0x21f   :  { %v6444_v42 = vpop.permute.xlu0 %1531 }
 0x220   :  { %v4193_v58 = vpop.eup %4192  ;;  %4204 = vrcp.f32 %v2762_v56  ;;  %v8728_v56 = vld [vmem:[#allocation99_spill] sm:$0xff] }
 0x221   :  { %1791 = vrot.lane.b32.xlu1 %v8725_v59, %s4779_s7  ;;  %v4195_v14 = vpop.eup %4194  ;;  %v2131_v60 = vmul.f32 %v4193_v58, %v4191_v36 }
 0x222   :  { %2553 = vrot.lane.b32.xlu0 %v8726_v1, %s4780_s8  ;;  %v4197_v27 = vpop.eup %4196  ;;  %v6453_v52 = vpop.permute.xlu1 %3228 }
 0x223   :  { %v1786_v53 = vpop.permute.xlu0 %1785  ;;  %v2150_v9 = vmul.f32 %v4197_v27, %v4195_v14  ;;  %v2201_v35 = vsel %vm2200_vm7, %v2131_v60, -inf  ;;  %v4199_v59 = vpop.eup %4198  ;;  %v8729_v14 = vld [vmem:[#allocation100_spill] sm:$0xff] }
 0x224   :  { %v6457_v33 = vmax.f32 %v2201_v35, %v2202_v19  ;;  %v8730_v35 = vld [vmem:[#allocation104_spill] sm:$0xff] }
 0x225   :  { %1829 = vrot.lane.b32.xlu1 %v8727_v63, %s4779_s7  ;;  %v2187_v36 = vsel %vm2167_vm2, %v2150_v9, -1e+30 }
 0x226   :  { %3240 = vrot.lane.b32.xlu0 %v8728_v56, %s4781_s9  ;;  %v4201_v1 = vpop.eup %4200  ;;  %v6465_v58 = vpop.permute.xlu1 %3266  ;;  %v2283_v60 = vsel %vm2200_vm7, %v2187_v36, -inf  ;;  %v8735_v36 = vld [vmem:[#allocation101_spill] sm:$0xff] }
 0x227   :  { %v1784_v51 = vpop.permute.xlu0 %1783  ;;  %v2149_v32 = vmul.f32 %v4201_v1, %v4199_v59  ;;  %v4203_v19 = vpop.eup %4202  ;;  %v8733_v59 = vld [vmem:[#allocation96_spill] sm:$0xff]  ;;  %v8734_v1 = vld [vmem:[#allocation105_spill] sm:$0xff] }
 0x229   :  { %2519 = vrot.lane.b32.xlu1 %v8729_v14, %s4780_s8  ;;  %v2282_v27 = vsel %vm2200_vm7, %v2149_v32, -inf  ;;  %v8736_v32 = vld [vmem:[#allocation107_spill] sm:$0xff] }
 0x22a   :  { %3278 = vrot.lane.b32.xlu0 %v8730_v35, %s4781_s9  ;;  %v4205_v63 = vpop.eup %4204  ;;  %v6473_v56 = vmax.f32 %v2282_v27, %v2283_v60  ;;  %v6475_v50 = vpop.permute.xlu1 %3264 }
 0x22b   :  { %v1822_v9 = vpop.permute.xlu0 %1821  ;;  %v6477_v62 = vmul.f32 %v4205_v63, %v4203_v19  ;;  %v8737_v19 = vld [vmem:[#allocation106_spill] sm:$0xff] }
 0x22c   :  { %8731 = vst [vmem:[#allocation63_spill] sm:$0xff] %v6473_v56  ;;  %v8738_v63 = vld [vmem:[#allocation110_spill] sm:$0xff] }
 0x22d   :  { %8732 = vst [vmem:[#allocation64_spill] sm:$0xff] %v6477_v62  ;;  %1827 = vrot.lane.b32.xlu1 %v8733_v59, %s4779_s7  ;;  %v8739_v62 = vld [vmem:[#allocation13_spill] sm:$0xff] }
 0x22e   :  { %3276 = vrot.lane.b32.xlu0 %v8734_v1, %s4781_s9  ;;  %v1354_v14 = vpop.permute.xlu1 %1353  ;;  %v1589_v46 = vadd.f32 %v1496_v13, %v8739_v62 }
 0x22f   :  { %v2512_v35 = vpop.permute.xlu0 %2511 }
 0x230   :  { %v6502_v24 = vadd.f32 %v1784_v51, %v1589_v46  ;;  %v8746_v46 = vld [vmem:[#allocation116_spill] sm:$0xff] }
 0x231   :  { %2517 = vrot.lane.b32.xlu1 %v8735_v36, %s4780_s8  ;;  %v8740_v36 = vld [vmem:[#allocation108_spill] sm:$0xff] }
 0x232   :  { %1363 = vrot.lane.b32.xlu0 %v8736_v32, %s4778_s0  ;;  %v6487_v60 = vpop.permute.xlu1 %1389  ;;  %v8741_v32 = vld [vmem:[#allocation112_spill] sm:$0xff]  ;;  %v4039_v45 = vmul.f32 -1.442695, %v6502_v24 }
 0x233   :  { %v6489_v27 = vpop.permute.xlu0 %2509 }
 0x234   :  { %4206 = vpow2.f32 %v4039_v45 }
 0x235   :  { %2555 = vrot.lane.b32.xlu1 %v8737_v19, %s4780_s8  ;;  %v8743_v19 = vld [vmem:[#allocation109_spill] sm:$0xff] }
 0x236   :  { %1399 = vrot.lane.b32.xlu0 %v8738_v63, %s4778_s0  ;;  %v1640_v59 = vpop.permute.xlu1 %1639  ;;  %v8744_v63 = vld [vmem:[#allocation113_spill] sm:$0xff] }
 0x237   :  { %v6495_v1 = vpop.permute.xlu0 %2547 }
 0x239   :  { %3242 = vrot.lane.b32.xlu1 %v8740_v36, %s4781_s9  ;;  %v8745_v36 = vld [vmem:[#allocation111_spill] sm:$0xff] }
 0x23a   :  { %1507 = vrot.lane.b32.xlu0 %v8741_v32, %s4778_s0  ;;  %v1678_v56 = vpop.permute.xlu1 %1677 }
 0x23b   :  { %v6504_v16 = vpop.permute.xlu0 %3234 }
 0x23c   :  { %8742 = vst [vmem:[#allocation8_spill] sm:$0xff] %v6504_v16  ;;  %v8752_v16 = vld [vmem:[#allocation118_spill] sm:$0xff] }
 0x23d   :  { %1365 = vrot.lane.b32.xlu1 %v8743_v19, %s4778_s0 }
 0x23e   :  { %1543 = vrot.lane.b32.xlu0 %v8744_v63, %s4778_s0  ;;  %v2368_v62 = vpop.permute.xlu1 %2367  ;;  %v8749_v63 = vld [vmem:[#allocation117_spill] sm:$0xff] }
 0x23f   :  { %v6511_v13 = vpop.permute.xlu0 %3232 }
 0x241   :  { %1401 = vrot.lane.b32.xlu1 %v8745_v36, %s4778_s0 }
 0x242   :  { %1797 = vrot.lane.b32.xlu0 %v8746_v46, %s4779_s7  ;;  %v1498_v51 = vpop.permute.xlu1 %1497  ;;  %v8751_v46 = vld [vmem:[#allocation24_spill] sm:$0xff] }
 0x243   :  { %v6517_v32 = vpop.permute.xlu0 %3270  ;;  %v1590_v19 = vadd.f32 %v1498_v51, %v8747_v17  ;;  %v8753_v17 = vld [vmem:[#allocation127_spill] sm:$0xff] }
 0x245   :  { %1653 = vrot.lane.b32.xlu1 %v8748_v29, %s4779_s7  ;;  %v1878_v28 = vadd.f32 %v1786_v53, %v1590_v19  ;;  %v8754_v53 = vld [vmem:[#allocation21_spill] sm:$0xff] }
 0x246   :  { %1795 = vrot.lane.b32.xlu0 %v8749_v63, %s4779_s7  ;;  %v1534_v48 = vpop.permute.xlu1 %1533  ;;  %v1607_v19 = vadd.f32 %v6444_v42, %v8754_v53  ;;  %v1446_v42 = vadd.f32 %v1354_v14, %v5103_v39  ;;  %v8759_v53 = vld [vmem:[#allocation128_spill] sm:$0xff] }
 0x247   :  { %v6524_v47 = vpop.permute.xlu0 %3268  ;;  %v4040_v36 = vmul.f32 -1.442695, %v1878_v28  ;;  %v6526_v3 = vadd.f32 %v2512_v35, %v1878_v28  ;;  %v1608_v45 = vadd.f32 %v1534_v48, %v8751_v46  ;;  %v1445_v48 = vadd.f32 %v6379_v2, %v5075_v25  ;;  %v4207_v28 = vpop.eup %4206 }
 0x248   :  { %8750 = vst [vmem:[#allocation66_spill] sm:$0xff] %v6524_v47 }
 0x249   :  { %1509 = vrot.lane.b32.xlu1 %v8752_v16, %s4778_s0  ;;  %4208 = vpow2.f32 %v4040_v36  ;;  %v4072_v29 = vmul.f32 -1.442695, %v6526_v3  ;;  %v6534_v51 = vadd.f32 %v1822_v9, %v1608_v45  ;;  %v8755_v36 = vld [vmem:[#allocation122_spill] sm:$0xff]  ;;  %v6550_v9 = vadd.f32 %v1640_v59, %v1445_v48 }
 0x24a   :  { %1833 = vrot.lane.b32.xlu0 %v8753_v17, %s4779_s7  ;;  %v1820_v63 = vpop.permute.xlu1 %1819  ;;  %v2037_v17 = vadd.f32 1.0, %v4207_v28  ;;  %v1464_v48 = vadd.f32 %v6487_v60, %v8604_v34  ;;  %v8761_v28 = vld [vmem:[#allocation132_spill] sm:$0xff]  ;;  %v1463_v34 = vadd.f32 %v6388_v5, %v8603_v0  ;;  %v8765_v60 = vld [vmem:[#allocation131_spill] sm:$0xff]  ;;  %v8768_v5 = vld [vmem:[#allocation133_spill] sm:$0xff] }
 0x24b   :  { %v6538_v47 = vpop.permute.xlu0 %1355  ;;  %4210 = vpow2.f32 %v4072_v29  ;;  %v4058_v16 = vmul.f32 -1.442695, %v6534_v51  ;;  %v6543_v35 = vadd.f32 %v1820_v63, %v1607_v19  ;;  %8756 = vst [vmem:[#allocation65_spill] sm:$0xff] %v6550_v9  ;;  %v8758_v29 = vld [vmem:[#allocation129_spill] sm:$0xff] }
 0x24d   :  { %1545 = vrot.lane.b32.xlu1 %v8755_v36, %s4778_s0  ;;  %4212 = vpow2.f32 %v4058_v16  ;;  %v4057_v46 = vmul.f32 -1.442695, %v6543_v35  ;;  %v8762_v36 = vld [vmem:[#allocation130_spill] sm:$0xff] }
 0x24e   :  { %2523 = vrot.lane.b32.xlu0 %v5650_v54, %s4780_s8  ;;  %4214 = vtanh.f32 %v6550_v9  ;;  %v1734_v54 = vadd.f32 %v6405_v26, %v1446_v42  ;;  %v6575_v42 = vadd.f32 %v1678_v56, %v1464_v48 }
 0x24f   :  { %v6553_v2 = vpop.permute.xlu1 %2545  ;;  %4216 = vpow2.f32 %v4057_v46 }
 0x250   :  { %v6555_v45 = vpop.permute.xlu0 %1391  ;;  %4218 = vrcp.f32 %v2037_v17  ;;  %v6567_v63 = vadd.f32 %v2368_v62, %v1734_v54  ;;  %8763 = vst [vmem:[#allocation67_spill] sm:$0xff] %v6575_v42 }
 0x251   :  { %8757 = vst [vmem:[#allocation6_spill] sm:$0xff] %v6555_v45  ;;  %2559 = vrot.lane.b32.xlu1 %v8758_v29, %s4780_s8  ;;  %4220 = vtanh.f32 %v1734_v54  ;;  %v6587_v54 = vadd.f32 %v6419_v43, %v1463_v34  ;;  %v2204_v43 = vrot.slane %v6457_v33, 4 }
 0x252   :  { %1831 = vrot.lane.b32.xlu0 %v8759_v53, %s4779_s7  ;;  %8760 = vst [vmem:[#allocation72_spill] sm:$0xff] %v6567_v63  ;;  %v8766_v53 = vld [vmem:[#allocation134_spill] sm:$0xff] }
 0x253   :  { %v6563_v14 = vpop.permute.xlu1 %1357  ;;  %v4209_v19 = vpop.eup %4208  ;;  %8767 = vst [vmem:[#allocation73_spill] sm:$0xff] %v6587_v54 }
 0x254   :  { %v6565_v59 = vpop.permute.xlu0 %1645  ;;  %v2038_v16 = vadd.f32 1.0, %v4209_v19 }
 0x255   :  { %3246 = vrot.lane.b32.xlu1 %v8761_v28, %s4781_s9  ;;  %v4211_v26 = vpop.eup %4210  ;;  %v8769_v28 = vld [vmem:[#allocation136_spill] sm:$0xff] }
 0x256   :  { %2521 = vrot.lane.b32.xlu0 %v8762_v36, %s4780_s8  ;;  %4222 = vrcp.f32 %v2038_v16  ;;  %v2764_v46 = vadd.f32 1.0, %v4211_v26 }
 0x257   :  { %v6577_v29 = vpop.permute.xlu1 %1393  ;;  %4224 = vtanh.f32 %v6567_v63  ;;  %v4213_v17 = vpop.eup %4212 }
 0x258   :  { %8764 = vst [vmem:[#allocation18_spill] sm:$0xff] %v6577_v29  ;;  %v1500_v62 = vpop.permute.xlu0 %1499  ;;  %4226 = vrcp.f32 %v2764_v46  ;;  %v2056_v56 = vadd.f32 1.0, %v4213_v17  ;;  %v4215_v16 = vpop.eup %4214  ;;  %v8770_v46 = vld [vmem:[#allocation20_spill] sm:$0xff] }
 0x259   :  { %2557 = vrot.lane.b32.xlu1 %v8765_v60, %s4780_s8  ;;  %4228 = vtanh.f32 %v6575_v42  ;;  %v4217_v0 = vpop.eup %4216  ;;  %v1591_v17 = vadd.f32 %v1500_v62, %v8770_v46  ;;  %v2205_v62 = vmax.f32 %v6457_v33, %v2204_v43  ;;  %v8778_v33 = vld [vmem:[#allocation142_spill] sm:$0xff] }
 0x25a   :  { %1367 = vrot.lane.b32.xlu0 %v8766_v53, %s4778_s0  ;;  %4230 = vrcp.f32 %v2056_v56  ;;  %v4219_v36 = vpop.eup %4218  ;;  %v2055_v26 = vadd.f32 1.0, %v4217_v0  ;;  %v8774_v0 = vld [vmem:[#allocation141_spill] sm:$0xff] }
 0x25b   :  { %v6590_v19 = vpop.permute.xlu1 %1643  ;;  %4232 = vtanh.f32 %v6587_v54  ;;  %v4221_v53 = vpop.eup %4220  ;;  %v2133_v63 = vmul.f32 %v4219_v36, %v4215_v16 }
 0x25c   :  { %v6592_v48 = vpop.permute.xlu0 %1535  ;;  %4234 = vrcp.f32 %v2055_v26 }
 0x25d   :  { %3244 = vrot.lane.b32.xlu1 %v8768_v5, %s4781_s9  ;;  %v8773_v5 = vld [vmem:[#allocation137_spill] sm:$0xff] }
 0x25e   :  { %1403 = vrot.lane.b32.xlu0 %v8769_v28, %s4778_s0 }
 0x25f   :  { %v6601_v34 = vpop.permute.xlu1 %1681 }
 0x260   :  { %8771 = vst [vmem:[#allocation76_spill] sm:$0xff] %v6601_v34  ;;  %v1788_v60 = vpop.permute.xlu0 %1787  ;;  %v4223_v56 = vpop.eup %4222 }
 0x261   :  { %v6603_v42 = vadd.f32 %v1788_v60, %v1591_v17  ;;  %3282 = vrot.lane.b32.xlu1 %v8773_v5, %s4781_s9  ;;  %v4225_v28 = vpop.eup %4224  ;;  %v2134_v45 = vmul.f32 %v4223_v56, %v4221_v53  ;;  %v2210_v17 = vsel %vm2200_vm7, %v2133_v63, -inf  ;;  %v8777_v53 = vld [vmem:[#allocation138_spill] sm:$0xff] }
 0x262   :  { %1511 = vrot.lane.b32.xlu0 %v8774_v0, %s4778_s0  ;;  %v4227_v54 = vpop.eup %4226 }
 0x263   :  { %8772 = vst [vmem:[#allocation14_spill] sm:$0xff] %v6603_v42  ;;  %v1502_v46 = vpop.permute.xlu1 %1501  ;;  %v2171_v26 = vsel %vm2167_vm2, %v2134_v45, -1e+30  ;;  %v6614_v16 = vmul.f32 %v4227_v54, %v4225_v28  ;;  %v4229_v36 = vpop.eup %4228  ;;  %v4041_v5 = vmul.f32 -1.442695, %v6603_v42  ;;  %v2206_v54 = vrot.slane %v2205_v62, 2 }
 0x264   :  { %v6610_v9 = vpop.permute.xlu0 %1825  ;;  %v2211_v60 = vsel %vm2200_vm7, %v2171_v26, -inf  ;;  %v4231_v43 = vpop.eup %4230 }
 0x265   :  { %8775 = vst [vmem:[#allocation77_spill] sm:$0xff] %v6610_v9  ;;  %8776 = vst [vmem:[#allocation78_spill] sm:$0xff] %v6614_v16  ;;  %3280 = vrot.lane.b32.xlu1 %v8777_v53, %s4781_s9  ;;  %v2212_v56 = vmax.f32 %v2210_v17, %v2211_v60  ;;  %v2152_v0 = vmul.f32 %v4231_v43, %v4229_v36  ;;  %v4233_v63 = vpop.eup %4232  ;;  %4236 = vpow2.f32 %v4041_v5  ;;  %v8779_v16 = vld [vmem:[#allocation139_spill] sm:$0xff] }
 0x266   :  { %1547 = vrot.lane.b32.xlu0 %v8778_v33, %s4778_s0  ;;  %v8780_v53 = vld [vmem:[#allocation147_spill] sm:$0xff]  ;;  %v4235_v33 = vpop.eup %4234  ;;  %v2207_v42 = vmax.f32 %v2205_v62, %v2206_v54  ;;  %v8783_v54 = vld [vmem:[#allocation145_spill] sm:$0xff] }
 0x267   :  { %v6623_v25 = vpop.permute.xlu1 %1537  ;;  %v2213_v28 = vrot.slane %v2212_v56, 4  ;;  %v2189_v26 = vsel %vm2167_vm2, %v2152_v0, -1e+30  ;;  %v8781_v17 = vld [vmem:[#allocation23_spill] sm:$0xff]  ;;  %v2151_v43 = vmul.f32 %v4235_v33, %v4233_v63 }
 0x268   :  { %v6625_v45 = vpop.permute.xlu0 %1823  ;;  %v1592_v36 = vadd.f32 %v1502_v46, %v8781_v17  ;;  %v2292_v39 = vsel %vm2200_vm7, %v2189_v26, -inf  ;;  %v2208_v62 = vrot.slane %v2207_v42, 1 }
 0x269   :  { %1369 = vrot.lane.b32.xlu1 %v8779_v16, %s4778_s0  ;;  %v2214_v60 = vmax.f32 %v2212_v56, %v2213_v28  ;;  %v2291_v5 = vsel %vm2200_vm7, %v2151_v43, -inf  ;;  %v8782_v16 = vld [vmem:[#allocation144_spill] sm:$0xff] }
 0x26a   :  { %1835 = vrot.lane.b32.xlu0 %v8780_v53, %s4779_s7  ;;  %v6644_v46 = vmax.f32 %v2291_v5, %v2292_v39  ;;  %v1448_v39 = vadd.f32 %v6563_v14, %v5181_v44  ;;  %v2209_v17 = vmax.f32 %v2207_v42, %v2208_v62 }
 0x26b   :  { %v1790_v34 = vpop.permute.xlu1 %1789  ;;  %v2215_v0 = vrot.slane %v2214_v60, 2 }
 0x26c   :  { %v6635_v29 = vpop.permute.xlu0 %2513  ;;  %v6637_v9 = vadd.f32 %v1790_v34, %v1592_v36  ;;  %v6671_v44 = vadd.f32 %v6565_v59, %v1448_v39 }
 0x26d   :  { %1405 = vrot.lane.b32.xlu1 %v8782_v16, %s4778_s0  ;;  %v2216_v34 = vmax.f32 %v2214_v60, %v2215_v0  ;;  %v1447_v60 = vadd.f32 %v6538_v47, %v5155_v7 }
 0x26e   :  { %2525 = vrot.lane.b32.xlu0 %v5736_v61, %s4780_s8  ;;  %v4042_v56 = vmul.f32 -1.442695, %v6637_v9 }
 0x26f   :  { %v6647_v28 = vpop.permute.xlu1 %2515  ;;  %v2217_v26 = vrot.slane %v2216_v34, 1  ;;  %v4237_v61 = vpop.eup %4236  ;;  %v6678_v5 = vadd.f32 %v6590_v19, %v1447_v60 }
 0x270   :  { %v6649_v63 = vpop.permute.xlu0 %2551  ;;  %4238 = vpow2.f32 %v4042_v56  ;;  %v2039_v43 = vadd.f32 1.0, %v4237_v61  ;;  %v8786_v56 = vld [vmem:[#allocation148_spill] sm:$0xff]  ;;  %v8788_v61 = vld [vmem:[#allocation150_spill] sm:$0xff] }
 0x271   :  { %1513 = vrot.lane.b32.xlu1 %v8783_v54, %s4778_s0  ;;  %v2218_v36 = vmax.f32 %v2216_v34, %v2217_v26  ;;  %8784 = vst [vmem:[#allocation81_spill] sm:$0xff] %v6678_v5 }
 0x272   :  { %2563 = vrot.lane.b32.xlu0 %v5739_v40, %s4780_s8  ;;  %4240 = vrcp.f32 %v2039_v43 }
 0x273   :  { %v6657_v53 = vpop.permute.xlu1 %3238  ;;  %v6666_v40 = vsel %vm3807_vm8, %v2218_v36, %v2209_v17  ;;  %4242 = vtanh.f32 %v6671_v44 }
 0x274   :  { %v6659_v33 = vpop.permute.xlu0 %2549  ;;  %4244 = vtanh.f32 %v6678_v5 }
 0x275   :  { %1549 = vrot.lane.b32.xlu1 %v5729_v10, %s4778_s0 }
 0x276   :  { %3250 = vrot.lane.b32.xlu0 %v5756_v8, %s4781_s9 }
 0x277   :  { %v6673_v14 = vpop.permute.xlu1 %3274 }
 0x278   :  { %v6675_v42 = vpop.permute.xlu0 %3236 }
 0x279   :  { %1801 = vrot.lane.b32.xlu1 %v5764_v21, %s4779_s7 }
 0x27a   :  { %2561 = vrot.lane.b32.xlu0 %v5750_v55, %s4780_s8  ;;  %v4239_v10 = vpop.eup %4238 }
 0x27b   :  { %v2040_v7 = vadd.f32 1.0, %v4239_v10  ;;  %v6685_v47 = vpop.permute.xlu1 %3272 }
 0x27c   :  { %v6687_v8 = vpop.permute.xlu0 %1359  ;;  %v4241_v16 = vpop.eup %4240 }
 0x27d   :  { %4246 = vrcp.f32 %v2040_v7  ;;  %1799 = vrot.lane.b32.xlu1 %v5767_v49, %s4779_s7  ;;  %v4243_v0 = vpop.eup %4242  ;;  %v8787_v49 = vld [vmem:[#allocation149_spill] sm:$0xff]  ;;  %v8790_v7 = vld [vmem:[#allocation152_spill] sm:$0xff] }
 0x27e   :  { %3248 = vrot.lane.b32.xlu0 %v5759_v22, %s4781_s9  ;;  %v4245_v22 = vpop.eup %4244 }
 0x27f   :  { %v1362_v21 = vpop.permute.xlu1 %1361  ;;  %v2135_v34 = vmul.f32 %v4245_v22, %v4241_v16 }
 0x280   :  { %v6694_v55 = vpop.permute.xlu0 %1395 }
 0x281   :  { %1837 = vrot.lane.b32.xlu1 %v5753_v23, %s4779_s7  ;;  %v2219_v17 = vsel %vm2200_vm7, %v2135_v34, -inf }
 0x282   :  { %3286 = vrot.lane.b32.xlu0 %v5774_v41, %s4781_s9  ;;  %v8789_v41 = vld [vmem:[#allocation151_spill] sm:$0xff] }
 0x283   :  { %v6700_v59 = vpop.permute.xlu1 %1397 }
 0x284   :  { %8785 = vst [vmem:[#allocation82_spill] sm:$0xff] %v6700_v59  ;;  %v1650_v19 = vpop.permute.xlu0 %1649 }
 0x285   :  { %2527 = vrot.lane.b32.xlu1 %v8786_v56, %s4780_s8 }
 0x286   :  { %3284 = vrot.lane.b32.xlu0 %v8787_v49, %s4781_s9 }
 0x287   :  { %v4247_v62 = vpop.eup %4246  ;;  %v1506_v54 = vpop.permute.xlu1 %1505 }
 0x288   :  { %v1648_v26 = vpop.permute.xlu0 %1647  ;;  %v2136_v23 = vmul.f32 %v4247_v62, %v4243_v0  ;;  %v8791_v0 = vld [vmem:[#allocation33_spill] sm:$0xff] }
 0x289   :  { %1373 = vrot.lane.b32.xlu1 %v8788_v61, %s4778_s0  ;;  %v1594_v56 = vadd.f32 %v1506_v54, %v8791_v0  ;;  %v8793_v61 = vld [vmem:[#allocation154_spill] sm:$0xff] }
 0x28a   :  { %1371 = vrot.lane.b32.xlu0 %v8789_v41, %s4778_s0  ;;  %v2173_v39 = vsel %vm2167_vm2, %v2136_v23, -1e+30  ;;  %v8792_v23 = vld [vmem:[#allocation153_spill] sm:$0xff]  ;;  %v8794_v41 = vld [vmem:[#allocation28_spill] sm:$0xff] }
 0x28b   :  { %v2220_v36 = vsel %vm2200_vm7, %v2173_v39, -inf  ;;  %v6714_v60 = vpop.permute.xlu1 %1541 }
 0x28c   :  { %v1504_v43 = vpop.permute.xlu0 %1503  ;;  %v2221_v10 = vmax.f32 %v2219_v17, %v2220_v36 }
 0x28d   :  { %1409 = vrot.lane.b32.xlu1 %v5798_v30, %s4778_s0  ;;  %v1593_v30 = vadd.f32 %v1504_v43, %v8794_v41  ;;  %v8797_v41 = vld [vmem:[#allocation157_spill] sm:$0xff] }
 0x28e   :  { %1407 = vrot.lane.b32.xlu0 %v8790_v7, %s4778_s0  ;;  %v2222_v16 = vrot.slane %v2221_v10, 4 }
 0x28f   :  { %v1794_v49 = vpop.permute.xlu1 %1793 }
 0x290   :  { %v6721_v22 = vpop.permute.xlu0 %1539  ;;  %v6723_v62 = vadd.f32 %v1794_v49, %v1594_v56  ;;  %v2223_v34 = vmax.f32 %v2221_v10, %v2222_v16  ;;  %v8795_v10 = vld [vmem:[#allocation155_spill] sm:$0xff]  ;;  %v8796_v16 = vld [vmem:[#allocation156_spill] sm:$0xff] }
 0x291   :  { %1517 = vrot.lane.b32.xlu1 %v8792_v23, %s4778_s0 }
 0x292   :  { %1515 = vrot.lane.b32.xlu0 %v8793_v61, %s4778_s0  ;;  %v4044_v39 = vmul.f32 -1.442695, %v6723_v62  ;;  %v2224_v17 = vrot.slane %v2223_v34, 2 }
 0x293   :  { %v1792_v36 = vpop.permute.xlu1 %1791 }
 0x294   :  { %v6731_v7 = vpop.permute.xlu0 %2553  ;;  %4248 = vpow2.f32 %v4044_v39  ;;  %v6733_v54 = vadd.f32 %v1792_v36, %v1593_v30  ;;  %v2225_v0 = vmax.f32 %v2223_v34, %v2224_v17  ;;  %v8798_v34 = vld [vmem:[#allocation159_spill] sm:$0xff]  ;;  %v1450_v30 = vadd.f32 %v1362_v21, %v8602_v6 }
 0x295   :  { %1553 = vrot.lane.b32.xlu1 %v8795_v10, %s4778_s0  ;;  %v1449_v6 = vadd.f32 %v6687_v8, %v8598_v20  ;;  %v2601_v8 = vadd.f32 %v6403_v37, %v6366_v57  ;;  %v2619_v57 = vadd.f32 %v6431_v31, %v6381_v18  ;;  %v3325_v37 = vadd.f32 %v6442_v12, %v6392_v4  ;;  %v8810_v12 = vld [vmem:[#allocation166_spill] sm:$0xff] }
 0x296   :  { %1551 = vrot.lane.b32.xlu0 %v8796_v16, %s4778_s0  ;;  %v4043_v56 = vmul.f32 -1.442695, %v6733_v54  ;;  %v2226_v49 = vrot.slane %v2225_v0, 1  ;;  %v6757_v10 = vadd.f32 %v1650_v19, %v1450_v30  ;;  %v8801_v16 = vld [vmem:[#allocation161_spill] sm:$0xff]  ;;  %v8803_v19 = vld [vmem:[#allocation162_spill] sm:$0xff] }
 0x297   :  { %v6740_v43 = vpop.permute.xlu1 %1829  ;;  %v3324_v18 = vadd.f32 %v6453_v52, %v2601_v8  ;;  %v3342_v5 = vadd.f32 %v6475_v50, %v2619_v57  ;;  %v8813_v50 = vld [vmem:[#allocation171_spill] sm:$0xff] }
 0x298   :  { %v6742_v23 = vpop.permute.xlu0 %3240  ;;  %4250 = vpow2.f32 %v4043_v56  ;;  %v2227_v61 = vmax.f32 %v2225_v0, %v2226_v49  ;;  %8799 = vst [vmem:[#allocation84_spill] sm:$0xff] %v6757_v10  ;;  %v8800_v0 = vld [vmem:[#allocation160_spill] sm:$0xff] }
 0x299   :  { %1841 = vrot.lane.b32.xlu1 %v8797_v41, %s4779_s7  ;;  %4252 = vtanh.f32 %v6757_v10  ;;  %v8804_v41 = vld [vmem:[#allocation158_spill] sm:$0xff]  ;;  %v4102_v10 = vmul.f32 -1.442695, %v3325_v37 }
 0x29a   :  { %1805 = vrot.lane.b32.xlu0 %v8798_v34, %s4779_s7  ;;  %v6751_v39 = vsel %vm3809_vm9, %v2227_v61, %v6666_v40  ;;  %v6770_v61 = vadd.f32 %v1648_v26, %v1449_v6  ;;  %v8805_v26 = vld [vmem:[#allocation163_spill] sm:$0xff] }
 0x29b   :  { %v6753_v17 = vpop.permute.xlu1 %2519 }
 0x29c   :  { %v6755_v36 = vpop.permute.xlu0 %3278  ;;  %8802 = vst [vmem:[#allocation83_spill] sm:$0xff] %v6770_v61 }
 0x29d   :  { %2531 = vrot.lane.b32.xlu1 %v8800_v0, %s4780_s8 }
 0x29e   :  { %1803 = vrot.lane.b32.xlu0 %v8801_v16, %s4779_s7  ;;  %v4249_v56 = vpop.eup %4248  ;;  %v8806_v16 = vld [vmem:[#allocation164_spill] sm:$0xff] }
 0x29f   :  { %v2042_v21 = vadd.f32 1.0, %v4249_v56  ;;  %v6765_v49 = vpop.permute.xlu1 %1827  ;;  %v2620_v56 = vadd.f32 %v6417_v15, %v6368_v11 }
 0x2a0   :  { %v6767_v40 = vpop.permute.xlu0 %3276 }
 0x2a1   :  { %4254 = vrcp.f32 %v2042_v21  ;;  %2529 = vrot.lane.b32.xlu1 %v8803_v19, %s4780_s8  ;;  %v4069_v19 = vmul.f32 -1.442695, %v2601_v8  ;;  %v4088_v11 = vmul.f32 -1.442695, %v2620_v56  ;;  %v3343_v4 = vadd.f32 %v6465_v58, %v2620_v56 }
 0x2a2   :  { %1839 = vrot.lane.b32.xlu0 %v8804_v41, %s4779_s7  ;;  %v4251_v34 = vpop.eup %4250  ;;  %4256 = vtanh.f32 %v6770_v61  ;;  %v8808_v41 = vld [vmem:[#allocation165_spill] sm:$0xff]  ;;  %v4087_v61 = vmul.f32 -1.442695, %v2619_v57  ;;  %v4101_v58 = vmul.f32 -1.442695, %v3324_v18  ;;  %v2603_v8 = vadd.f32 %v6489_v27, %v6502_v24 }
 0x2a3   :  { %v2041_v30 = vadd.f32 1.0, %v4251_v34  ;;  %v6776_v0 = vpop.permute.xlu1 %2517  ;;  %v8809_v34 = vld [vmem:[#allocation167_spill] sm:$0xff]  ;;  %v4120_v37 = vmul.f32 -1.442695, %v3343_v4  ;;  %v4119_v57 = vmul.f32 -1.442695, %v3342_v5 }
 0x2a4   :  { %v6778_v20 = vpop.permute.xlu0 %1363  ;;  %v4071_v27 = vmul.f32 -1.442695, %v2603_v8 }
 0x2a5   :  { %4258 = vrcp.f32 %v2041_v30  ;;  %2567 = vrot.lane.b32.xlu1 %v8805_v26, %s4780_s8  ;;  %v4253_v30 = vpop.eup %4252 }
 0x2a6   :  { %2565 = vrot.lane.b32.xlu0 %v8806_v16, %s4780_s8  ;;  %4260 = vpow2.f32 %v4069_v19 }
 0x2a7   :  { %v6789_v6 = vpop.permute.xlu1 %2555  ;;  %4262 = vpow2.f32 %v4088_v11 }
 0x2a8   :  { %v6791_v21 = vpop.permute.xlu0 %1399  ;;  %4264 = vpow2.f32 %v4087_v61 }
 0x2a9   :  { %8807 = vst [vmem:[#allocation85_spill] sm:$0xff] %v6791_v21  ;;  %3254 = vrot.lane.b32.xlu1 %v8808_v41, %s4781_s9  ;;  %v8811_v41 = vld [vmem:[#allocation168_spill] sm:$0xff]  ;;  %4266 = vpow2.f32 %v4102_v10  ;;  %v2622_v10 = vadd.f32 %v6495_v1, %v6534_v51 }
 0x2aa   :  { %3288 = vrot.lane.b32.xlu0 %v8809_v34, %s4781_s9  ;;  %4268 = vpow2.f32 %v4101_v58 }
 0x2ab   :  { %v4255_v26 = vpop.eup %4254  ;;  %v6801_v15 = vpop.permute.xlu1 %3242  ;;  %4270 = vpow2.f32 %v4120_v37  ;;  %v3345_v51 = vadd.f32 %v6517_v32, %v2622_v10  ;;  %v8817_v37 = vld [vmem:[#allocation172_spill] sm:$0xff]  ;;  %v2621_v32 = vadd.f32 %v6553_v2, %v6543_v35 }
 0x2ac   :  { %v6803_v16 = vpop.permute.xlu0 %1507  ;;  %v2138_v31 = vmul.f32 %v4255_v26, %v4253_v30  ;;  %v4257_v34 = vpop.eup %4256  ;;  %v8812_v30 = vld [vmem:[#allocation169_spill] sm:$0xff]  ;;  %v3326_v26 = vadd.f32 %v6511_v13, %v2603_v8  ;;  %4272 = vpow2.f32 %v4119_v57 }
 0x2ad   :  { %3252 = vrot.lane.b32.xlu1 %v8810_v12, %s4781_s9  ;;  %v8815_v13 = vld [vmem:[#allocation173_spill] sm:$0xff]  ;;  %4274 = vpow2.f32 %v4071_v27 }
 0x2ae   :  { %1375 = vrot.lane.b32.xlu0 %v8811_v41, %s4778_s0  ;;  %v2175_v19 = vsel %vm2167_vm2, %v2138_v31, -1e+30  ;;  %v4103_v12 = vmul.f32 -1.442695, %v3326_v26  ;;  %v8816_v41 = vld [vmem:[#allocation8_spill] sm:$0xff] }
 0x2af   :  { %v4259_v21 = vpop.eup %4258  ;;  %v6814_v59 = vpop.permute.xlu1 %1365  ;;  %v2229_v11 = vsel %vm2200_vm7, %v2175_v19, -inf }
 0x2b0   :  { %v6816_v52 = vpop.permute.xlu0 %1543  ;;  %v2137_v56 = vmul.f32 %v4259_v21, %v4257_v34  ;;  %v8814_v21 = vld [vmem:[#allocation170_spill] sm:$0xff]  ;;  %v4261_v4 = vpop.eup %4260  ;;  %v3327_v34 = vadd.f32 %v8816_v41, %v6526_v3  ;;  %4276 = vpow2.f32 %v4103_v12 }
 0x2b1   :  { %3290 = vrot.lane.b32.xlu1 %v8812_v30, %s4781_s9  ;;  %v2761_v1 = vadd.f32 1.0, %v4261_v4  ;;  %v8818_v30 = vld [vmem:[#allocation175_spill] sm:$0xff]  ;;  %v8820_v4 = vld [vmem:[#allocation178_spill] sm:$0xff] }
 0x2b2   :  { %1519 = vrot.lane.b32.xlu0 %v8813_v50, %s4778_s0  ;;  %v2228_v61 = vsel %vm2200_vm7, %v2137_v56, -inf  ;;  %v4263_v56 = vpop.eup %4262  ;;  %v4104_v3 = vmul.f32 -1.442695, %v3327_v34 }
 0x2b3   :  { %v2230_v18 = vmax.f32 %v2228_v61, %v2229_v11  ;;  %v6827_v31 = vpop.permute.xlu1 %1401  ;;  %v4265_v57 = vpop.eup %4264  ;;  %v4090_v11 = vmul.f32 -1.442695, %v2622_v10  ;;  %v2780_v27 = vadd.f32 1.0, %v4263_v56  ;;  %4278 = vrcp.f32 %v2761_v1 }
 0x2b4   :  { %v6829_v24 = vpop.permute.xlu0 %1797  ;;  %v4267_v26 = vpop.eup %4266  ;;  %v2779_v10 = vadd.f32 1.0, %v4265_v57  ;;  %4280 = vpow2.f32 %v4104_v3 }
 0x2b5   :  { %1377 = vrot.lane.b32.xlu1 %v8814_v21, %s4778_s0  ;;  %v2231_v5 = vrot.slane %v2230_v18, 4  ;;  %v4269_v41 = vpop.eup %4268  ;;  %4282 = vpow2.f32 %v4090_v11  ;;  %v8824_v11 = vld [vmem:[#allocation177_spill] sm:$0xff] }
 0x2b6   :  { %2535 = vrot.lane.b32.xlu0 %v8815_v13, %s4780_s8  ;;  %v4122_v13 = vmul.f32 -1.442695, %v3345_v51  ;;  %v4271_v34 = vpop.eup %4270  ;;  %4284 = vrcp.f32 %v2780_v27  ;;  %v3484_v3 = vadd.f32 1.0, %v4269_v41 }
 0x2b7   :  { %v6839_v19 = vpop.permute.xlu1 %1653  ;;  %v2232_v8 = vmax.f32 %v2230_v18, %v2231_v5  ;;  %v8819_v5 = vld [vmem:[#allocation176_spill] sm:$0xff]  ;;  %v4273_v51 = vpop.eup %4272  ;;  %v3503_v27 = vadd.f32 1.0, %v4271_v34  ;;  %v8830_v34 = vld [vmem:[#allocation182_spill] sm:$0xff] }
 0x2b8   :  { %v6841_v58 = vpop.permute.xlu0 %1795  ;;  %4286 = vpow2.f32 %v4122_v13 }
 0x2b9   :  { %1521 = vrot.lane.b32.xlu1 %v8817_v37, %s4778_s0  ;;  %v2233_v50 = vrot.slane %v2232_v8, 2  ;;  %v3485_v37 = vadd.f32 1.0, %v4267_v26  ;;  %4288 = vrcp.f32 %v2779_v10  ;;  %v8829_v10 = vld [vmem:[#allocation174_spill] sm:$0xff] }
 0x2ba   :  { %3258 = vrot.lane.b32.xlu0 %v8818_v30, %s4781_s9  ;;  %v4089_v30 = vmul.f32 -1.442695, %v2621_v32 }
 0x2bb   :  { %v6848_v61 = vpop.permute.xlu1 %1509  ;;  %v2234_v21 = vmax.f32 %v2232_v8, %v2233_v50  ;;  %v8821_v8 = vld [vmem:[#allocation29_spill] sm:$0xff]  ;;  %v8822_v50 = vld [vmem:[#allocation66_spill] sm:$0xff]  ;;  %4290 = vrcp.f32 %v3485_v37 }
 0x2bc   :  { %v6850_v18 = vpop.permute.xlu0 %1833  ;;  %v1609_v56 = vadd.f32 %v6592_v48, %v8821_v8  ;;  %v8825_v48 = vld [vmem:[#allocation179_spill] sm:$0xff]  ;;  %4292 = vpow2.f32 %v4089_v30  ;;  %v8827_v8 = vld [vmem:[#allocation77_spill] sm:$0xff] }
 0x2bd   :  { %1809 = vrot.lane.b32.xlu1 %v8819_v5, %s4779_s7  ;;  %v2235_v12 = vrot.slane %v2234_v21, 1  ;;  %v3344_v5 = vadd.f32 %v8822_v50, %v2621_v32  ;;  %v4275_v32 = vpop.eup %4274  ;;  %4294 = vrcp.f32 %v3484_v3 }
 0x2be   :  { %1379 = vrot.lane.b32.xlu0 %v8820_v4, %s4778_s0  ;;  %v8823_v4 = vld [vmem:[#allocation34_spill] sm:$0xff]  ;;  %v1897_v26 = vadd.f32 %v6625_v45, %v1609_v56  ;;  %v4277_v45 = vpop.eup %4276  ;;  %4296 = vrcp.f32 %v3503_v27  ;;  %v2763_v37 = vadd.f32 1.0, %v4275_v32  ;;  %v8831_v32 = vld [vmem:[#allocation180_spill] sm:$0xff] }
 0x2bf   :  { %v6860_v35 = vpop.permute.xlu1 %1545  ;;  %v2236_v1 = vmax.f32 %v2234_v21, %v2235_v12  ;;  %v1610_v57 = vadd.f32 %v6623_v25, %v8823_v4  ;;  %v3502_v12 = vadd.f32 1.0, %v4273_v51  ;;  %v4121_v41 = vmul.f32 -1.442695, %v3344_v5  ;;  %v8828_v4 = vld [vmem:[#allocation14_spill] sm:$0xff]  ;;  %v6889_v51 = vpop.eup %4278 }
 0x2c0   :  { %v6862_v2 = vpop.permute.xlu0 %2523  ;;  %v4059_v50 = vmul.f32 -1.442695, %v1897_v26  ;;  %v3486_v30 = vadd.f32 1.0, %v4277_v45 }
 0x2c1   :  { %1807 = vrot.lane.b32.xlu1 %v8824_v11, %s4779_s7  ;;  %v6874_v21 = vsel %vm3811_vm10, %v2236_v1, %v6751_v39  ;;  %v1898_v56 = vadd.f32 %v8827_v8, %v1610_v57  ;;  %v2605_v39 = vadd.f32 %v6635_v29, %v8828_v4  ;;  %v2606_v1 = vadd.f32 %v6647_v28, %v6637_v9  ;;  %v4281_v29 = vpop.eup %4280  ;;  %v8832_v9 = vld [vmem:[#allocation183_spill] sm:$0xff] }
 0x2c2   :  { %1523 = vrot.lane.b32.xlu0 %v8825_v48, %s4778_s0  ;;  %8826 = vst [vmem:[#allocation86_spill] sm:$0xff] %v6874_v21  ;;  %4298 = vrcp.f32 %v3502_v12  ;;  %v4283_v11 = vpop.eup %4282  ;;  %v3487_v8 = vadd.f32 1.0, %v4281_v29  ;;  %v8844_v21 = vld [vmem:[#allocation58_spill] sm:$0xff] }
 0x2c3   :  { %v6876_v25 = vpop.permute.xlu1 %2559  ;;  %4300 = vpow2.f32 %v4121_v41  ;;  %v4060_v3 = vmul.f32 -1.442695, %v1898_v56  ;;  %v4073_v48 = vmul.f32 -1.442695, %v2605_v39  ;;  %v2624_v27 = vadd.f32 %v6649_v63, %v1898_v56  ;;  %v6900_v28 = vpop.eup %4284 }
 0x2c4   :  { %v6878_v13 = vpop.permute.xlu0 %1831  ;;  %4302 = vpow2.f32 %v4059_v50  ;;  %v4074_v12 = vmul.f32 -1.442695, %v2606_v1  ;;  %v4287_v45 = vpop.eup %4286  ;;  %v3329_v41 = vadd.f32 %v6657_v53, %v2606_v1  ;;  %v2782_v56 = vadd.f32 1.0, %v4283_v11 }
 0x2c5   :  { %2533 = vrot.lane.b32.xlu1 %v8829_v10, %s4780_s8  ;;  %4304 = vrcp.f32 %v2763_v37  ;;  %v6907_v63 = vpop.eup %4288  ;;  %v2623_v10 = vadd.f32 %v6659_v33, %v1897_v26  ;;  %v4092_v37 = vmul.f32 -1.442695, %v2624_v27  ;;  %v3505_v1 = vadd.f32 1.0, %v4287_v45 }
 0x2c6   :  { %1813 = vrot.lane.b32.xlu0 %v8830_v34, %s4779_s7  ;;  %4306 = vrcp.f32 %v3486_v30  ;;  %8833 = vst [vmem:[#allocation87_spill] sm:$0xff] %v6907_v63  ;;  %v6910_v34 = vpop.eup %4290  ;;  %v8836_v30 = vld [vmem:[#allocation185_spill] sm:$0xff]  ;;  %v3347_v29 = vadd.f32 %v6673_v14, %v2624_v27  ;;  %v3328_v33 = vadd.f32 %v6675_v42, %v2605_v39  ;;  %v8840_v14 = vld [vmem:[#allocation187_spill] sm:$0xff]  ;;  %v8841_v27 = vld [vmem:[#allocation186_spill] sm:$0xff] }
 0x2c7   :  { %v6891_v5 = vpop.permute.xlu1 %3246  ;;  %4308 = vpow2.f32 %v4060_v3  ;;  %8834 = vst [vmem:[#allocation88_spill] sm:$0xff] %v6910_v34  ;;  %v4293_v53 = vpop.eup %4292  ;;  %v4106_v3 = vmul.f32 -1.442695, %v3329_v41  ;;  %v8842_v42 = vld [vmem:[#allocation32_spill] sm:$0xff]  ;;  %v8843_v39 = vld [vmem:[#allocation18_spill] sm:$0xff] }
 0x2c8   :  { %v6893_v57 = vpop.permute.xlu0 %2521  ;;  %4310 = vpow2.f32 %v4073_v48  ;;  %v2781_v45 = vadd.f32 1.0, %v4293_v53  ;;  %v4124_v41 = vmul.f32 -1.442695, %v3347_v29 }
 0x2c9   :  { %3256 = vrot.lane.b32.xlu1 %v8831_v32, %s4781_s9  ;;  %v8835_v32 = vld [vmem:[#allocation181_spill] sm:$0xff]  ;;  %4312 = vpow2.f32 %v4074_v12 }
 0x2ca   :  { %1811 = vrot.lane.b32.xlu0 %v8832_v9, %s4779_s7  ;;  %v6917_v9 = vpop.eup %4294  ;;  %4314 = vrcp.f32 %v3487_v8  ;;  %v1466_v8 = vadd.f32 %v8843_v39, %v8842_v42  ;;  %v8847_v42 = vld [vmem:[#allocation49_spill] sm:$0xff] }
 0x2cb   :  { %v6903_v4 = vpop.permute.xlu1 %2557  ;;  %8837 = vst [vmem:[#allocation89_spill] sm:$0xff] %v6917_v9  ;;  %v6924_v48 = vpop.eup %4296  ;;  %4316 = vrcp.f32 %v2782_v56  ;;  %v1612_v56 = vadd.f32 %v6714_v60, %v8844_v21  ;;  %v1611_v29 = vadd.f32 %v6721_v22, %v8847_v42 }
 0x2cc   :  { %v6905_v50 = vpop.permute.xlu0 %1367  ;;  %8838 = vst [vmem:[#allocation90_spill] sm:$0xff] %v6924_v48  ;;  %4318 = vpow2.f32 %v4092_v37  ;;  %v3346_v37 = vadd.f32 %v6685_v47, %v2623_v10 }
 0x2cd   :  { %1381 = vrot.lane.b32.xlu1 %v8835_v32, %s4778_s0  ;;  %v4091_v32 = vmul.f32 -1.442695, %v2623_v10  ;;  %4320 = vrcp.f32 %v3505_v1  ;;  %v6949_v60 = vadd.f32 %v6740_v43, %v1612_v56  ;;  %v8849_v10 = vld [vmem:[#allocation188_spill] sm:$0xff] }
 0x2ce   :  { %2539 = vrot.lane.b32.xlu0 %v8836_v30, %s4780_s8  ;;  %v6926_v30 = vpop.eup %4298  ;;  %4322 = vpow2.f32 %v4106_v3  ;;  %v8850_v3 = vld [vmem:[#allocation189_spill] sm:$0xff]  ;;  %v4123_v22 = vmul.f32 -1.442695, %v3346_v37 }
 0x2cf   :  { %v6920_v26 = vpop.permute.xlu1 %3244  ;;  %8839 = vst [vmem:[#allocation95_spill] sm:$0xff] %v6926_v30  ;;  %v4301_v12 = vpop.eup %4300  ;;  %v4105_v30 = vmul.f32 -1.442695, %v3328_v33  ;;  %4324 = vpow2.f32 %v4091_v32  ;;  %v1899_v32 = vadd.f32 %v6765_v49, %v1611_v29 }
 0x2d0   :  { %v6922_v11 = vpop.permute.xlu0 %1403  ;;  %v4303_v48 = vpop.eup %4302  ;;  %4326 = vrcp.f32 %v2781_v45  ;;  %v3504_v47 = vadd.f32 1.0, %v4301_v12  ;;  %v4062_v12 = vmul.f32 -1.442695, %v6949_v60 }
 0x2d1   :  { %1669 = vrot.lane.b32.xlu1 %v8840_v14, %s4779_s7  ;;  %v6941_v9 = vpop.eup %4304  ;;  %v2057_v39 = vadd.f32 1.0, %v4303_v48  ;;  %4328 = vpow2.f32 %v4124_v41  ;;  %v8853_v41 = vld [vmem:[#allocation190_spill] sm:$0xff]  ;;  %v2625_v29 = vadd.f32 %v6731_v7, %v1899_v32  ;;  %v4061_v7 = vmul.f32 -1.442695, %v1899_v32 }
 0x2d2   :  { %2537 = vrot.lane.b32.xlu0 %v8841_v27, %s4780_s8  ;;  %v8845_v27 = vld [vmem:[#allocation76_spill] sm:$0xff]  ;;  %v6951_v21 = vpop.eup %4306  ;;  %4330 = vpow2.f32 %v4105_v30 }
 0x2d3   :  { %v6937_v53 = vpop.permute.xlu1 %3282  ;;  %v6944_v1 = vadd.f32 %v8845_v27, %v1466_v8  ;;  %8848 = vst [vmem:[#allocation100_spill] sm:$0xff] %v6951_v21  ;;  %v4309_v33 = vpop.eup %4308  ;;  %v6966_v27 = vadd.f32 %v6753_v17, %v6723_v62  ;;  %v8852_v30 = vld [vmem:[#allocation184_spill] sm:$0xff]  ;;  %v8857_v21 = vld [vmem:[#allocation9_spill] sm:$0xff] }
 0x2d4   :  { %v6939_v14 = vpop.permute.xlu0 %1511  ;;  %v4311_v8 = vpop.eup %4310  ;;  %v2058_v49 = vadd.f32 1.0, %v4309_v33  ;;  %v8858_v34 = vrot.slane %v8857_v21, 3 }
 0x2d5   :  { %8846 = vst [vmem:[#allocation99_spill] sm:$0xff] %v6944_v1  ;;  %1667 = vrot.lane.b32.xlu1 %v8849_v10, %s4779_s7  ;;  %v4313_v45 = vpop.eup %4312  ;;  %4332 = vtanh.f32 %v6944_v1  ;;  %v2765_v42 = vadd.f32 1.0, %v4311_v8  ;;  %v4076_v33 = vmul.f32 -1.442695, %v6966_v27 }
 0x2d6   :  { %3262 = vrot.lane.b32.xlu0 %v8850_v3, %s4781_s9  ;;  %v6968_v48 = vpop.eup %4314  ;;  %4334 = vrcp.f32 %v3504_v47  ;;  %v2766_v3 = vadd.f32 1.0, %v4313_v45 }
 0x2d7   :  { %v6958_v43 = vpop.permute.xlu1 %3280  ;;  %8851 = vst [vmem:[#allocation104_spill] sm:$0xff] %v6968_v48  ;;  %v6974_v37 = vpop.eup %4316  ;;  %4336 = vrcp.f32 %v2057_v39 }
 0x2d8   :  { %v6960_v56 = vpop.permute.xlu0 %1547  ;;  %v4319_v10 = vpop.eup %4318  ;;  %4338 = vpow2.f32 %v4123_v22  ;;  %v8859_v22 = vld [vmem:[#allocation11_spill] sm:$0xff] }
 0x2d9   :  { %1525 = vrot.lane.b32.xlu1 %v8852_v30, %s4778_s0  ;;  %v6981_v47 = vpop.eup %4320  ;;  %4340 = vpow2.f32 %v4062_v12  ;;  %v8855_v30 = vld [vmem:[#allocation15_spill] sm:$0xff]  ;;  %v3348_v12 = vadd.f32 %v6767_v40, %v2625_v29  ;;  %v8862_v40 = vld [vmem:[#allocation16_spill] sm:$0xff] }
 0x2da   :  { %3260 = vrot.lane.b32.xlu0 %v8853_v41, %s4781_s9  ;;  %8854 = vst [vmem:[#allocation96_spill] sm:$0xff] %v6981_v47  ;;  %v8856_v41 = vrot.slane %v8855_v30, 3  ;;  %v4323_v8 = vpop.eup %4322  ;;  %4342 = vrcp.f32 %v2058_v49  ;;  %v2784_v47 = vadd.f32 1.0, %v4319_v10  ;;  %v2607_v30 = vadd.f32 %v6776_v0, %v6733_v54 }
 0x2db   :  { %v6977_v62 = vpop.permute.xlu1 %1369  ;;  %v4325_v45 = vpop.eup %4324  ;;  %4344 = vrcp.f32 %v2765_v42  ;;  %v8861_v42 = vld [vmem:[#allocation191_spill] sm:$0xff]  ;;  %v4125_v0 = vmul.f32 -1.442695, %v3348_v12  ;;  %v2626_v10 = vadd.f32 %v6789_v6, %v6949_v60  ;;  %v8864_v12 = vld [vmem:[#allocation57_spill] sm:$0xff]  ;;  %v8865_v6 = vld [vmem:[#allocation192_spill] sm:$0xff] }
 0x2dc   :  { %v6979_v17 = vpop.permute.xlu0 %1835  ;;  %v954_v39 = vsel %vm945_vm5, %v8858_v34, %v8856_v41  ;;  %v6995_v48 = vpop.eup %4326  ;;  %4346 = vrcp.f32 %v2766_v3  ;;  %v4093_v34 = vmul.f32 -1.442695, %v2625_v29  ;;  %v3489_v41 = vadd.f32 1.0, %v4323_v8  ;;  %v8866_v60 = vld [vmem:[#allocation194_spill] sm:$0xff] }
 0x2dd   :  { %2365 = vrot.lane.b32.xlu1 %v954_v39, %s4780_s8  ;;  %8860 = vst [vmem:[#allocation105_spill] sm:$0xff] %v6995_v48  ;;  %v4329_v49 = vpop.eup %4328  ;;  %4348 = vpow2.f32 %v4076_v33  ;;  %v3330_v29 = vadd.f32 %v6742_v23, %v2607_v30  ;;  %v1596_v23 = vadd.f32 %v6848_v61, %v8864_v12  ;;  %v8867_v48 = vld [vmem:[#allocation48_spill] sm:$0xff]  ;;  %v3331_v61 = vadd.f32 %v6801_v15, %v6966_v27  ;;  %v8869_v27 = vld [vmem:[#allocation10_spill] sm:$0xff] }
 0x2de   :  { %2361 = vrot.lane.b32.xlu0 %v8859_v22, %s4780_s8  ;;  %v4331_v39 = vpop.eup %4330  ;;  %v2783_v22 = vadd.f32 1.0, %v4325_v45  ;;  %4350 = vpow2.f32 %v4061_v7  ;;  %v3507_v33 = vadd.f32 1.0, %v4329_v49  ;;  %vm3917_vm5 = vcmask 195584  }
 0x2df   :  { %v6997_v21 = vpop.permute.xlu1 %1405  ;;  %v7005_v54 = vpop.eup %4332  ;;  %4352 = vrcp.f32 %v2784_v47  ;;  %v4075_v47 = vmul.f32 -1.442695, %v2607_v30  ;;  %v4107_v49 = vmul.f32 -1.442695, %v3330_v29  ;;  %v4094_v30 = vmul.f32 -1.442695, %v2626_v10 }
 0x2e0   :  { %v6999_v32 = vpop.permute.xlu0 %2525  ;;  %v7010_v3 = vpop.eup %4334  ;;  %4354 = vpow2.f32 %v4093_v34  ;;  %v8868_v29 = vld [vmem:[#allocation80_spill] sm:$0xff]  ;;  %v1884_v15 = vadd.f32 %v6829_v24, %v1596_v23 }
 0x2e1   :  { %2395 = vrot.lane.b32.xlu1 %v8861_v42, %s4780_s8  ;;  %8863 = vst [vmem:[#allocation101_spill] sm:$0xff] %v7010_v3  ;;  %v7016_v45 = vpop.eup %4336  ;;  %4356 = vrcp.f32 %v3489_v41  ;;  %v3488_v42 = vadd.f32 1.0, %v4331_v39  ;;  %v3349_v3 = vadd.f32 %v6755_v36, %v2626_v10  ;;  %v1595_v41 = vadd.f32 %v6803_v16, %v8867_v48 }
 0x2e2   :  { %2371 = vrot.lane.b32.xlu0 %v8862_v40, %s4780_s8  ;;  %v4339_v40 = vpop.eup %4338  ;;  %4358 = vrcp.f32 %v2783_v22  ;;  %v1614_v16 = vadd.f32 %v6860_v35, %v8868_v29 }
 0x2e3   :  { %v7012_v8 = vpop.permute.xlu1 %1513  ;;  %v4341_v34 = vpop.eup %4340  ;;  %4360 = vpow2.f32 %v4125_v0  ;;  %v3506_v0 = vadd.f32 1.0, %v4339_v40  ;;  %v7038_v36 = vadd.f32 %v6841_v58, %v1595_v41  ;;  %v4126_v40 = vmul.f32 -1.442695, %v3349_v3  ;;  %v8872_v3 = vld [vmem:[#allocation193_spill] sm:$0xff] }
 0x2e4   :  { %v7014_v7 = vpop.permute.xlu0 %2563  ;;  %v7027_v39 = vpop.eup %4342  ;;  %4362 = vrcp.f32 %v3507_v33  ;;  %v2060_v10 = vadd.f32 1.0, %v4341_v34  ;;  %v8870_v33 = vld [vmem:[#allocation25_spill] sm:$0xff] }
 0x2e5   :  { %1651 = vrot.lane.b32.xlu1 %v8865_v6, %s4779_s7  ;;  %v7035_v6 = vpop.eup %4344  ;;  %4364 = vrcp.f32 %v3488_v42  ;;  %v4045_v24 = vmul.f32 -1.442695, %v7038_v36 }
 0x2e6   :  { %2399 = vrot.lane.b32.xlu0 %v8866_v60, %s4780_s8  ;;  %v7042_v48 = vpop.eup %4346  ;;  %4366 = vpow2.f32 %v4075_v47  ;;  %v4108_v60 = vmul.f32 -1.442695, %v3331_v61  ;;  %v1902_v47 = vadd.f32 %v6850_v18, %v1614_v16  ;;  %v4046_v16 = vmul.f32 -1.442695, %v1884_v15 }
 0x2e7   :  { %v7031_v22 = vpop.permute.xlu1 %1549  ;;  %v4349_v42 = vpop.eup %4348  ;;  %4368 = vpow2.f32 %v4107_v49  ;;  %v2610_v49 = vadd.f32 %v6862_v2, %v1884_v15 }
 0x2e8   :  { %v7033_v12 = vpop.permute.xlu0 %3250  ;;  %v4351_v58 = vpop.eup %4350  ;;  %4370 = vpow2.f32 %v4094_v30  ;;  %v2768_v29 = vadd.f32 1.0, %v4349_v42  ;;  %v8873_v30 = vld [vmem:[#allocation27_spill] sm:$0xff] }
 0x2e9   :  { %1679 = vrot.lane.b32.xlu1 %v8869_v27, %s4779_s7  ;;  %v7053_v34 = vpop.eup %4352  ;;  %4372 = vrcp.f32 %v3506_v0  ;;  %v2059_v27 = vadd.f32 1.0, %v4351_v58 }
 0x2ea   :  { %1657 = vrot.lane.b32.xlu0 %v8870_v33, %s4779_s7  ;;  %8871 = vst [vmem:[#allocation107_spill] sm:$0xff] %v7053_v34  ;;  %v4355_v23 = vpop.eup %4354  ;;  %4374 = vrcp.f32 %v2060_v10  ;;  %v8876_v33 = vld [vmem:[#allocation71_spill] sm:$0xff] }
 0x2eb   :  { %v7049_v41 = vpop.permute.xlu1 %1801  ;;  %v7062_v61 = vpop.eup %4356  ;;  %4376 = vpow2.f32 %v4126_v40  ;;  %v1613_v18 = vadd.f32 %v6816_v52, %v8876_v33  ;;  %v4078_v40 = vmul.f32 -1.442695, %v2610_v49  ;;  %v8879_v52 = vld [vmem:[#allocation31_spill] sm:$0xff] }
 0x2ec   :  { %v7051_v35 = vpop.permute.xlu0 %2561  ;;  %8874 = vst [vmem:[#allocation106_spill] sm:$0xff] %v7062_v61  ;;  %v7064_v0 = vpop.eup %4358  ;;  %4378 = vpow2.f32 %v4108_v60  ;;  %v8878_v60 = vld [vmem:[#allocation195_spill] sm:$0xff] }
 0x2ed   :  { %2369 = vrot.lane.b32.xlu1 %v8872_v3, %s4780_s8  ;;  %8875 = vst [vmem:[#allocation110_spill] sm:$0xff] %v7064_v0  ;;  %v4361_v42 = vpop.eup %4360  ;;  %v2785_v3 = vadd.f32 1.0, %v4355_v23  ;;  %4380 = vpow2.f32 %v4045_v24  ;;  %v1901_v58 = vadd.f32 %v6878_v13, %v1613_v18  ;;  %v4064_v23 = vmul.f32 -1.442695, %v1902_v47  ;;  %v8884_v0 = vld [vmem:[#allocation52_spill] sm:$0xff] }
 0x2ee   :  { %1685 = vrot.lane.b32.xlu0 %v8873_v30, %s4779_s7  ;;  %v7073_v30 = vadd.f32 %v6876_v25, %v1902_v47  ;;  %v7075_v61 = vpop.eup %4362  ;;  %4382 = vrcp.f32 %v2768_v29  ;;  %v3508_v33 = vadd.f32 1.0, %v4361_v42  ;;  %v3333_v42 = vadd.f32 %v6891_v5, %v2610_v49  ;;  %v8886_v5 = vld [vmem:[#allocation22_spill] sm:$0xff]  ;;  %v8887_v49 = vld [vmem:[#allocation12_spill] sm:$0xff] }
 0x2ef   :  { %v7068_v10 = vpop.permute.xlu1 %1799  ;;  %8877 = vst [vmem:[#allocation13_spill] sm:$0xff] %v7075_v61  ;;  %v7082_v15 = vpop.eup %4364  ;;  %4384 = vrcp.f32 %v2059_v27  ;;  %v8882_v27 = vld [vmem:[#allocation35_spill] sm:$0xff] }
 0x2f0   :  { %v7070_v2 = vpop.permute.xlu0 %3248  ;;  %8880 = vst [vmem:[#allocation108_spill] sm:$0xff] %v7082_v15  ;;  %v4367_v24 = vpop.eup %4366  ;;  %4386 = vpow2.f32 %v4046_v16  ;;  %v4096_v13 = vmul.f32 -1.442695, %v7073_v30 }
 0x2f1   :  { %2393 = vrot.lane.b32.xlu1 %v8878_v60, %s4780_s8  ;;  %v4369_v29 = vpop.eup %4368  ;;  %4388 = vrcp.f32 %v2785_v3  ;;  %v4063_v60 = vmul.f32 -1.442695, %v1901_v58  ;;  %v2767_v16 = vadd.f32 1.0, %v4367_v24 }
 0x2f2   :  { %2375 = vrot.lane.b32.xlu0 %v8879_v52, %s4780_s8  ;;  %v4371_v18 = vpop.eup %4370  ;;  %4390 = vpow2.f32 %v4078_v40  ;;  %v8881_v52 = vld [vmem:[#allocation19_spill] sm:$0xff]  ;;  %v3490_v3 = vadd.f32 1.0, %v4369_v29  ;;  %v1452_v40 = vadd.f32 %v6814_v59, %v8884_v0  ;;  %v4110_v59 = vmul.f32 -1.442695, %v3333_v42 }
 0x2f3   :  { %v7084_v25 = vpop.permute.xlu1 %1837  ;;  %v7093_v47 = vpop.eup %4372  ;;  %4392 = vpow2.f32 %v4064_v23  ;;  %v2786_v63 = vadd.f32 1.0, %v4371_v18  ;;  %v2609_v0 = vadd.f32 %v6893_v57, %v7038_v36  ;;  %v2627_v42 = vadd.f32 %v6903_v4, %v1901_v58  ;;  %v8889_v57 = vld [vmem:[#allocation30_spill] sm:$0xff]  ;;  %v8890_v36 = vld [vmem:[#allocation196_spill] sm:$0xff] }
 0x2f4   :  { %v7086_v61 = vpop.permute.xlu0 %3286  ;;  %8883 = vst [vmem:[#allocation112_spill] sm:$0xff] %v7093_v47  ;;  %v7096_v15 = vpop.eup %4374  ;;  %4394 = vrcp.f32 %v3508_v33  ;;  %v7105_v24 = vadd.f32 %v6839_v19, %v1452_v40 }
 0x2f5   :  { %2403 = vrot.lane.b32.xlu1 %v8881_v52, %s4780_s8  ;;  %v4377_v52 = vpop.eup %4376  ;;  %4396 = vpow2.f32 %v4096_v13  ;;  %v3332_v4 = vadd.f32 %v6920_v26, %v2609_v0  ;;  %v3351_v26 = vadd.f32 %v6937_v53, %v7073_v30  ;;  %v8901_v30 = vld [vmem:[#allocation198_spill] sm:$0xff] }
 0x2f6   :  { %2397 = vrot.lane.b32.xlu0 %v8882_v27, %s4780_s8  ;;  %v4379_v27 = vpop.eup %4378  ;;  %8885 = vst [vmem:[#allocation109_spill] sm:$0xff] %v7105_v24  ;;  %4398 = vpow2.f32 %v4063_v60  ;;  %v3509_v29 = vadd.f32 1.0, %v4377_v52  ;;  %v4077_v52 = vmul.f32 -1.442695, %v2609_v0  ;;  %v8896_v0 = vld [vmem:[#allocation94_spill] sm:$0xff] }
 0x2f7   :  { %v7100_v34 = vpop.permute.xlu1 %2527  ;;  %v4381_v23 = vpop.eup %4380  ;;  %4400 = vrcp.f32 %v2767_v16  ;;  %v3491_v60 = vadd.f32 1.0, %v4379_v27 }
 0x2f8   :  { %v7102_v1 = vpop.permute.xlu0 %3284  ;;  %v7113_v33 = vpop.eup %4382  ;;  %4402 = vrcp.f32 %v3490_v3  ;;  %v2043_v16 = vadd.f32 1.0, %v4381_v23 }
 0x2f9   :  { %3090 = vrot.lane.b32.xlu1 %v8886_v5, %s4781_s9  ;;  %v7119_v18 = vpop.eup %4384  ;;  %4404 = vrcp.f32 %v2786_v63 }
 0x2fa   :  { %3086 = vrot.lane.b32.xlu0 %v8887_v49, %s4781_s9  ;;  %8888 = vst [vmem:[#allocation113_spill] sm:$0xff] %v7119_v18  ;;  %v4387_v40 = vpop.eup %4386  ;;  %4406 = vtanh.f32 %v7105_v24 }
 0x2fb   :  { %v7115_v13 = vpop.permute.xlu1 %1373  ;;  %v7127_v3 = vpop.eup %4388  ;;  %4408 = vpow2.f32 %v4110_v59  ;;  %v2044_v23 = vadd.f32 1.0, %v4387_v40  ;;  %v8894_v59 = vld [vmem:[#allocation197_spill] sm:$0xff] }
 0x2fc   :  { %v7117_v19 = vpop.permute.xlu0 %1371  ;;  %8891 = vst [vmem:[#allocation111_spill] sm:$0xff] %v7127_v3  ;;  %v4391_v5 = vpop.eup %4390  ;;  %4410 = vrcp.f32 %v3509_v29  ;;  %v8895_v29 = vld [vmem:[#allocation36_spill] sm:$0xff] }
 0x2fd   :  { %1661 = vrot.lane.b32.xlu1 %v8889_v57, %s4779_s7  ;;  %v4393_v49 = vpop.eup %4392  ;;  %4412 = vrcp.f32 %v3491_v60  ;;  %v4095_v57 = vmul.f32 -1.442695, %v2627_v42  ;;  %v2770_v18 = vadd.f32 1.0, %v4391_v5  ;;  %v8898_v5 = vld [vmem:[#allocation79_spill] sm:$0xff] }
 0x2fe   :  { %1655 = vrot.lane.b32.xlu0 %v8890_v36, %s4779_s7  ;;  %v7134_v58 = vpop.eup %4394  ;;  %4414 = vrcp.f32 %v2043_v16  ;;  %v8893_v36 = vld [vmem:[#allocation70_spill] sm:$0xff]  ;;  %v2062_v40 = vadd.f32 1.0, %v4393_v49  ;;  %v1615_v16 = vadd.f32 %v6960_v56, %v8896_v0  ;;  %v1598_v49 = vadd.f32 %v7012_v8, %v8898_v5 }
 0x2ff   :  { %v7129_v63 = vpop.permute.xlu1 %1409  ;;  %8892 = vst [vmem:[#allocation116_spill] sm:$0xff] %v7134_v58  ;;  %v1597_v47 = vadd.f32 %v6939_v14, %v8893_v36  ;;  %v4397_v3 = vpop.eup %4396  ;;  %4416 = vpow2.f32 %v4077_v52  ;;  %v3350_v52 = vadd.f32 %v6958_v43, %v2627_v42  ;;  %v8903_v43 = vld [vmem:[#allocation103_spill] sm:$0xff] }
 0x300   :  { %v7131_v27 = vpop.permute.xlu0 %1407  ;;  %v4399_v60 = vpop.eup %4398  ;;  %4418 = vrcp.f32 %v2044_v23  ;;  %v2788_v53 = vadd.f32 1.0, %v4397_v3  ;;  %v1903_v56 = vadd.f32 %v6979_v17, %v1615_v16  ;;  %v1616_v42 = vadd.f32 %v7031_v22, %v8903_v43 }
 0x301   :  { %1689 = vrot.lane.b32.xlu1 %v8894_v59, %s4779_s7  ;;  %v1885_v58 = vadd.f32 %v7068_v10, %v1597_v47  ;;  %v7151_v59 = vpop.eup %4400  ;;  %4420 = vpow2.f32 %v4095_v57  ;;  %v8900_v10 = vld [vmem:[#allocation199_spill] sm:$0xff]  ;;  %v2061_v23 = vadd.f32 1.0, %v4399_v60  ;;  %v1886_v8 = vadd.f32 %v7049_v41, %v1598_v49 }
 0x302   :  { %1683 = vrot.lane.b32.xlu0 %v8895_v29, %s4779_s7  ;;  %8897 = vst [vmem:[#allocation17_spill] sm:$0xff] %v7151_v59  ;;  %v4109_v29 = vmul.f32 -1.442695, %v3332_v4  ;;  %v7156_v24 = vpop.eup %4402  ;;  %4422 = vrcp.f32 %v2770_v18  ;;  %v4128_v3 = vmul.f32 -1.442695, %v3351_v26  ;;  %v7176_v18 = vadd.f32 %v7051_v35, %v1903_v56 }
 0x303   :  { %v7147_v14 = vpop.permute.xlu1 %1517  ;;  %8899 = vst [vmem:[#allocation121_spill] sm:$0xff] %v7156_v24  ;;  %v7163_v47 = vpop.eup %4404  ;;  %4424 = vrcp.f32 %v2062_v40  ;;  %v2611_v17 = vadd.f32 %v6999_v32, %v1885_v58  ;;  %v4127_v5 = vmul.f32 -1.442695, %v3350_v52  ;;  %v1904_v22 = vadd.f32 %v7084_v25, %v1616_v42  ;;  %v8905_v40 = vld [vmem:[#allocation5_spill] sm:$0xff]  ;;  %v8906_v32 = vld [vmem:[#allocation200_spill] sm:$0xff]  ;;  %v8909_v42 = vld [vmem:[#allocation7_spill] sm:$0xff] }
 0x304   :  { %v7149_v36 = vpop.permute.xlu0 %1515  ;;  %8902 = vst [vmem:[#allocation117_spill] sm:$0xff] %v7163_v47  ;;  %v7168_v4 = vpop.eup %4406  ;;  %4426 = vpow2.f32 %v4109_v29  ;;  %v4065_v41 = vmul.f32 -1.442695, %v1903_v56  ;;  %v4048_v29 = vmul.f32 -1.442695, %v1886_v8 }
 0x305   :  { %2379 = vrot.lane.b32.xlu1 %v8900_v10, %s4780_s8  ;;  %v4409_v16 = vpop.eup %4408  ;;  %4428 = vrcp.f32 %v2788_v53  ;;  %v3334_v25 = vadd.f32 %v7070_v2, %v2611_v17  ;;  %v4097_v10 = vmul.f32 -1.442695, %v7176_v18  ;;  %v4047_v43 = vmul.f32 -1.442695, %v1885_v58 }
 0x306   :  { %2373 = vrot.lane.b32.xlu0 %v8901_v30, %s4780_s8  ;;  %v7179_v60 = vpop.eup %4410  ;;  %4430 = vrcp.f32 %v2061_v23  ;;  %v3493_v35 = vadd.f32 1.0, %v4409_v16  ;;  %v2630_v30 = vadd.f32 %v7014_v7, %v1904_v22  ;;  %v8908_v23 = vld [vmem:[#allocation201_spill] sm:$0xff]  ;;  %v4079_v2 = vmul.f32 -1.442695, %v2611_v17  ;;  %v8910_v17 = vld [vmem:[#allocation39_spill] sm:$0xff] }
 0x307   :  { %v7171_v57 = vpop.permute.xlu1 %1553  ;;  %8904 = vst [vmem:[#allocation24_spill] sm:$0xff] %v7179_v60  ;;  %v7185_v26 = vpop.eup %4412  ;;  %4432 = vpow2.f32 %v4128_v3  ;;  %v2612_v16 = vadd.f32 %v7100_v34, %v1886_v8  ;;  %v8911_v34 = vld [vmem:[#allocation203_spill] sm:$0xff] }
 0x308   :  { %v7173_v0 = vpop.permute.xlu0 %1551  ;;  %8907 = vst [vmem:[#allocation118_spill] sm:$0xff] %v7185_v26  ;;  %v7187_v52 = vpop.eup %4414  ;;  %4434 = vpow2.f32 %v4127_v5  ;;  %v4111_v5 = vmul.f32 -1.442695, %v3334_v25 }
 0x309   :  { %2407 = vrot.lane.b32.xlu1 %v8905_v40, %s4780_s8  ;;  %v4417_v56 = vpop.eup %4416  ;;  %4436 = vpow2.f32 %v4065_v41  ;;  %v3335_v25 = vadd.f32 %v7033_v12, %v2612_v16  ;;  %v8915_v12 = vld [vmem:[#allocation204_spill] sm:$0xff] }
 0x30a   :  { %2401 = vrot.lane.b32.xlu0 %v8906_v32, %s4780_s8  ;;  %v7200_v3 = vpop.eup %4418  ;;  %4438 = vpow2.f32 %v4048_v29  ;;  %v2769_v41 = vadd.f32 1.0, %v4417_v56  ;;  %v4066_v29 = vmul.f32 -1.442695, %v1904_v22  ;;  %v4098_v56 = vmul.f32 -1.442695, %v2630_v30 }
 0x30b   :  { %v7190_v49 = vpop.permute.xlu1 %1841  ;;  %v4421_v40 = vpop.eup %4420  ;;  %4440 = vrcp.f32 %v3493_v35 }
 0x30c   :  { %v7192_v53 = vpop.permute.xlu0 %1805  ;;  %v7207_v58 = vpop.eup %4422  ;;  %4442 = vpow2.f32 %v4097_v10  ;;  %v2787_v35 = vadd.f32 1.0, %v4421_v40  ;;  %v8914_v40 = vld [vmem:[#allocation37_spill] sm:$0xff] }
 0x30d   :  { %3088 = vrot.lane.b32.xlu1 %v8908_v23, %s4781_s9  ;;  %v3353_v23 = vadd.f32 %v7086_v61, %v2630_v30  ;;  %4444 = vpow2.f32 %v4047_v43  ;;  %v4112_v30 = vmul.f32 -1.442695, %v3335_v25 }
 0x30e   :  { %3084 = vrot.lane.b32.xlu0 %v8909_v42, %s4781_s9  ;;  %v7210_v42 = vpop.eup %4424  ;;  %4446 = vpow2.f32 %v4079_v2 }
 0x30f   :  { %v7203_v32 = vpop.permute.xlu1 %2531  ;;  %v4427_v8 = vpop.eup %4426  ;;  %4448 = vpow2.f32 %v4111_v5  ;;  %v4130_v43 = vmul.f32 -1.442695, %v3353_v23 }
 0x310   :  { %v7205_v7 = vpop.permute.xlu0 %1803  ;;  %v7217_v60 = vpop.eup %4428  ;;  %4450 = vrcp.f32 %v2769_v41 }
 0x311   :  { %3118 = vrot.lane.b32.xlu1 %v8910_v17, %s4781_s9  ;;  %8912 = vst [vmem:[#allocation127_spill] sm:$0xff] %v7217_v60  ;;  %v7223_v22 = vpop.eup %4430  ;;  %4452 = vpow2.f32 %v4066_v29  ;;  %v3492_v60 = vadd.f32 1.0, %v4427_v8  ;;  %v8918_v8 = vld [vmem:[#allocation206_spill] sm:$0xff] }
 0x312   :  { %3094 = vrot.lane.b32.xlu0 %v8911_v34, %s4781_s9  ;;  %8913 = vst [vmem:[#allocation21_spill] sm:$0xff] %v7223_v22  ;;  %v4433_v17 = vpop.eup %4432  ;;  %v4080_v34 = vmul.f32 -1.442695, %v2612_v16  ;;  %4454 = vrcp.f32 %v2787_v35  ;;  %v3352_v16 = vadd.f32 %v7102_v1, %v7176_v18  ;;  %v8917_v35 = vld [vmem:[#allocation202_spill] sm:$0xff] }
 0x313   :  { %v7219_v61 = vpop.permute.xlu1 %2529  ;;  %v4435_v2 = vpop.eup %4434  ;;  %4456 = vpow2.f32 %v4098_v56  ;;  %v3511_v23 = vadd.f32 1.0, %v4433_v17 }
 0x314   :  { %v7221_v10 = vpop.permute.xlu0 %1839  ;;  %v4437_v5 = vpop.eup %4436  ;;  %4458 = vpow2.f32 %v4130_v43  ;;  %v8919_v43 = vld [vmem:[#allocation126_spill] sm:$0xff] }
 0x315   :  { %1659 = vrot.lane.b32.xlu1 %v8914_v40, %s4779_s7  ;;  %v4439_v41 = vpop.eup %4438  ;;  %v3510_v40 = vadd.f32 1.0, %v4435_v2  ;;  %4460 = vpow2.f32 %v4080_v34  ;;  %v2063_v56 = vadd.f32 1.0, %v4437_v5  ;;  %v1618_v47 = vadd.f32 %v7171_v57, %v8919_v43  ;;  %v8922_v57 = vld [vmem:[#allocation41_spill] sm:$0xff] }
 0x316   :  { %3122 = vrot.lane.b32.xlu0 %v8915_v12, %s4781_s9  ;;  %v7235_v29 = vpop.eup %4440  ;;  %4462 = vpow2.f32 %v4112_v30  ;;  %v2046_v17 = vadd.f32 1.0, %v4439_v41  ;;  %v4129_v2 = vmul.f32 -1.442695, %v3352_v16 }
 0x317   :  { %v7229_v24 = vpop.permute.xlu1 %2567  ;;  %8916 = vst [vmem:[#allocation122_spill] sm:$0xff] %v7235_v29  ;;  %v4443_v25 = vpop.eup %4442  ;;  %4464 = vrcp.f32 %v3492_v60  ;;  %v1906_v30 = vadd.f32 %v7190_v49, %v1618_v47  ;;  %v8921_v60 = vld [vmem:[#allocation205_spill] sm:$0xff] }
 0x318   :  { %v7231_v26 = vpop.permute.xlu0 %2565  ;;  %v4445_v12 = vpop.eup %4444  ;;  %4466 = vrcp.f32 %v3511_v23  ;;  %v2789_v29 = vadd.f32 1.0, %v4443_v25 }
 0x319   :  { %1687 = vrot.lane.b32.xlu1 %v8917_v35, %s4779_s7  ;;  %v4447_v34 = vpop.eup %4446  ;;  %4468 = vrcp.f32 %v3510_v40  ;;  %v2045_v43 = vadd.f32 1.0, %v4445_v12 }
 0x31a   :  { %1665 = vrot.lane.b32.xlu0 %v8918_v8, %s4779_s7  ;;  %v4449_v35 = vpop.eup %4448  ;;  %v8920_v8 = vld [vmem:[#allocation102_spill] sm:$0xff]  ;;  %4470 = vrcp.f32 %v2063_v56  ;;  %v2771_v16 = vadd.f32 1.0, %v4447_v34  ;;  %v8926_v56 = vld [vmem:[#allocation209_spill] sm:$0xff] }
 0x31b   :  { %v7243_v1 = vpop.permute.xlu1 %3254  ;;  %v1600_v5 = vadd.f32 %v7147_v14, %v8920_v8  ;;  %v7254_v41 = vpop.eup %4450  ;;  %4472 = vrcp.f32 %v2046_v17  ;;  %v3494_v49 = vadd.f32 1.0, %v4449_v35  ;;  %v8927_v17 = vld [vmem:[#allocation93_spill] sm:$0xff] }
 0x31c   :  { %v7245_v18 = vpop.permute.xlu0 %3288  ;;  %8923 = vst [vmem:[#allocation129_spill] sm:$0xff] %v7254_v41  ;;  %v4453_v23 = vpop.eup %4452  ;;  %4474 = vpow2.f32 %v4129_v2  ;;  %v1599_v34 = vadd.f32 %v7149_v36, %v8927_v17  ;;  %v8930_v36 = vld [vmem:[#allocation38_spill] sm:$0xff] }
 0x31d   :  { %2377 = vrot.lane.b32.xlu1 %v8921_v60, %s4780_s8  ;;  %v1888_v40 = vadd.f32 %v7192_v53, %v1600_v5  ;;  %v7261_v47 = vpop.eup %4454  ;;  %4476 = vrcp.f32 %v2789_v29  ;;  %v4068_v60 = vmul.f32 -1.442695, %v1906_v30  ;;  %v2064_v53 = vadd.f32 1.0, %v4453_v23  ;;  %v8929_v23 = vld [vmem:[#allocation120_spill] sm:$0xff] }
 0x31e   :  { %1693 = vrot.lane.b32.xlu0 %v8922_v57, %s4779_s7  ;;  %8924 = vst [vmem:[#allocation128_spill] sm:$0xff] %v7261_v47  ;;  %v4457_v8 = vpop.eup %4456  ;;  %v8925_v57 = vld [vmem:[#allocation207_spill] sm:$0xff]  ;;  %4478 = vrcp.f32 %v2045_v43  ;;  %v1887_v22 = vadd.f32 %v7205_v7, %v1599_v34  ;;  %v1617_v59 = vadd.f32 %v7173_v0, %v8929_v23  ;;  %v2632_v23 = vadd.f32 %v7229_v24, %v1906_v30 }
 0x31f   :  { %v7257_v25 = vpop.permute.xlu1 %3252  ;;  %v4459_v12 = vpop.eup %4458  ;;  %4480 = vrcp.f32 %v2771_v16  ;;  %v4050_v47 = vmul.f32 -1.442695, %v1888_v40  ;;  %v2790_v41 = vadd.f32 1.0, %v4457_v8  ;;  %v8931_v16 = vld [vmem:[#allocation210_spill] sm:$0xff] }
 0x320   :  { %v7259_v14 = vpop.permute.xlu0 %1375  ;;  %v4461_v5 = vpop.eup %4460  ;;  %4482 = vrcp.f32 %v3494_v49  ;;  %v3513_v43 = vadd.f32 1.0, %v4459_v12  ;;  %v1905_v8 = vadd.f32 %v7221_v10, %v1617_v59 }
 0x321   :  { %2405 = vrot.lane.b32.xlu1 %v8925_v57, %s4780_s8  ;;  %v4463_v29 = vpop.eup %4462  ;;  %v2614_v57 = vadd.f32 %v7203_v32, %v1888_v40  ;;  %4484 = vpow2.f32 %v4068_v60  ;;  %v2772_v49 = vadd.f32 1.0, %v4461_v5  ;;  %v2613_v32 = vadd.f32 %v7219_v61, %v1887_v22  ;;  %v8935_v61 = vld [vmem:[#allocation208_spill] sm:$0xff] }
 0x322   :  { %2383 = vrot.lane.b32.xlu0 %v8926_v56, %s4780_s8  ;;  %v7273_v56 = vpop.eup %4464  ;;  %4486 = vrcp.f32 %v2064_v53  ;;  %v3495_v40 = vadd.f32 1.0, %v4463_v29  ;;  %v4049_v53 = vmul.f32 -1.442695, %v1887_v22  ;;  %v2631_v5 = vadd.f32 %v7231_v26, %v1905_v8 }
 0x323   :  { %v3291_v35 = vpop.permute.xlu1 %3290  ;;  %8928 = vst [vmem:[#allocation132_spill] sm:$0xff] %v7273_v56  ;;  %v7281_v17 = vpop.eup %4466  ;;  %4488 = vpow2.f32 %v4050_v47  ;;  %v4082_v34 = vmul.f32 -1.442695, %v2614_v57  ;;  %v8936_v47 = vld [vmem:[#allocation211_spill] sm:$0xff]  ;;  %v4081_v10 = vmul.f32 -1.442695, %v2613_v32  ;;  %v3337_v24 = vadd.f32 %v7243_v1, %v2614_v57 }
 0x324   :  { %v7269_v2 = vpop.permute.xlu0 %1519  ;;  %8932 = vst [vmem:[#allocation130_spill] sm:$0xff] %v7281_v17  ;;  %v7284_v7 = vpop.eup %4468  ;;  %4490 = vrcp.f32 %v2790_v41  ;;  %v4067_v41 = vmul.f32 -1.442695, %v1905_v8  ;;  %v3336_v26 = vadd.f32 %v7257_v25, %v2613_v32  ;;  %v4099_v57 = vmul.f32 -1.442695, %v2631_v5  ;;  %v8942_v8 = vld [vmem:[#allocation125_spill] sm:$0xff] }
 0x325   :  { %3092 = vrot.lane.b32.xlu1 %v8930_v36, %s4781_s9  ;;  %8933 = vst [vmem:[#allocation131_spill] sm:$0xff] %v7284_v7  ;;  %v7289_v12 = vpop.eup %4470  ;;  %4492 = vrcp.f32 %v3513_v43  ;;  %v8939_v7 = vld [vmem:[#allocation40_spill] sm:$0xff] }
 0x326   :  { %2411 = vrot.lane.b32.xlu0 %v8931_v16, %s4780_s8  ;;  %8934 = vst [vmem:[#allocation134_spill] sm:$0xff] %v7289_v12  ;;  %v7292_v36 = vpop.eup %4472  ;;  %4494 = vrcp.f32 %v2772_v49  ;;  %v4100_v16 = vmul.f32 -1.442695, %v2632_v23 }
 0x327   :  { %v7287_v0 = vpop.permute.xlu1 %1377  ;;  %v4475_v59 = vpop.eup %4474  ;;  %4496 = vrcp.f32 %v3495_v40  ;;  %v8940_v40 = vld [vmem:[#allocation212_spill] sm:$0xff] }
 0x328   :  { %v2536_v60 = vpop.permute.xlu0 %2535  ;;  %v7299_v29 = vpop.eup %4476  ;;  %4498 = vpow2.f32 %v4082_v34  ;;  %v3512_v49 = vadd.f32 1.0, %v4475_v59 }
 0x329   :  { %3116 = vrot.lane.b32.xlu1 %v8935_v61, %s4781_s9  ;;  %8937 = vst [vmem:[#allocation133_spill] sm:$0xff] %v7299_v29  ;;  %v7302_v22 = vpop.eup %4478  ;;  %v3354_v61 = vadd.f32 %v7245_v18, %v2631_v5  ;;  %4500 = vpow2.f32 %v4049_v53  ;;  %v4114_v18 = vmul.f32 -1.442695, %v3337_v24  ;;  %v3355_v29 = vadd.f32 %v3291_v35, %v2632_v23  ;;  %v8944_v5 = vld [vmem:[#allocation213_spill] sm:$0xff]  ;;  %v8947_v24 = vld [vmem:[#allocation119_spill] sm:$0xff] }
 0x32a   :  { %3098 = vrot.lane.b32.xlu0 %v8936_v47, %s4781_s9  ;;  %v7305_v47 = vpop.eup %4480  ;;  %4502 = vpow2.f32 %v4081_v10  ;;  %v4113_v10 = vmul.f32 -1.442695, %v3336_v26 }
 0x32b   :  { %v1522_v30 = vpop.permute.xlu1 %1521  ;;  %8938 = vst [vmem:[#allocation136_spill] sm:$0xff] %v7305_v47  ;;  %v7312_v1 = vpop.eup %4482  ;;  %4504 = vpow2.f32 %v4067_v41  ;;  %v4131_v25 = vmul.f32 -1.442695, %v3354_v61  ;;  %v8945_v41 = vld [vmem:[#allocation214_spill] sm:$0xff] }
 0x32c   :  { %v3259_v43 = vpop.permute.xlu0 %3258  ;;  %8941 = vst [vmem:[#allocation20_spill] sm:$0xff] %v7312_v1  ;;  %v1602_v34 = vadd.f32 %v1522_v30, %v8942_v8  ;;  %v4485_v17 = vpop.eup %4484  ;;  %4506 = vpow2.f32 %v4100_v16  ;;  %v1601_v30 = vadd.f32 %v7269_v2, %v8947_v24  ;;  %v4132_v8 = vmul.f32 -1.442695, %v3355_v29  ;;  %v8952_v2 = vld [vmem:[#allocation43_spill] sm:$0xff]  ;;  %v8957_v1 = vld [vmem:[#allocation216_spill] sm:$0xff] }
 0x32d   :  { %3126 = vrot.lane.b32.xlu1 %v8939_v7, %s4781_s9  ;;  %v7315_v56 = vpop.eup %4486  ;;  %v8943_v7 = vld [vmem:[#allocation135_spill] sm:$0xff]  ;;  %4508 = vrcp.f32 %v3512_v49  ;;  %v2066_v23 = vadd.f32 1.0, %v4485_v17 }
 0x32e   :  { %3120 = vrot.lane.b32.xlu0 %v8940_v40, %s4781_s9  ;;  %v4489_v40 = vpop.eup %4488  ;;  %4510 = vpow2.f32 %v4099_v57  ;;  %v8951_v57 = vld [vmem:[#allocation140_spill] sm:$0xff] }
 0x32f   :  { %v1810_v59 = vpop.permute.xlu1 %1809  ;;  %v7324_v35 = vpop.eup %4490  ;;  %4512 = vpow2.f32 %v4114_v18 }
 0x330   :  { %v1380_v53 = vpop.permute.xlu0 %1379  ;;  %v1890_v32 = vadd.f32 %v1810_v59, %v1602_v34  ;;  %8946 = vst [vmem:[#allocation137_spill] sm:$0xff] %v7324_v35  ;;  %v7328_v61 = vpop.eup %4492  ;;  %v2048_v59 = vadd.f32 1.0, %v4489_v40  ;;  %4514 = vpow2.f32 %v4131_v25 }
 0x331   :  { %v7318_v47 = vadd.f32 %v1380_v53, %v8943_v7  ;;  %1691 = vrot.lane.b32.xlu1 %v8944_v5, %s4779_s7  ;;  %8948 = vst [vmem:[#allocation141_spill] sm:$0xff] %v7328_v61  ;;  %v7330_v34 = vpop.eup %4494  ;;  %4516 = vpow2.f32 %v4113_v10 }
 0x332   :  { %1663 = vrot.lane.b32.xlu0 %v8945_v41, %s4779_s7  ;;  %v2616_v16 = vadd.f32 %v2536_v60, %v1890_v32  ;;  %8949 = vst [vmem:[#allocation138_spill] sm:$0xff] %v7330_v34  ;;  %v7332_v5 = vpop.eup %4496  ;;  %v4052_v17 = vmul.f32 -1.442695, %v1890_v32  ;;  %v8953_v60 = vld [vmem:[#allocation217_spill] sm:$0xff]  ;;  %4518 = vrcp.f32 %v2066_v23  ;;  %v8964_v34 = vld [vmem:[#allocation220_spill] sm:$0xff] }
 0x333   :  { %v1808_v49 = vpop.permute.xlu1 %1807  ;;  %8950 = vst [vmem:[#allocation142_spill] sm:$0xff] %v7332_v5  ;;  %v4499_v29 = vpop.eup %4498  ;;  %4520 = vpow2.f32 %v4132_v8 }
 0x334   :  { %v1524_v26 = vpop.permute.xlu0 %1523  ;;  %v3339_v53 = vadd.f32 %v3259_v43, %v2616_v16  ;;  %v1889_v7 = vadd.f32 %v1808_v49, %v1601_v30  ;;  %v4084_v18 = vmul.f32 -1.442695, %v2616_v16  ;;  %v4501_v24 = vpop.eup %4500  ;;  %4522 = vrcp.f32 %v2048_v59 }
 0x335   :  { %v1603_v41 = vadd.f32 %v1524_v26, %v8951_v57  ;;  %2381 = vrot.lane.b32.xlu1 %v8952_v2, %s4780_s8  ;;  %v4503_v30 = vpop.eup %4502  ;;  %v2774_v26 = vadd.f32 1.0, %v4499_v29  ;;  %4524 = vpow2.f32 %v4052_v17  ;;  %v8954_v57 = vld [vmem:[#allocation215_spill] sm:$0xff]  ;;  %v2047_v16 = vadd.f32 1.0, %v4501_v24  ;;  %v8958_v24 = vld [vmem:[#allocation42_spill] sm:$0xff] }
 0x336   :  { %1697 = vrot.lane.b32.xlu0 %v8953_v60, %s4779_s7  ;;  %v4116_v25 = vmul.f32 -1.442695, %v3339_v53  ;;  %v4051_v32 = vmul.f32 -1.442695, %v1889_v7  ;;  %v4505_v49 = vpop.eup %4504  ;;  %v8955_v2 = vld [vmem:[#allocation219_spill] sm:$0xff]  ;;  %4526 = vpow2.f32 %v4084_v18  ;;  %v2773_v53 = vadd.f32 1.0, %v4503_v30 }
 0x337   :  { %v2534_v43 = vpop.permute.xlu1 %2533  ;;  %v4507_v23 = vpop.eup %4506 }
 0x338   :  { %v7339_v40 = vpop.permute.xlu0 %1813  ;;  %v2615_v10 = vadd.f32 %v2534_v43, %v1889_v7  ;;  %v7345_v8 = vpop.eup %4508  ;;  %4528 = vpow2.f32 %v4116_v25  ;;  %v2065_v7 = vadd.f32 1.0, %v4505_v49 }
 0x339   :  { %2409 = vrot.lane.b32.xlu1 %v8954_v57, %s4780_s8  ;;  %8956 = vst [vmem:[#allocation139_spill] sm:$0xff] %v7345_v8  ;;  %v4511_v61 = vpop.eup %4510  ;;  %4530 = vpow2.f32 %v4051_v32  ;;  %v2792_v57 = vadd.f32 1.0, %v4507_v23 }
 0x33a   :  { %2387 = vrot.lane.b32.xlu0 %v8955_v2, %s4780_s8  ;;  %v4513_v43 = vpop.eup %4512  ;;  %4532 = vrcp.f32 %v2774_v26  ;;  %v2791_v2 = vadd.f32 1.0, %v4511_v61  ;;  %v8960_v26 = vld [vmem:[#allocation143_spill] sm:$0xff] }
 0x33b   :  { %v3257_v60 = vpop.permute.xlu1 %3256  ;;  %v4515_v18 = vpop.eup %4514  ;;  %4534 = vrcp.f32 %v2047_v16  ;;  %v8962_v16 = vld [vmem:[#allocation47_spill] sm:$0xff] }
 0x33c   :  { %v1812_v59 = vpop.permute.xlu0 %1811  ;;  %v3338_v29 = vadd.f32 %v3257_v60, %v2615_v10  ;;  %v4517_v25 = vpop.eup %4516  ;;  %4536 = vrcp.f32 %v2773_v53  ;;  %v8963_v61 = vld [vmem:[#allocation63_spill] sm:$0xff] }
 0x33d   :  { %v1891_v17 = vadd.f32 %v1812_v59, %v1603_v41  ;;  %3096 = vrot.lane.b32.xlu1 %v8957_v1, %s4781_s9  ;;  %v7353_v32 = vpop.eup %4518  ;;  %4538 = vrcp.f32 %v2065_v7  ;;  %v3497_v41 = vadd.f32 1.0, %v4513_v43  ;;  %v3514_v1 = vadd.f32 1.0, %v4515_v18  ;;  %v8961_v59 = vld [vmem:[#allocation218_spill] sm:$0xff] }
 0x33e   :  { %2415 = vrot.lane.b32.xlu0 %v8958_v24, %s4780_s8  ;;  %8959 = vst [vmem:[#allocation147_spill] sm:$0xff] %v7353_v32  ;;  %v4521_v60 = vpop.eup %4520  ;;  %4540 = vrcp.f32 %v2792_v57  ;;  %v2285_v24 = vrot.slane %v8963_v61, 4  ;;  %v3496_v5 = vadd.f32 1.0, %v4517_v25  ;;  %v4083_v7 = vmul.f32 -1.442695, %v2615_v10 }
 0x33f   :  { %v4053_v30 = vmul.f32 -1.442695, %v1891_v17  ;;  %v1382_v8 = vpop.permute.xlu1 %1381  ;;  %v7360_v53 = vpop.eup %4522  ;;  %v3515_v57 = vadd.f32 1.0, %v4521_v60  ;;  %v4115_v12 = vmul.f32 -1.442695, %v3338_v29 }
 0x340   :  { %v7351_v49 = vpop.permute.xlu0 %2539  ;;  %v1460_v23 = vadd.f32 %v1382_v8, %v8960_v26  ;;  %v4525_v35 = vpop.eup %4524  ;;  %v2286_v25 = vmax.f32 %v8963_v61, %v2285_v24 }
 0x341   :  { %3124 = vrot.lane.b32.xlu1 %v8961_v59, %s4781_s9  ;;  %4542 = vpow2.f32 %v4053_v30  ;;  %v4527_v26 = vpop.eup %4526  ;;  %v8965_v30 = vld [vmem:[#allocation222_spill] sm:$0xff] }
 0x342   :  { %3102 = vrot.lane.b32.xlu0 %v8962_v16, %s4781_s9  ;;  %4544 = vrcp.f32 %v2791_v2  ;;  %v4529_v32 = vpop.eup %4528  ;;  %v2294_v16 = vrot.slane %v6644_v46, 4  ;;  %v2050_v2 = vadd.f32 1.0, %v4525_v35  ;;  %v8968_v35 = vld [vmem:[#allocation224_spill] sm:$0xff] }
 0x343   :  { %v1670_v43 = vpop.permute.xlu1 %1669  ;;  %4546 = vrcp.f32 %v3497_v41  ;;  %v4531_v10 = vpop.eup %4530  ;;  %v3499_v29 = vadd.f32 1.0, %v4529_v32 }
 0x344   :  { %v2538_v8 = vpop.permute.xlu0 %2537  ;;  %v7363_v18 = vadd.f32 %v1670_v43, %v1460_v23  ;;  %4548 = vrcp.f32 %v3514_v1  ;;  %v7371_v41 = vpop.eup %4532  ;;  %v2776_v23 = vadd.f32 1.0, %v4527_v26  ;;  %v2049_v61 = vadd.f32 1.0, %v4531_v10 }
 0x345   :  { %v2617_v59 = vadd.f32 %v2538_v8, %v1891_v17  ;;  %1695 = vrot.lane.b32.xlu1 %v8964_v34, %s4779_s7  ;;  %4550 = vrcp.f32 %v3496_v5  ;;  %8966 = vst [vmem:[#allocation23_spill] sm:$0xff] %v7371_v41  ;;  %v7373_v43 = vpop.eup %4534  ;;  %v2295_v8 = vmax.f32 %v6644_v46, %v2294_v16  ;;  %v8969_v5 = vld [vmem:[#allocation221_spill] sm:$0xff]  ;;  %v8972_v46 = vld [vmem:[#allocation146_spill] sm:$0xff] }
 0x346   :  { %3130 = vrot.lane.b32.xlu0 %v8965_v30, %s4781_s9  ;;  %4552 = vpow2.f32 %v4083_v7  ;;  %v7378_v1 = vpop.eup %4536  ;;  %v2287_v7 = vrot.slane %v2286_v25, 2 }
 0x347   :  { %v1668_v17 = vpop.permute.xlu1 %1667  ;;  %4554 = vrcp.f32 %v3515_v57  ;;  %8967 = vst [vmem:[#allocation144_spill] sm:$0xff] %v7378_v1  ;;  %v7385_v24 = vpop.eup %4538 }
 0x348   :  { %v3263_v60 = vpop.permute.xlu0 %3262  ;;  %v7376_v34 = vadd.f32 %v1668_v17, %v7318_v47  ;;  %4556 = vpow2.f32 %v4115_v12  ;;  %8970 = vst [vmem:[#allocation145_spill] sm:$0xff] %v7385_v24  ;;  %v7387_v32 = vpop.eup %4540  ;;  %v4085_v17 = vmul.f32 -1.442695, %v2617_v59 }
 0x349   :  { %2391 = vrot.lane.b32.xlu1 %v8968_v35, %s4780_s8  ;;  %4558 = vrcp.f32 %v2050_v2  ;;  %8971 = vst [vmem:[#allocation148_spill] sm:$0xff] %v7387_v32  ;;  %v8974_v35 = vld [vmem:[#allocation44_spill] sm:$0xff]  ;;  %v8975_v2 = vld [vmem:[#allocation223_spill] sm:$0xff] }
 0x34a   :  { %2385 = vrot.lane.b32.xlu0 %v8969_v5, %s4780_s8  ;;  %4560 = vrcp.f32 %v2776_v23  ;;  %v2296_v5 = vrot.slane %v2295_v8, 2 }
 0x34b   :  { %v1526_v47 = vpop.permute.xlu1 %1525  ;;  %v4543_v57 = vpop.eup %4542  ;;  %4562 = vrcp.f32 %v3499_v29 }
 0x34c   :  { %v3261_v26 = vpop.permute.xlu0 %3260  ;;  %v1604_v16 = vadd.f32 %v1526_v47, %v8972_v46  ;;  %v7390_v30 = vpop.eup %4544  ;;  %4564 = vrcp.f32 %v2049_v61  ;;  %v2051_v10 = vadd.f32 1.0, %v4543_v57  ;;  %v2288_v47 = vmax.f32 %v2286_v25, %v2287_v7  ;;  %v8980_v25 = vld [vmem:[#allocation64_spill] sm:$0xff] }
 0x34d   :  { %v3340_v12 = vadd.f32 %v3261_v26, %v2617_v59  ;;  %8973 = vst [vmem:[#allocation149_spill] sm:$0xff] %v7390_v30  ;;  %2419 = vrot.lane.b32.xlu1 %v8974_v35, %s4780_s8  ;;  %v7396_v23 = vpop.eup %4546  ;;  %4566 = vtanh.f32 %v7376_v34  ;;  %v2892_v7 = vsel %vm2890_vm11, %v8980_v25, -1e+30 }
 0x34e   :  { %2413 = vrot.lane.b32.xlu0 %v8975_v2, %s4780_s8  ;;  %8976 = vst [vmem:[#allocation150_spill] sm:$0xff] %v7396_v23  ;;  %v1892_v29 = vadd.f32 %v7339_v40, %v1604_v16  ;;  %v7401_v26 = vpop.eup %4548  ;;  %4568 = vrcp.f32 %v2051_v10  ;;  %v8979_v2 = vld [vmem:[#allocation65_spill] sm:$0xff] }
 0x34f   :  { %8977 = vst [vmem:[#allocation151_spill] sm:$0xff] %v7401_v26  ;;  %v2366_v59 = vpop.permute.xlu1 %2365  ;;  %v7403_v57 = vpop.eup %4550  ;;  %4570 = vtanh.f32 %v7363_v18  ;;  %v4117_v16 = vmul.f32 -1.442695, %v3340_v12  ;;  %v8981_v10 = vld [vmem:[#allocation225_spill] sm:$0xff]  ;;  %v8982_v26 = vld [vmem:[#allocation50_spill] sm:$0xff]  ;;  %v8984_v12 = vld [vmem:[#allocation56_spill] sm:$0xff] }
 0x350   :  { %v2362_v61 = vpop.permute.xlu0 %2361  ;;  %8978 = vst [vmem:[#allocation152_spill] sm:$0xff] %v7403_v57  ;;  %v4054_v46 = vmul.f32 -1.442695, %v1892_v29  ;;  %v2618_v35 = vadd.f32 %v7351_v49, %v1892_v29  ;;  %v7408_v30 = vadd.f32 %v2366_v59, %v8979_v2  ;;  %v4553_v40 = vpop.eup %4552  ;;  %4572 = vpow2.f32 %v4085_v17 }
 0x351   :  { %3106 = vrot.lane.b32.xlu1 %v8981_v10, %s4781_s9  ;;  %v2297_v57 = vmax.f32 %v2295_v8, %v2296_v5  ;;  %v7417_v23 = vpop.eup %4554  ;;  %v2289_v59 = vrot.slane %v2288_v47, 1  ;;  %v7421_v17 = vadd.f32 %v2362_v61, %v8984_v12  ;;  %v2154_v10 = vmul.f32 %v7027_v39, %v7005_v54  ;;  %v8987_v54 = vld [vmem:[#allocation226_spill] sm:$0xff] }
 0x352   :  { %3100 = vrot.lane.b32.xlu0 %v8982_v26, %s4781_s9  ;;  %8983 = vst [vmem:[#allocation33_spill] sm:$0xff] %v7417_v23  ;;  %4574 = vpow2.f32 %v4054_v46  ;;  %v4086_v49 = vmul.f32 -1.442695, %v2618_v35  ;;  %v3341_v29 = vadd.f32 %v3263_v60, %v2618_v35  ;;  %v4557_v2 = vpop.eup %4556  ;;  %v2775_v8 = vadd.f32 1.0, %v4553_v40  ;;  %v8986_v35 = vld [vmem:[#allocation229_spill] sm:$0xff]  ;;  %v8994_v12 = vld [vmem:[#allocation6_spill] sm:$0xff] }
 0x353   :  { %4576 = vtanh.f32 %v7408_v30  ;;  %v2396_v25 = vpop.permute.xlu1 %2395  ;;  %v7425_v1 = vpop.eup %4558  ;;  %v7433_v46 = vsel %vm2923_vm12, %v2892_v7, -inf  ;;  %v2298_v39 = vrot.slane %v2297_v57, 1 }
 0x354   :  { %v2372_v32 = vpop.permute.xlu0 %2371  ;;  %4578 = vpow2.f32 %v4086_v49  ;;  %v4118_v5 = vmul.f32 -1.442695, %v3341_v29  ;;  %v7428_v26 = vadd.f32 %v2396_v25, %v7363_v18  ;;  %v7430_v60 = vpop.eup %4560  ;;  %v8989_v18 = vld [vmem:[#allocation45_spill] sm:$0xff]  ;;  %v7449_v29 = vmax.f32 %v2288_v47, %v2289_v59  ;;  %v8995_v59 = vld [vmem:[#allocation60_spill] sm:$0xff] }
 0x355   :  { %8985 = vst [vmem:[#allocation153_spill] sm:$0xff] %v7430_v60  ;;  %4580 = vpow2.f32 %v4117_v16  ;;  %v7436_v61 = vadd.f32 %v2372_v32, %v6671_v44  ;;  %3134 = vrot.lane.b32.xlu1 %v8986_v35, %s4781_s9  ;;  %v7442_v40 = vpop.eup %4562  ;;  %v1451_v49 = vadd.f32 %v6778_v20, %v8989_v18  ;;  %v8990_v16 = vld [vmem:[#allocation78_spill] sm:$0xff]  ;;  %v2191_v20 = vsel %vm2167_vm2, %v2154_v10, -1e+30 }
 0x356   :  { %3128 = vrot.lane.b32.xlu0 %v8987_v54, %s4781_s9  ;;  %8988 = vst [vmem:[#allocation154_spill] sm:$0xff] %v7442_v40  ;;  %4582 = vpow2.f32 %v4118_v5  ;;  %v2894_v7 = vsel %vm2890_vm11, %v8990_v16, -1e+30  ;;  %8991 = vst [vmem:[#allocation28_spill] sm:$0xff] %v7449_v29  ;;  %v7451_v44 = vpop.eup %4564  ;;  %v8993_v32 = vld [vmem:[#allocation26_spill] sm:$0xff]  ;;  %v2140_v54 = vmul.f32 %v7200_v3, %v7168_v4  ;;  %v3498_v18 = vadd.f32 1.0, %v4557_v2 }
 0x357   :  { %8992 = vst [vmem:[#allocation155_spill] sm:$0xff] %v7451_v44  ;;  %v1465_v25 = vadd.f32 %v8994_v12, %v8993_v32  ;;  %4584 = vtanh.f32 %v7421_v17  ;;  %v1652_v35 = vpop.permute.xlu1 %1651  ;;  %v4567_v5 = vpop.eup %4566  ;;  %v8996_v32 = vld [vmem:[#allocation46_spill] sm:$0xff]  ;;  %v2934_v40 = vsel %vm2923_vm12, %v2894_v7, -inf  ;;  %v8997_v4 = vld [vmem:[#allocation227_spill] sm:$0xff]  ;;  %v8998_v3 = vld [vmem:[#allocation228_spill] sm:$0xff]  ;;  %v7475_v2 = vmax.f32 %v2297_v57, %v2298_v39 }
 0x358   :  { %v2400_v23 = vpop.permute.xlu0 %2399  ;;  %4586 = vrcp.f32 %v2775_v8  ;;  %v7460_v47 = vadd.f32 %v1652_v35, %v1451_v49  ;;  %v4569_v29 = vpop.eup %4568  ;;  %v7467_v12 = vadd.f32 %v6694_v55, %v8996_v32  ;;  %v9001_v8 = vld [vmem:[#allocation82_spill] sm:$0xff]  ;;  %v9003_v32 = vld [vmem:[#allocation69_spill] sm:$0xff]  ;;  %v2177_v57 = vsel %vm2167_vm2, %v2140_v54, -1e+30  ;;  %v9014_v44 = vld [vmem:[#allocation91_spill] sm:$0xff] }
 0x359   :  { %v7463_v16 = vadd.f32 %v2400_v23, %v8995_v59  ;;  %4588 = vtanh.f32 %v7436_v61  ;;  %2417 = vrot.lane.b32.xlu1 %v8997_v4, %s4780_s8  ;;  %8999 = vst [vmem:[#allocation156_spill] sm:$0xff] %v7475_v2  ;;  %v7477_v10 = vpop.eup %4570  ;;  %v9000_v23 = vld [vmem:[#allocation53_spill] sm:$0xff]  ;;  %v9002_v35 = vld [vmem:[#allocation74_spill] sm:$0xff]  ;;  %v7483_v59 = vmul.f32 %v4569_v29, %v4567_v5  ;;  %v9005_v29 = vld [vmem:[#allocation75_spill] sm:$0xff] }
 0x35a   :  { %2389 = vrot.lane.b32.xlu0 %v8998_v3, %s4780_s8  ;;  %v1468_v49 = vadd.f32 %v9001_v8, %v9000_v23  ;;  %v1454_v55 = vadd.f32 %v6977_v62, %v9002_v35  ;;  %4590 = vtanh.f32 %v7460_v47  ;;  %v4573_v7 = vpop.eup %4572  ;;  %v9004_v4 = vld [vmem:[#allocation85_spill] sm:$0xff]  ;;  %v7494_v3 = vsel %vm2200_vm7, %v2191_v20, -inf  ;;  %v9007_v2 = vld [vmem:[#allocation92_spill] sm:$0xff] }
 0x35b   :  { %v7488_v60 = vadd.f32 %v9004_v4, %v9003_v32  ;;  %4592 = vtanh.f32 %v7463_v16  ;;  %v1680_v39 = vpop.permute.xlu1 %1679  ;;  %v7498_v5 = vadd.f32 %v6827_v31, %v9005_v29  ;;  %v9006_v4 = vld [vmem:[#allocation68_spill] sm:$0xff]  ;;  %v7510_v20 = vadd.f32 %v6922_v11, %v9007_v2  ;;  %v9009_v31 = vld [vmem:[#allocation230_spill] sm:$0xff]  ;;  %v9012_v2 = vld [vmem:[#allocation97_spill] sm:$0xff] }
 0x35c   :  { %v1658_v23 = vpop.permute.xlu0 %1657  ;;  %v4575_v62 = vpop.eup %4574  ;;  %4594 = vrcp.f32 %v3498_v18  ;;  %v7500_v8 = vadd.f32 %v1680_v39, %v1465_v25  ;;  %v7506_v54 = vadd.f32 %v6905_v50, %v9006_v4  ;;  %v9010_v25 = vld [vmem:[#allocation54_spill] sm:$0xff]  ;;  %v2777_v29 = vadd.f32 1.0, %v4573_v7  ;;  %v9015_v7 = vld [vmem:[#allocation124_spill] sm:$0xff] }
 0x35d   :  { %v7502_v35 = vadd.f32 %v1658_v23, %v1454_v55  ;;  %v4577_v32 = vpop.eup %4576  ;;  %9008 = vst [vmem:[#allocation157_spill] sm:$0xff] %v7510_v20  ;;  %v2052_v24 = vadd.f32 1.0, %v4575_v62  ;;  %4596 = vtanh.f32 %v7428_v26  ;;  %3104 = vrot.lane.b32.xlu1 %v9009_v31, %s4781_s9  ;;  %v9011_v55 = vld [vmem:[#allocation98_spill] sm:$0xff]  ;;  %v2238_v23 = vsel %vm2200_vm7, %v2177_v57, -inf }
 0x35e   :  { %2423 = vrot.lane.b32.xlu0 %v9010_v25, %s4780_s8  ;;  %v4579_v18 = vpop.eup %4578  ;;  %v7519_v39 = vadd.f32 %v6997_v21, %v9011_v55  ;;  %v2859_v50 = vmul.f32 %v4577_v32, %v6941_v9  ;;  %4598 = vtanh.f32 %v7500_v8  ;;  %v7526_v62 = vadd.f32 %v7115_v13, %v9012_v2  ;;  %v9013_v9 = vld [vmem:[#allocation81_spill] sm:$0xff]  ;;  %v9018_v2 = vld [vmem:[#allocation232_spill] sm:$0xff] }
 0x35f   :  { %v4581_v11 = vpop.eup %4580  ;;  %4600 = vrcp.f32 %v2052_v24  ;;  %v2778_v4 = vadd.f32 1.0, %v4579_v18  ;;  %v2370_v31 = vpop.permute.xlu1 %2369  ;;  %v7537_v13 = vadd.f32 %v7117_v19, %v9014_v44  ;;  %v7541_v24 = vadd.f32 %v7129_v63, %v9015_v7  ;;  %v9022_v19 = vld [vmem:[#allocation114_spill] sm:$0xff] }
 0x360   :  { %v1686_v25 = vpop.permute.xlu0 %1685  ;;  %v4583_v41 = vpop.eup %4582  ;;  %v2933_v21 = vsel %vm2923_vm12, %v2859_v50, -inf  ;;  %4602 = vtanh.f32 %v7502_v35  ;;  %v7531_v32 = vadd.f32 %v2370_v31, %v9013_v9  ;;  %v9017_v50 = vld [vmem:[#allocation231_spill] sm:$0xff]  ;;  %v7555_v44 = vadd.f32 %v7259_v14, %v9022_v19 }
 0x361   :  { %v7533_v57 = vadd.f32 %v1686_v25, %v1468_v49  ;;  %v4585_v55 = vpop.eup %4584  ;;  %9016 = vst [vmem:[#allocation159_spill] sm:$0xff] %v7541_v24  ;;  %4604 = vrcp.f32 %v2778_v4  ;;  %v2935_v18 = vmax.f32 %v2933_v21, %v2934_v40  ;;  %3132 = vrot.lane.b32.xlu1 %v9017_v50, %s4781_s9  ;;  %v9020_v49 = vld [vmem:[#allocation115_spill] sm:$0xff]  ;;  %v3501_v4 = vadd.f32 1.0, %v4583_v41 }
 0x362   :  { %3110 = vrot.lane.b32.xlu0 %v9018_v2, %s4781_s9  ;;  %v7547_v31 = vpop.eup %4586  ;;  %v7551_v25 = vadd.f32 %v7131_v27, %v9020_v49  ;;  %9023 = vst [vmem:[#allocation162_spill] sm:$0xff] %v7555_v44  ;;  %v2857_v63 = vmul.f32 %v4585_v55, %v6889_v51  ;;  %4606 = vtanh.f32 %v7531_v32  ;;  %v3500_v21 = vadd.f32 1.0, %v4581_v11  ;;  %v9024_v11 = vld [vmem:[#allocation84_spill] sm:$0xff]  ;;  %v9025_v19 = vld [vmem:[#allocation55_spill] sm:$0xff] }
 0x363   :  { %9019 = vst [vmem:[#allocation160_spill] sm:$0xff] %v7547_v31  ;;  %v4589_v40 = vpop.eup %4588  ;;  %4608 = vrcp.f32 %v2777_v29  ;;  %v2936_v9 = vrot.slane %v2935_v18, 4  ;;  %v2394_v7 = vpop.permute.xlu1 %2393 }
 0x364   :  { %9021 = vst [vmem:[#allocation161_spill] sm:$0xff] %v7551_v25  ;;  %v2376_v50 = vpop.permute.xlu0 %2375  ;;  %v4591_v2 = vpop.eup %4590  ;;  %v2924_v31 = vsel %vm2923_vm12, %v2857_v63, -inf  ;;  %v2862_v27 = vmul.f32 %v4589_v40, %v7042_v48  ;;  %4610 = vtanh.f32 %v7533_v57  ;;  %v7563_v14 = vadd.f32 %v2394_v7, %v7376_v34  ;;  %v9027_v48 = vld [vmem:[#allocation123_spill] sm:$0xff] }
 0x365   :  { %v4593_v51 = vpop.eup %4592  ;;  %v2937_v55 = vmax.f32 %v2935_v18, %v2936_v9  ;;  %v2926_v49 = vmax.f32 %v2924_v31, %v7433_v46  ;;  %v2139_v41 = vmul.f32 %v4591_v2, %v7187_v52  ;;  %v7568_v29 = vadd.f32 %v2376_v50, %v9024_v11  ;;  %2421 = vrot.lane.b32.xlu1 %v9025_v19, %s4780_s8  ;;  %v9028_v52 = vld [vmem:[#allocation234_spill] sm:$0xff] }
 0x366   :  { %v7572_v63 = vpop.eup %4594  ;;  %v7576_v40 = vadd.f32 %v7287_v0, %v9027_v48  ;;  %v2896_v34 = vsel %vm2890_vm11, %v2862_v27, -1e+30  ;;  %v2876_v18 = vmul.f32 %v4593_v51, %v6900_v28  ;;  %4612 = vtanh.f32 %v7563_v14  ;;  %3138 = vrot.lane.b32.xlu0 %v9028_v52, %s4781_s9  ;;  %v9029_v28 = vld [vmem:[#allocation67_spill] sm:$0xff] }
 0x367   :  { %9026 = vst [vmem:[#allocation158_spill] sm:$0xff] %v7572_v63  ;;  %v4597_v46 = vpop.eup %4596  ;;  %4614 = vrcp.f32 %v3500_v21  ;;  %v2938_v31 = vrot.slane %v2937_v55, 2  ;;  %v2927_v9 = vrot.slane %v2926_v49, 4  ;;  %v2237_v7 = vsel %vm2200_vm7, %v2139_v41, -inf  ;;  %v2404_v50 = vpop.permute.xlu1 %2403  ;;  %v9030_v41 = vld [vmem:[#allocation236_spill] sm:$0xff] }
 0x368   :  { %v2398_v2 = vpop.permute.xlu0 %2397  ;;  %v4599_v0 = vpop.eup %4598  ;;  %v2273_v11 = vsel %vm2200_vm7, %v7483_v59, -inf  ;;  %v2239_v27 = vmax.f32 %v2237_v7, %v2238_v23  ;;  %4616 = vtanh.f32 %v7568_v29  ;;  %v7589_v51 = vadd.f32 %v2404_v50, %v9029_v28  ;;  %v9032_v28 = vld [vmem:[#allocation61_spill] sm:$0xff] }
 0x369   :  { %v4601_v19 = vpop.eup %4600  ;;  %4618 = vrcp.f32 %v3501_v4  ;;  %v2928_v48 = vmax.f32 %v2926_v49, %v2927_v9  ;;  %v2943_v21 = vsel %vm2923_vm12, %v2896_v34, -inf  ;;  %v2153_v52 = vmul.f32 %v4599_v0, %v7016_v45  ;;  %3114 = vrot.lane.b32.xlu1 %v9030_v41, %s4781_s9  ;;  %v9031_v4 = vld [vmem:[#allocation233_spill] sm:$0xff] }
 0x36a   :  { %v4603_v63 = vpop.eup %4602  ;;  %v2148_v25 = vmul.f32 %v4601_v19, %v7477_v10  ;;  %v7596_v59 = vmax.f32 %v2937_v55, %v2938_v31  ;;  %v2910_v23 = vsel %vm2890_vm11, %v2876_v18, -1e+30  ;;  %4620 = vtanh.f32 %v7589_v51  ;;  %3108 = vrot.lane.b32.xlu0 %v9031_v4, %s4781_s9 }
 0x36b   :  { %v4605_v49 = vpop.eup %4604  ;;  %v2929_v34 = vrot.slane %v2928_v48, 2  ;;  %v2240_v9 = vrot.slane %v2239_v27, 4  ;;  %v2300_v45 = vsel %vm2200_vm7, %v2153_v52, -inf  ;;  %v2142_v7 = vmul.f32 %v4603_v63, %v7292_v36  ;;  %v3091_v50 = vpop.permute.xlu1 %3090  ;;  %v9033_v63 = vld [vmem:[#allocation51_spill] sm:$0xff] }
 0x36c   :  { %v3087_v0 = vpop.permute.xlu0 %3086  ;;  %v4607_v10 = vpop.eup %4606  ;;  %v2185_v55 = vsel %vm2167_vm2, %v2148_v25, -1e+30  ;;  %v2874_v31 = vmul.f32 %v4605_v49, %v4597_v46  ;;  %v2302_v18 = vmax.f32 %v2300_v45, %v7494_v3  ;;  %v7609_v19 = vadd.f32 %v2398_v2, %v9032_v28  ;;  %v9034_v49 = vld [vmem:[#allocation235_spill] sm:$0xff] }
 0x36d   :  { %v4609_v41 = vpop.eup %4608  ;;  %v2274_v4 = vsel %vm2200_vm7, %v2185_v55, -inf  ;;  %v2930_v24 = vmax.f32 %v2928_v48, %v2929_v34  ;;  %v2179_v52 = vsel %vm2167_vm2, %v2142_v7, -1e+30  ;;  %v2861_v36 = vmul.f32 %v4607_v10, %v7035_v6  ;;  %3142 = vrot.lane.b32.xlu1 %v9033_v63, %s4781_s9 }
 0x36e   :  { %v4611_v44 = vpop.eup %4610  ;;  %v2275_v25 = vmax.f32 %v2273_v11, %v2274_v4  ;;  %v7619_v3 = vsel %vm2923_vm12, %v2910_v23, -inf  ;;  %v2303_v2 = vrot.slane %v2302_v18, 4  ;;  %3136 = vrot.lane.b32.xlu0 %v9034_v49, %s4781_s9  ;;  %v2908_v48 = vsel %vm2890_vm11, %v2874_v31, -1e+30  ;;  %v9037_v49 = vld [vmem:[#allocation62_spill] sm:$0xff] }
 0x36f   :  { %v7625_v34 = vmax.f32 %v2239_v27, %v2240_v9  ;;  %v2942_v6 = vsel %vm2923_vm12, %v2861_v36, -inf  ;;  %v2156_v45 = vmul.f32 %v4611_v44, %v7096_v15  ;;  %v1662_v7 = vpop.permute.xlu1 %1661  ;;  %v2931_v55 = vrot.slane %v2930_v24, 1  ;;  %v9036_v27 = vld [vmem:[#allocation72_spill] sm:$0xff]  ;;  %v9038_v15 = vld [vmem:[#allocation59_spill] sm:$0xff] }
 0x370   :  { %v1656_v11 = vpop.permute.xlu0 %1655  ;;  %v4613_v10 = vpop.eup %4612  ;;  %v7630_v23 = vsel %vm2200_vm7, %v2179_v52, -inf  ;;  %v2944_v28 = vmax.f32 %v2942_v6, %v2943_v21  ;;  %4622 = vtanh.f32 %v7609_v19  ;;  %v2276_v63 = vrot.slane %v2275_v25, 4  ;;  %v9039_v6 = vld [vmem:[#allocation237_spill] sm:$0xff] }
 0x371   :  { %v7633_v4 = vpop.eup %4614  ;;  %v2873_v31 = vmul.f32 %v4613_v10, %v4609_v41  ;;  %v3183_v9 = vadd.f32 %v3091_v50, %v9036_v27  ;;  %v3181_v36 = vadd.f32 %v3087_v0, %v9037_v49  ;;  %3140 = vrot.lane.b32.xlu1 %v9038_v15, %s4781_s9  ;;  %v2997_v46 = vsel %vm2923_vm12, %v2908_v48, -inf }
 0x372   :  { %9035 = vst [vmem:[#allocation163_spill] sm:$0xff] %v7633_v4  ;;  %v4617_v44 = vpop.eup %4616  ;;  %v2304_v20 = vmax.f32 %v2302_v18, %v2303_v2  ;;  %v2945_v52 = vrot.slane %v2944_v28, 4  ;;  %v2193_v21 = vsel %vm2167_vm2, %v2156_v45, -1e+30  ;;  %3112 = vrot.lane.b32.xlu0 %v9039_v6, %s4781_s9  ;;  %v7649_v41 = vadd.f32 %v1662_v7, %v7526_v62  ;;  %v9040_v62 = vld [vmem:[#allocation238_spill] sm:$0xff] }
 0x373   :  { %v7644_v4 = vpop.eup %4618  ;;  %v2996_v50 = vsel %vm2923_vm12, %v2873_v31, -inf  ;;  %v2864_v0 = vmul.f32 %v4617_v44, %v7113_v33  ;;  %4624 = vtanh.f32 %v3183_v9  ;;  %v1690_v10 = vpop.permute.xlu1 %1689  ;;  %v7652_v45 = vadd.f32 %v1656_v11, %v7506_v54  ;;  %v9041_v54 = vld [vmem:[#allocation239_spill] sm:$0xff]  ;;  %v9042_v44 = vld [vmem:[#allocation109_spill] sm:$0xff] }
 0x374   :  { %v1684_v48 = vpop.permute.xlu0 %1683  ;;  %v4621_v18 = vpop.eup %4620  ;;  %v2946_v2 = vmax.f32 %v2944_v28, %v2945_v52  ;;  %v2998_v27 = vmax.f32 %v2996_v50, %v2997_v46  ;;  %4626 = vtanh.f32 %v3181_v36  ;;  %v7654_v49 = vmax.f32 %v2275_v25, %v2276_v63  ;;  %v9044_v50 = vld [vmem:[#allocation83_spill] sm:$0xff] }
 0x375   :  { %v2878_v15 = vmul.f32 %v4621_v18, %v6974_v37  ;;  %4628 = vtanh.f32 %v7649_v41  ;;  %v7660_v33 = vadd.f32 %v1690_v10, %v7498_v5  ;;  %3144 = vrot.lane.b32.xlu1 %v9040_v62, %s4781_s9  ;;  %v2305_v7 = vrot.slane %v2304_v20, 2 }
 0x376   :  { %v2947_v46 = vrot.slane %v2946_v2, 2  ;;  %v2999_v28 = vrot.slane %v2998_v27, 4  ;;  %4630 = vtanh.f32 %v7652_v45  ;;  %3146 = vrot.lane.b32.xlu0 %v9041_v54, %s4781_s9  ;;  %v2898_v37 = vsel %vm2890_vm11, %v2864_v0, -1e+30 }
 0x377   :  { %4632 = vtanh.f32 %v7660_v33  ;;  %v7671_v5 = vadd.f32 %v1684_v48, %v7467_v12  ;;  %v2380_v25 = vpop.permute.xlu1 %2379  ;;  %v2932_v63 = vmax.f32 %v2930_v24, %v2931_v55  ;;  %v2912_v36 = vsel %vm2890_vm11, %v2878_v15, -1e+30 }
 0x378   :  { %v2374_v11 = vpop.permute.xlu0 %2373  ;;  %v2948_v31 = vmax.f32 %v2946_v2, %v2947_v46  ;;  %v3000_v9 = vmax.f32 %v2998_v27, %v2999_v28  ;;  %v7676_v52 = vadd.f32 %v2380_v25, %v9042_v44  ;;  %v7679_v6 = vsel %vm2200_vm7, %v2193_v21, -inf  ;;  %v9046_v2 = vld [vmem:[#allocation87_spill] sm:$0xff] }
 0x379   :  { %4634 = vtanh.f32 %v7671_v5  ;;  %v7683_v0 = vadd.f32 %v2374_v11, %v9044_v50  ;;  %v9045_v12 = vrot.slane %v7596_v59, 1  ;;  %v7689_v48 = vsel %vm2923_vm12, %v2898_v37, -inf  ;;  %v9047_v28 = vld [vmem:[#allocation99_spill] sm:$0xff]  ;;  %v9048_v37 = vld [vmem:[#allocation73_spill] sm:$0xff] }
 0x37a   :  { %9043 = vst [vmem:[#allocation164_spill] sm:$0xff] %v7676_v52  ;;  %v4623_v55 = vpop.eup %4622  ;;  %v3001_v10 = vrot.slane %v3000_v9, 2  ;;  %4636 = vtanh.f32 %v7676_v52  ;;  %v2949_v18 = vrot.slane %v2948_v31, 1  ;;  %v7693_v21 = vsel %vm2923_vm12, %v2912_v36, -inf }
 0x37b   :  { %v2941_v24 = vmax.f32 %v7596_v59, %v9045_v12  ;;  %v2875_v27 = vmul.f32 %v4623_v55, %v9046_v2  ;;  %4638 = vtanh.f32 %v7683_v0  ;;  %v2408_v15 = vpop.permute.xlu1 %2407  ;;  %v2242_v50 = vrot.slane %v7625_v34, 2 }
 0x37c   :  { %v2402_v62 = vpop.permute.xlu0 %2401  ;;  %v3002_v59 = vmax.f32 %v3000_v9, %v3001_v10  ;;  %v7699_v54 = vadd.f32 %v2408_v15, %v9047_v28  ;;  %v2950_v11 = vmax.f32 %v2948_v31, %v2949_v18  ;;  %v2278_v12 = vrot.slane %v7654_v49, 2  ;;  %v9049_v9 = vld [vmem:[#allocation104_spill] sm:$0xff] }
 0x37d   :  { %v3846_v46 = vsel %vm3807_vm8, %v2941_v24, %v2932_v63  ;;  %v7702_v25 = vadd.f32 %v2402_v62, %v9048_v37  ;;  %v4625_v44 = vpop.eup %4624  ;;  %v3005_v36 = vsel %vm2923_vm12, %v2875_v27, -inf  ;;  %v7707_v55 = vmax.f32 %v2304_v20, %v2305_v7  ;;  %v9050_v15 = vld [vmem:[#allocation88_spill] sm:$0xff] }
 0x37e   :  { %v4627_v2 = vpop.eup %4626  ;;  %v3003_v52 = vrot.slane %v3002_v59, 1  ;;  %v3007_v63 = vmax.f32 %v3005_v36, %v7619_v3  ;;  %v3583_v24 = vmul.f32 %v4625_v44, %v9049_v9  ;;  %4640 = vtanh.f32 %v7699_v54 }
 0x37f   :  { %v4629_v10 = vpop.eup %4628  ;;  %v3581_v31 = vmul.f32 %v4627_v2, %v9050_v15  ;;  %4642 = vtanh.f32 %v7702_v25  ;;  %v3089_v18 = vpop.permute.xlu1 %3088  ;;  %v7715_v62 = vsel %vm3809_vm9, %v2950_v11, %v3846_v46  ;;  %v7718_v20 = vmax.f32 %v7625_v34, %v2242_v50 }
 0x380   :  { %v3085_v27 = vpop.permute.xlu0 %3084  ;;  %v4631_v7 = vpop.eup %4630  ;;  %v3008_v28 = vrot.slane %v3007_v63, 4  ;;  %v3617_v3 = vsel %vm3613_vm13, %v3583_v24, -1e+30  ;;  %v2144_v37 = vmul.f32 %v4629_v10, %v7360_v53  ;;  %v3182_v44 = vadd.f32 %v3089_v18, %v7408_v30 }
 0x381   :  { %v4633_v36 = vpop.eup %4632  ;;  %v7725_v2 = vsel %vm3646_vm14, %v3617_v3, -inf  ;;  %v3615_v46 = vsel %vm3613_vm13, %v3581_v31, -1e+30  ;;  %v2141_v11 = vmul.f32 %v4631_v7, %v7302_v22  ;;  %v3180_v34 = vadd.f32 %v3085_v27, %v7421_v17 }
 0x382   :  { %v3009_v50 = vmax.f32 %v3007_v63, %v3008_v28  ;;  %v7732_v9 = vsel %vm3646_vm14, %v3615_v46, -inf  ;;  %v2181_v53 = vsel %vm2167_vm2, %v2144_v37, -1e+30  ;;  %v2158_v30 = vmul.f32 %v4633_v36, %v7210_v42  ;;  %v9051_v28 = vld [vmem:[#allocation113_spill] sm:$0xff] }
 0x383   :  { %v4635_v24 = vpop.eup %4634  ;;  %v7738_v10 = vsel %vm2200_vm7, %v2181_v53, -inf  ;;  %v2246_v15 = vsel %vm2200_vm7, %v2141_v11, -inf  ;;  %4644 = vtanh.f32 %v3182_v44  ;;  %v3119_v31 = vpop.permute.xlu1 %3118  ;;  %v3004_v18 = vmax.f32 %v3002_v59, %v3003_v52  ;;  %v9052_v11 = vld [vmem:[#allocation17_spill] sm:$0xff] }
 0x384   :  { %v3095_v22 = vpop.permute.xlu0 %3094  ;;  %v4637_v17 = vpop.eup %4636  ;;  %v3010_v63 = vrot.slane %v3009_v50, 2  ;;  %v2248_v27 = vmax.f32 %v2246_v15, %v7630_v23  ;;  %v2195_v7 = vsel %vm2167_vm2, %v2158_v30, -1e+30  ;;  %v2155_v3 = vmul.f32 %v4635_v24, %v9051_v28  ;;  %v9053_v28 = vld [vmem:[#allocation107_spill] sm:$0xff] }
 0x385   :  { %v4639_v42 = vpop.eup %4638  ;;  %v7746_v37 = vsel %vm2200_vm7, %v2195_v7, -inf  ;;  %v2866_v36 = vmul.f32 %v4637_v17, %v7207_v58  ;;  %4646 = vtanh.f32 %v3180_v34  ;;  %v3197_v44 = vadd.f32 %v3119_v31, %v7428_v26 }
 0x386   :  { %v3011_v46 = vmax.f32 %v3009_v50, %v3010_v63  ;;  %v2249_v52 = vrot.slane %v2248_v27, 4  ;;  %v2309_v59 = vsel %vm2200_vm7, %v2155_v3, -inf  ;;  %v2863_v23 = vmul.f32 %v4639_v42, %v9052_v11  ;;  %v9054_v42 = vld [vmem:[#allocation105_spill] sm:$0xff] }
 0x387   :  { %v2311_v53 = vmax.f32 %v2309_v59, %v7679_v6  ;;  %v2900_v30 = vsel %vm2890_vm11, %v2866_v36, -1e+30  ;;  %4648 = vtanh.f32 %v3197_v44  ;;  %v3185_v24 = vadd.f32 %v3095_v22, %v7436_v61  ;;  %v1660_v15 = vpop.permute.xlu1 %1659  ;;  %v3907_v61 = vld [vmem:[%s8282_s2] sm:$0xff]  ;;  %v3908_v22 = vld [vmem:[%s8282_s2 + $0x8] sm:$0xff] }
 0x388   :  { %v3123_v7 = vpop.permute.xlu0 %3122  ;;  %v4641_v58 = vpop.eup %4640  ;;  %v3012_v34 = vrot.slane %v3011_v46, 1  ;;  %v7757_v26 = vsel %vm2923_vm12, %v2900_v30, -inf  ;;  %v2951_v50 = vsel %vm2923_vm12, %v2863_v23, -inf  ;;  %v7761_v31 = vadd.f32 %v1660_v15, %v7537_v13 }
 0x389   :  { %v4643_v17 = vpop.eup %4642  ;;  %v2312_v6 = vrot.slane %v2311_v53, 4  ;;  %v2953_v63 = vmax.f32 %v2951_v50, %v7689_v48  ;;  %v2880_v3 = vmul.f32 %v4641_v58, %v9053_v28  ;;  %4650 = vtanh.f32 %v3185_v24 }
 0x38a   :  { %v2877_v36 = vmul.f32 %v4643_v17, %v9054_v42  ;;  %4652 = vtanh.f32 %v7761_v31  ;;  %v3199_v13 = vadd.f32 %v3123_v7, %v7463_v16  ;;  %v3013_v44 = vmax.f32 %v3011_v46, %v3012_v34  ;;  %v9055_v17 = vld [vmem:[#allocation100_spill] sm:$0xff]  ;;  %v9056_v42 = vld [vmem:[#allocation89_spill] sm:$0xff] }
 0x38b   :  { %v7774_v59 = vmax.f32 %v2311_v53, %v2312_v6  ;;  %v2954_v48 = vrot.slane %v2953_v63, 4  ;;  %v2914_v11 = vsel %vm2890_vm11, %v2880_v3, -1e+30  ;;  %v1688_v23 = vpop.permute.xlu1 %1687  ;;  %v4150_v24 = vpack.c.bf16 %v3908_v22, %v3907_v61 }
 0x38c   :  { %v1666_v30 = vpop.permute.xlu0 %1665  ;;  %v7779_v15 = vsel %vm2923_vm12, %v2914_v11, -inf  ;;  %v3014_v58 = vsel %vm2923_vm12, %v2877_v36, -inf  ;;  %4654 = vtanh.f32 %v3199_v13  ;;  %v7783_v50 = vadd.f32 %v1688_v23, %v7488_v60 }
 0x38d   :  { %v4645_v16 = vpop.eup %4644  ;;  %v2955_v46 = vmax.f32 %v2953_v63, %v2954_v48  ;;  %v3016_v53 = vmax.f32 %v3014_v58, %v7693_v21  ;;  %v7787_v7 = vadd.f32 %v1666_v30, %v7576_v40  ;;  %v7790_v34 = vsel %vm3807_vm8, %v3013_v44, %v3004_v18  ;;  %4151 = vmatprep.subr.bf16.mxu1 %v4150_v24 }
 0x38e   :  { %v3582_v6 = vmul.f32 %v4645_v16, %v9055_v17  ;;  %4656 = vtanh.f32 %v7783_v50  ;;  %4153 = vmatpush3.bf16.msra.mxu1 %v4150_v24  ;;  %v2244_v28 = vrot.slane %v7718_v20, 1  ;;  %v7795_v60 = vmax.f32 %v2248_v27, %v2249_v52 }
 0x38f   :  { %v4647_v3 = vpop.eup %4646  ;;  %v2956_v63 = vrot.slane %v2955_v46, 2  ;;  %v3017_v61 = vrot.slane %v3016_v53, 4  ;;  %4658 = vtanh.f32 %v7787_v7  ;;  %v2378_v40 = vpop.permute.xlu1 %2377  ;;  %v7801_v18 = vmax.f32 %v7654_v49, %v2278_v12 }
 0x390   :  { %v1694_v21 = vpop.permute.xlu0 %1693  ;;  %v3656_v22 = vsel %vm3646_vm14, %v3582_v6, -inf  ;;  %v3580_v36 = vmul.f32 %v4647_v3, %v9056_v42  ;;  %v7806_v13 = vadd.f32 %v2378_v40, %v7460_v47  ;;  %v7813_v23 = vmax.f32 %v7718_v20, %v2244_v28 }
 0x391   :  { %v7809_v27 = vadd.f32 %v1694_v21, %v7519_v39  ;;  %v4649_v52 = vpop.eup %4648  ;;  %v3018_v44 = vmax.f32 %v3016_v53, %v3017_v61  ;;  %v3658_v48 = vmax.f32 %v3656_v22, %v7725_v2  ;;  %v2957_v11 = vmax.f32 %v2955_v46, %v2956_v63  ;;  %v9057_v53 = vld [vmem:[#allocation106_spill] sm:$0xff] }
 0x392   :  { %v3647_v49 = vsel %vm3646_vm14, %v3580_v36, -inf  ;;  %v3597_v12 = vmul.f32 %v4649_v52, %v7644_v4  ;;  %4660 = vtanh.f32 %v7806_v13  ;;  %v2251_v47 = vrot.slane %v7795_v60, 2  ;;  %v9058_v36 = vld [vmem:[#allocation90_spill] sm:$0xff] }
 0x393   :  { %v4651_v30 = vpop.eup %4650  ;;  %v3019_v24 = vrot.slane %v3018_v44, 2  ;;  %v3659_v39 = vrot.slane %v3658_v48, 4  ;;  %v3649_v58 = vmax.f32 %v3647_v49, %v7732_v9  ;;  %4662 = vtanh.f32 %v7809_v27  ;;  %v2406_v2 = vpop.permute.xlu1 %2405 }
 0x394   :  { %v2384_v16 = vpop.permute.xlu0 %2383  ;;  %v4653_v46 = vpop.eup %4652  ;;  %v3631_v20 = vsel %vm3613_vm13, %v3597_v12, -1e+30  ;;  %v3585_v17 = vmul.f32 %v4651_v30, %v9057_v53  ;;  %v7825_v4 = vadd.f32 %v2406_v2, %v7500_v8  ;;  %v2958_v22 = vrot.slane %v2957_v11, 1 }
 0x395   :  { %v7828_v6 = vadd.f32 %v2384_v16, %v7502_v35  ;;  %v3020_v28 = vmax.f32 %v3018_v44, %v3019_v24  ;;  %v3660_v3 = vmax.f32 %v3658_v48, %v3659_v39  ;;  %v3650_v63 = vrot.slane %v3649_v58, 4 }
 0x396   :  { %v7831_v9 = vsel %vm3646_vm14, %v3631_v20, -inf  ;;  %v4655_v61 = vpop.eup %4654  ;;  %v3619_v40 = vsel %vm3613_vm13, %v3585_v17, -1e+30  ;;  %v2143_v21 = vmul.f32 %v4653_v46, %v7373_v43  ;;  %4664 = vtanh.f32 %v7825_v4  ;;  %v9059_v20 = vld [vmem:[#allocation21_spill] sm:$0xff] }
 0x397   :  { %v3661_v8 = vrot.slane %v3660_v3, 2  ;;  %v3651_v42 = vmax.f32 %v3649_v58, %v3650_v63  ;;  %v7838_v35 = vsel %vm3646_vm14, %v3619_v40, -inf  ;;  %v3599_v52 = vmul.f32 %v4655_v61, %v9058_v36  ;;  %v3093_v44 = vpop.permute.xlu1 %3092 }
 0x398   :  { %v2412_v48 = vpop.permute.xlu0 %2411  ;;  %v4657_v49 = vpop.eup %4656  ;;  %v2255_v12 = vsel %vm2200_vm7, %v2143_v21, -inf  ;;  %4666 = vtanh.f32 %v7828_v6  ;;  %v3184_v30 = vadd.f32 %v3093_v44, %v7531_v32  ;;  %v2959_v61 = vmax.f32 %v2957_v11, %v2958_v22 }
 0x399   :  { %v7845_v43 = vadd.f32 %v2412_v48, %v7533_v57  ;;  %v4659_v24 = vpop.eup %4658  ;;  %v3662_v39 = vmax.f32 %v3660_v3, %v3661_v8  ;;  %v3652_v58 = vrot.slane %v3651_v42, 2  ;;  %v2257_v2 = vmax.f32 %v2255_v12, %v7738_v10  ;;  %v9060_v48 = vld [vmem:[#allocation129_spill] sm:$0xff] }
 0x39a   :  { %v3633_v16 = vsel %vm3613_vm13, %v3599_v52, -1e+30  ;;  %v2157_v53 = vmul.f32 %v4657_v49, %v9059_v20  ;;  %v2146_v17 = vmul.f32 %v4659_v24, %v7425_v1  ;;  %4668 = vtanh.f32 %v3184_v30 }
 0x39b   :  { %v7851_v46 = vsel %vm3646_vm14, %v3633_v16, -inf  ;;  %v3663_v32 = vrot.slane %v3662_v39, 1  ;;  %v3653_v63 = vmax.f32 %v3651_v42, %v3652_v58  ;;  %4670 = vtanh.f32 %v7845_v43  ;;  %v3117_v57 = vpop.permute.xlu1 %3116 }
 0x39c   :  { %v3099_v3 = vpop.permute.xlu0 %3098  ;;  %v4661_v40 = vpop.eup %4660  ;;  %v2318_v10 = vsel %vm2200_vm7, %v2157_v53, -inf  ;;  %v7859_v21 = vsel %vm2167_vm2, %v2146_v17, -1e+30  ;;  %v3196_v8 = vadd.f32 %v3117_v57, %v7563_v14  ;;  %v7870_v22 = vsel %vm3811_vm10, %v2959_v61, %v7715_v62  ;;  %v9061_v53 = vld [vmem:[#allocation110_spill] sm:$0xff] }
 0x39d   :  { %v3187_v36 = vadd.f32 %v3099_v3, %v7568_v29  ;;  %v4663_v1 = vpop.eup %4662  ;;  %v3664_v52 = vmax.f32 %v3662_v39, %v3663_v32  ;;  %v3654_v44 = vrot.slane %v3653_v63, 1  ;;  %v7864_v42 = vmax.f32 %v2318_v10, %v7746_v37 }
 0x39e   :  { %v2865_v49 = vmul.f32 %v4661_v40, %v9060_v48  ;;  %v2160_v11 = vmul.f32 %v4663_v1, %v7315_v56  ;;  %4672 = vtanh.f32 %v3196_v8  ;;  %v3021_v12 = vrot.slane %v3020_v28, 1 }
 0x39f   :  { %v3655_v30 = vmax.f32 %v3653_v63, %v3654_v44  ;;  %v2321_v14 = vrot.slane %v7864_v42, 4  ;;  %4674 = vtanh.f32 %v3187_v36  ;;  %v3127_v24 = vpop.permute.xlu1 %3126  ;;  %v2258_v61 = vrot.slane %v2257_v2, 4  ;;  %v9063_v44 = vld [vmem:[#allocation157_spill] sm:$0xff] }
 0x3a0   :  { %v2960_v29 = vsel %vm2923_vm12, %v2865_v49, -inf  ;;  %v3121_v39 = vpop.permute.xlu0 %3120  ;;  %v4665_v37 = vpop.eup %4664  ;;  %v2197_v56 = vsel %vm2167_vm2, %v2160_v11, -1e+30  ;;  %v3201_v16 = vadd.f32 %v3127_v24, %v7589_v51  ;;  %v3022_v32 = vmax.f32 %v3020_v28, %v3021_v12  ;;  %v9065_v12 = vld [vmem:[#allocation108_spill] sm:$0xff] }
 0x3a1   :  { %v2962_v58 = vmax.f32 %v2960_v29, %v7757_v26  ;;  %v3198_v62 = vadd.f32 %v3121_v39, %v7609_v19  ;;  %v7880_v20 = vsel %vm2200_vm7, %v2197_v56, -inf  ;;  %v2879_v17 = vmul.f32 %v4665_v37, %v9061_v53  ;;  %v9062_v19 = vld [vmem:[#allocation138_spill] sm:$0xff] }
 0x3a2   :  { %v7884_v63 = vsel %vm3807_vm8, %v3664_v52, %v3655_v30  ;;  %v4667_v57 = vpop.eup %4666  ;;  %4676 = vtanh.f32 %v3201_v16  ;;  %v2252_v26 = vmax.f32 %v7795_v60, %v2251_v47  ;;  %v7893_v28 = vsel %vm3809_vm9, %v3022_v32, %v7790_v34  ;;  %v9064_v60 = vld [vmem:[#allocation162_spill] sm:$0xff] }
 0x3a3   :  { %v2963_v3 = vrot.slane %v2962_v58, 4  ;;  %v3023_v51 = vsel %vm2923_vm12, %v2879_v17, -inf  ;;  %v2868_v40 = vmul.f32 %v4667_v57, %v9062_v19  ;;  %4678 = vtanh.f32 %v3198_v62  ;;  %v1692_v10 = vpop.permute.xlu1 %1691  ;;  %v9067_v19 = vld [vmem:[#allocation163_spill] sm:$0xff] }
 0x3a4   :  { %v1664_v8 = vpop.permute.xlu0 %1663  ;;  %v4669_v36 = vpop.eup %4668  ;;  %v3025_v52 = vmax.f32 %v3023_v51, %v7779_v15  ;;  %v7897_v48 = vadd.f32 %v1692_v10, %v9063_v44  ;;  %v2253_v29 = vrot.slane %v2252_v26, 1  ;;  %v7905_v24 = vmax.f32 %v2257_v2, %v2258_v61  ;;  %v9066_v15 = vld [vmem:[#allocation117_spill] sm:$0xff]  ;;  %v9068_v10 = vld [vmem:[#allocation159_spill] sm:$0xff]  ;;  %v9069_v44 = vld [vmem:[#allocation118_spill] sm:$0xff] }
 0x3a5   :  { %v2964_v1 = vmax.f32 %v2962_v58, %v2963_v3  ;;  %v7900_v47 = vadd.f32 %v1664_v8, %v9064_v60  ;;  %v4671_v49 = vpop.eup %4670  ;;  %v2902_v11 = vsel %vm2890_vm11, %v2868_v40, -1e+30  ;;  %v3584_v30 = vmul.f32 %v4669_v36, %v9065_v12 }
 0x3a6   :  { %v3026_v34 = vrot.slane %v3025_v52, 4  ;;  %v7908_v39 = vsel %vm2923_vm12, %v2902_v11, -inf  ;;  %v2882_v37 = vmul.f32 %v4671_v49, %v9066_v15  ;;  %4680 = vtanh.f32 %v7897_v48 }
 0x3a7   :  { %v3665_v58 = vsel %vm3646_vm14, %v3584_v30, -inf  ;;  %4682 = vtanh.f32 %v7900_v47  ;;  %v2382_v56 = vpop.permute.xlu1 %2381  ;;  %v2965_v62 = vrot.slane %v2964_v1, 2  ;;  %v7914_v53 = vmax.f32 %v2252_v26, %v2253_v29 }
 0x3a8   :  { %v1698_v16 = vpop.permute.xlu0 %1697  ;;  %v4673_v2 = vpop.eup %4672  ;;  %v3027_v17 = vmax.f32 %v3025_v52, %v3026_v34  ;;  %v3667_v32 = vmax.f32 %v3665_v58, %v7838_v35  ;;  %v2916_v57 = vsel %vm2890_vm11, %v2882_v37, -1e+30  ;;  %v7920_v3 = vadd.f32 %v2382_v56, %v7652_v45  ;;  %v9070_v56 = vld [vmem:[#allocation96_spill] sm:$0xff] }
 0x3a9   :  { %v4675_v61 = vpop.eup %4674  ;;  %v7923_v51 = vsel %vm2923_vm12, %v2916_v57, -inf  ;;  %v3596_v40 = vmul.f32 %v4673_v2, %v9067_v19  ;;  %v7927_v8 = vadd.f32 %v1698_v16, %v9068_v10  ;;  %v2966_v26 = vmax.f32 %v2964_v1, %v2965_v62 }
 0x3aa   :  { %v3028_v36 = vrot.slane %v3027_v17, 2  ;;  %v3668_v52 = vrot.slane %v3667_v32, 4  ;;  %v3587_v35 = vmul.f32 %v4675_v61, %v9069_v44  ;;  %4684 = vtanh.f32 %v7920_v3  ;;  %v9071_v61 = vld [vmem:[#allocation95_spill] sm:$0xff] }
 0x3ab   :  { %v3719_v60 = vsel %vm3646_vm14, %v3596_v40, -inf  ;;  %4686 = vtanh.f32 %v7927_v8  ;;  %v2410_v45 = vpop.permute.xlu1 %2409  ;;  %v2967_v11 = vrot.slane %v2966_v26, 1  ;;  %v2260_v12 = vrot.slane %v7905_v24, 2 }
 0x3ac   :  { %v2388_v49 = vpop.permute.xlu0 %2387  ;;  %v4677_v30 = vpop.eup %4676  ;;  %v3669_v29 = vmax.f32 %v3667_v32, %v3668_v52  ;;  %v3721_v34 = vmax.f32 %v3719_v60, %v7831_v9  ;;  %v3621_v1 = vsel %vm3613_vm13, %v3587_v35, -1e+30  ;;  %v7938_v15 = vadd.f32 %v2410_v45, %v7671_v5 }
 0x3ad   :  { %v4679_v37 = vpop.eup %4678  ;;  %v7941_v58 = vsel %vm3646_vm14, %v3621_v1, -inf  ;;  %v3601_v16 = vmul.f32 %v4677_v30, %v9070_v56  ;;  %v7945_v62 = vadd.f32 %v2388_v49, %v7649_v41  ;;  %v2968_v2 = vmax.f32 %v2966_v26, %v2967_v11  ;;  %v9072_v11 = vld [vmem:[#allocation134_spill] sm:$0xff] }
 0x3ae   :  { %v3670_v57 = vrot.slane %v3669_v29, 2  ;;  %v3722_v32 = vrot.slane %v3721_v34, 4  ;;  %v3598_v9 = vmul.f32 %v4679_v37, %v9071_v61  ;;  %4688 = vtanh.f32 %v7938_v15 }
 0x3af   :  { %v3635_v5 = vsel %vm3613_vm13, %v3601_v16, -1e+30  ;;  %4690 = vtanh.f32 %v7945_v62  ;;  %v3097_v19 = vpop.permute.xlu1 %3096  ;;  %v7954_v10 = vsel %vm3813_vm15, %v2968_v2, %v7870_v22  ;;  %v3029_v41 = vmax.f32 %v3027_v17, %v3028_v36  ;;  %v9073_v36 = vld [vmem:[#allocation155_spill] sm:$0xff] }
 0x3b0   :  { %v2416_v40 = vpop.permute.xlu0 %2415  ;;  %v4681_v52 = vpop.eup %4680  ;;  %v3671_v26 = vmax.f32 %v3669_v29, %v3670_v57  ;;  %v3723_v44 = vmax.f32 %v3721_v34, %v3722_v32  ;;  %v7957_v35 = vsel %vm3646_vm14, %v3635_v5, -inf  ;;  %v3728_v60 = vsel %vm3646_vm14, %v3598_v9, -inf }
 0x3b1   :  { %v4683_v45 = vpop.eup %4682  ;;  %v3730_v49 = vmax.f32 %v3728_v60, %v7851_v46  ;;  %v2159_v30 = vmul.f32 %v4681_v52, %v9072_v11  ;;  %v3186_v1 = vadd.f32 %v3097_v19, %v7683_v0  ;;  %v7964_v37 = vadd.f32 %v2416_v40, %v7660_v33  ;;  %v9074_v19 = vld [vmem:[#allocation136_spill] sm:$0xff] }
 0x3b2   :  { %v3672_v22 = vrot.slane %v3671_v26, 1  ;;  %v3724_v17 = vrot.slane %v3723_v44, 2  ;;  %v2145_v29 = vmul.f32 %v4683_v45, %v9073_v36  ;;  %v3030_v34 = vrot.slane %v3029_v41, 1  ;;  %v9075_v52 = vld [vmem:[#allocation164_spill] sm:$0xff] }
 0x3b3   :  { %v3731_v56 = vrot.slane %v3730_v49, 4  ;;  %v2327_v16 = vsel %vm2200_vm7, %v2159_v30, -inf  ;;  %4692 = vtanh.f32 %v3186_v1  ;;  %v3125_v2 = vpop.permute.xlu1 %3124  ;;  %v2261_v46 = vmax.f32 %v7905_v24, %v2260_v12  ;;  %v9076_v30 = vld [vmem:[#allocation147_spill] sm:$0xff] }
 0x3b4   :  { %v3103_v57 = vpop.permute.xlu0 %3102  ;;  %v4685_v32 = vpop.eup %4684  ;;  %v3725_v61 = vmax.f32 %v3723_v44, %v3724_v17  ;;  %v7970_v0 = vmax.f32 %v2327_v16, %v7880_v20  ;;  %4694 = vtanh.f32 %v7964_v37  ;;  %v3200_v33 = vadd.f32 %v3125_v2, %v7702_v25  ;;  %v9078_v2 = vld [vmem:[#allocation111_spill] sm:$0xff] }
 0x3b5   :  { %v4687_v9 = vpop.eup %4686  ;;  %v3732_v5 = vmax.f32 %v3730_v49, %v3731_v56  ;;  %v2867_v40 = vmul.f32 %v4685_v32, %v9074_v19  ;;  %v3189_v60 = vadd.f32 %v3103_v57, %v9075_v52  ;;  %v3031_v45 = vmax.f32 %v3029_v41, %v3030_v34  ;;  %v9077_v34 = vld [vmem:[#allocation161_spill] sm:$0xff] }
 0x3b6   :  { %v3726_v11 = vrot.slane %v3725_v61, 1  ;;  %v2162_v1 = vmul.f32 %v4687_v9, %v9076_v30  ;;  %4696 = vtanh.f32 %v3200_v33  ;;  %v3673_v24 = vmax.f32 %v3671_v26, %v3672_v22 }
 0x3b7   :  { %v3733_v12 = vrot.slane %v3732_v5, 2  ;;  %v2969_v20 = vsel %vm2923_vm12, %v2867_v40, -inf  ;;  %4698 = vtanh.f32 %v3189_v60  ;;  %v1696_v44 = vpop.permute.xlu1 %1695  ;;  %v7980_v25 = vsel %vm3811_vm10, %v3031_v45, %v7893_v28 }
 0x3b8   :  { %v3131_v17 = vpop.permute.xlu0 %3130  ;;  %v4689_v49 = vpop.eup %4688  ;;  %v3727_v36 = vmax.f32 %v3725_v61, %v3726_v11  ;;  %v2971_v56 = vmax.f32 %v2969_v20, %v7908_v39  ;;  %v7985_v41 = vsel %vm2167_vm2, %v2162_v1, -1e+30  ;;  %v7988_v26 = vadd.f32 %v1696_v44, %v9077_v34  ;;  %v9079_v61 = vld [vmem:[#allocation23_spill] sm:$0xff] }
 0x3b9   :  { %v4691_v22 = vpop.eup %4690  ;;  %v3734_v16 = vmax.f32 %v3732_v5, %v3733_v12  ;;  %v2881_v57 = vmul.f32 %v4689_v49, %v9078_v2  ;;  %v3203_v32 = vadd.f32 %v3131_v17, %v7699_v54  ;;  %v7994_v28 = vsel %vm3809_vm9, %v3673_v24, %v7884_v63 }
 0x3ba   :  { %v2870_v33 = vmul.f32 %v4691_v22, %v9079_v61  ;;  %4700 = vtanh.f32 %v7988_v26  ;;  %v2972_v39 = vrot.slane %v2971_v56, 4  ;;  %v2262_v9 = vrot.slane %v2261_v46, 1 }
 0x3bb   :  { %v3735_v19 = vrot.slane %v3734_v16, 1  ;;  %v3032_v40 = vsel %vm2923_vm12, %v2881_v57, -inf  ;;  %4702 = vtanh.f32 %v3203_v32  ;;  %v2392_v52 = vpop.permute.xlu1 %2391  ;;  %v2264_v60 = vsel %vm2200_vm7, %v2145_v29, -inf }
 0x3bc   :  { %v2386_v5 = vpop.permute.xlu0 %2385  ;;  %v3034_v54 = vmax.f32 %v3032_v40, %v7923_v51  ;;  %v2904_v63 = vsel %vm2890_vm11, %v2870_v33, -1e+30  ;;  %v8004_v45 = vadd.f32 %v2392_v52, %v7787_v7  ;;  %v2973_v12 = vmax.f32 %v2971_v56, %v2972_v39  ;;  %v9080_v51 = vld [vmem:[#allocation121_spill] sm:$0xff]  ;;  %v9083_v52 = vld [vmem:[#allocation122_spill] sm:$0xff] }
 0x3bd   :  { %v8007_v11 = vadd.f32 %v2386_v5, %v7761_v31  ;;  %v4693_v30 = vpop.eup %4692  ;;  %v3736_v1 = vmax.f32 %v3734_v16, %v3735_v19  ;;  %v8010_v24 = vsel %vm2923_vm12, %v2904_v63, -inf  ;;  %v8012_v20 = vmax.f32 %v2261_v46, %v2262_v9  ;;  %v9081_v31 = vld [vmem:[#allocation127_spill] sm:$0xff]  ;;  %v9082_v9 = vld [vmem:[#allocation101_spill] sm:$0xff] }
 0x3be   :  { %v4695_v29 = vpop.eup %4694  ;;  %v3035_v44 = vrot.slane %v3034_v54, 4  ;;  %v3586_v17 = vmul.f32 %v4693_v30, %v9080_v51  ;;  %4704 = vtanh.f32 %v8004_v45  ;;  %v2265_v7 = vsel %vm2200_vm7, %v7859_v21, -inf }
 0x3bf   :  { %v2884_v49 = vmul.f32 %v4695_v29, %v9081_v31  ;;  %4706 = vtanh.f32 %v8007_v11  ;;  %v2420_v34 = vpop.permute.xlu1 %2419  ;;  %v2974_v16 = vrot.slane %v2973_v12, 2  ;;  %v8021_v46 = vsel %vm3807_vm8, %v3736_v1, %v3727_v36 }
 0x3c0   :  { %v2414_v22 = vpop.permute.xlu0 %2413  ;;  %v4697_v56 = vpop.eup %4696  ;;  %v3036_v2 = vmax.f32 %v3034_v54, %v3035_v44  ;;  %v3674_v57 = vsel %vm3646_vm14, %v3586_v17, -inf  ;;  %v8025_v32 = vadd.f32 %v2420_v34, %v7809_v27  ;;  %v9084_v34 = vld [vmem:[#allocation145_spill] sm:$0xff] }
 0x3c1   :  { %v8028_v61 = vadd.f32 %v2414_v22, %v7783_v50  ;;  %v4699_v21 = vpop.eup %4698  ;;  %v3676_v33 = vmax.f32 %v3674_v57, %v7941_v58  ;;  %v2918_v39 = vsel %vm2890_vm11, %v2884_v49, -1e+30  ;;  %v3600_v19 = vmul.f32 %v4697_v56, %v9082_v9  ;;  %v9085_v57 = vld [vmem:[#allocation13_spill] sm:$0xff] }
 0x3c2   :  { %v2975_v36 = vmax.f32 %v2973_v12, %v2974_v16  ;;  %v8035_v40 = vsel %vm2923_vm12, %v2918_v39, -inf  ;;  %v3589_v5 = vmul.f32 %v4699_v21, %v9083_v52  ;;  %4708 = vtanh.f32 %v8025_v32 }
 0x3c3   :  { %v3037_v27 = vrot.slane %v3036_v2, 2  ;;  %v3677_v54 = vrot.slane %v3676_v33, 4  ;;  %v3737_v50 = vsel %vm3646_vm14, %v3600_v19, -inf  ;;  %4710 = vtanh.f32 %v8028_v61  ;;  %v3107_v58 = vpop.permute.xlu1 %3106 }
 0x3c4   :  { %v3101_v63 = vpop.permute.xlu0 %3100  ;;  %v2976_v30 = vrot.slane %v2975_v36, 1  ;;  %v4701_v1 = vpop.eup %4700  ;;  %v3739_v29 = vmax.f32 %v3737_v50, %v7957_v35  ;;  %v3623_v12 = vsel %vm3613_vm13, %v3589_v5, -1e+30  ;;  %v3191_v44 = vadd.f32 %v3107_v58, %v7828_v6 }
 0x3c5   :  { %v3188_v51 = vadd.f32 %v3101_v63, %v7806_v13  ;;  %v4703_v17 = vpop.eup %4702  ;;  %v3678_v31 = vmax.f32 %v3676_v33, %v3677_v54  ;;  %v8047_v49 = vsel %vm3646_vm14, %v3623_v12, -inf  ;;  %v8050_v22 = vmul.f32 %v4701_v1, %v9084_v34  ;;  %v9087_v1 = vld [vmem:[#allocation144_spill] sm:$0xff] }
 0x3c6   :  { %v2977_v16 = vmax.f32 %v2975_v36, %v2976_v30  ;;  %v3740_v56 = vrot.slane %v3739_v29, 4  ;;  %v3603_v21 = vmul.f32 %v4703_v17, %v9085_v57  ;;  %4712 = vtanh.f32 %v3191_v44  ;;  %v9088_v57 = vld [vmem:[#allocation137_spill] sm:$0xff] }
 0x3c7   :  { %v3038_v35 = vmax.f32 %v3036_v2, %v3037_v27  ;;  %v3679_v39 = vrot.slane %v3678_v31, 2  ;;  %4714 = vtanh.f32 %v3188_v51  ;;  %v3135_v9 = vpop.permute.xlu1 %3134  ;;  %v2266_v33 = vmax.f32 %v2264_v60, %v2265_v7  ;;  %v9086_v27 = vld [vmem:[#allocation153_spill] sm:$0xff] }
 0x3c8   :  { %v3129_v6 = vpop.permute.xlu0 %3128  ;;  %v8055_v13 = vsel %vm3815_vm0, %v2977_v16, %v7954_v10  ;;  %v4705_v19 = vpop.eup %4704  ;;  %v3741_v52 = vmax.f32 %v3739_v29, %v3740_v56  ;;  %v3637_v5 = vsel %vm3613_vm13, %v3603_v21, -1e+30  ;;  %v3205_v36 = vadd.f32 %v3135_v9, %v7845_v43 }
 0x3c9   :  { %v3202_v54 = vadd.f32 %v3129_v6, %v7825_v4  ;;  %v4707_v50 = vpop.eup %4706  ;;  %v8062_v2 = vsel %vm3646_vm14, %v3637_v5, -inf  ;;  %v2872_v58 = vmul.f32 %v4705_v19, %v9086_v27  ;;  %v3039_v63 = vrot.slane %v3038_v35, 1  ;;  %v9089_v19 = vld [vmem:[#allocation128_spill] sm:$0xff] }
 0x3ca   :  { %v3680_v30 = vmax.f32 %v3678_v31, %v3679_v39  ;;  %v3742_v10 = vrot.slane %v3741_v52, 2  ;;  %v2869_v60 = vmul.f32 %v4707_v50, %v9087_v1  ;;  %4716 = vtanh.f32 %v3205_v36  ;;  %v9090_v1 = vld [vmem:[#allocation142_spill] sm:$0xff] }
 0x3cb   :  { %v2267_v7 = vrot.slane %v2266_v33, 4  ;;  %v2906_v29 = vsel %vm2890_vm11, %v2872_v58, -1e+30  ;;  %4718 = vtanh.f32 %v3202_v54  ;;  %v2418_v43 = vpop.permute.xlu1 %2417  ;;  %v3040_v4 = vmax.f32 %v3038_v35, %v3039_v63 }
 0x3cc   :  { %v2390_v12 = vpop.permute.xlu0 %2389  ;;  %v3681_v44 = vrot.slane %v3680_v30, 1  ;;  %v4709_v51 = vpop.eup %4708  ;;  %v3743_v17 = vmax.f32 %v3741_v52, %v3742_v10  ;;  %v2978_v34 = vsel %vm2923_vm12, %v2869_v60, -inf  ;;  %v8070_v16 = vadd.f32 %v2418_v43, %v7897_v48 }
 0x3cd   :  { %v8073_v31 = vadd.f32 %v2390_v12, %v7900_v47  ;;  %v4711_v56 = vpop.eup %4710  ;;  %v2886_v21 = vmul.f32 %v4709_v51, %v9088_v57  ;;  %v2980_v39 = vmax.f32 %v2978_v34, %v8010_v24  ;;  %v8078_v9 = vsel %vm2923_vm12, %v2906_v29, -inf }
 0x3ce   :  { %v8082_v35 = vsel %vm3813_vm15, %v3040_v4, %v7980_v25  ;;  %v3744_v6 = vrot.slane %v3743_v17, 1  ;;  %v2883_v52 = vmul.f32 %v4711_v56, %v9089_v19  ;;  %4720 = vtanh.f32 %v8070_v16 }
 0x3cf   :  { %v3682_v48 = vmax.f32 %v3680_v30, %v3681_v44  ;;  %v2920_v47 = vsel %vm2890_vm11, %v2886_v21, -1e+30  ;;  %4722 = vtanh.f32 %v8073_v31  ;;  %v3105_v5 = vpop.permute.xlu1 %3104  ;;  %v2981_v36 = vrot.slane %v2980_v39, 4 }
 0x3d0   :  { %v2424_v24 = vpop.permute.xlu0 %2423  ;;  %v2268_v54 = vmax.f32 %v2266_v33, %v2267_v7  ;;  %v4713_v50 = vpop.eup %4712  ;;  %v8090_v27 = vsel %vm2923_vm12, %v2920_v47, -inf  ;;  %v3041_v25 = vsel %vm2923_vm12, %v2883_v52, -inf  ;;  %v3190_v58 = vadd.f32 %v3105_v5, %v7920_v3  ;;  %v9091_v7 = vld [vmem:[#allocation132_spill] sm:$0xff] }
 0x3d1   :  { %v8095_v63 = vadd.f32 %v2424_v24, %v7927_v8  ;;  %v4715_v30 = vpop.eup %4714  ;;  %v3043_v10 = vmax.f32 %v3041_v25, %v8035_v40  ;;  %v3591_v60 = vmul.f32 %v4713_v50, %v9090_v1  ;;  %v2982_v29 = vmax.f32 %v2980_v39, %v2981_v36  ;;  %v9093_v47 = vld [vmem:[#allocation112_spill] sm:$0xff] }
 0x3d2   :  { %v8101_v33 = vsel %vm3811_vm10, %v3682_v48, %v7994_v28  ;;  %v3588_v43 = vmul.f32 %v4715_v30, %v9091_v7  ;;  %4724 = vtanh.f32 %v3190_v58  ;;  %v3745_v12 = vmax.f32 %v3743_v17, %v3744_v6  ;;  %v9092_v6 = vld [vmem:[#allocation24_spill] sm:$0xff]  ;;  %v9094_v7 = vld [vmem:[#allocation133_spill] sm:$0xff] }
 0x3d3   :  { %v2269_v4 = vrot.slane %v2268_v54, 2  ;;  %v3625_v3 = vsel %vm3613_vm13, %v3591_v60, -1e+30  ;;  %4726 = vtanh.f32 %v8095_v63  ;;  %v3133_v8 = vpop.permute.xlu1 %3132  ;;  %v2983_v40 = vrot.slane %v2982_v29, 2 }
 0x3d4   :  { %v3111_v44 = vpop.permute.xlu0 %3110  ;;  %v3044_v51 = vrot.slane %v3043_v10, 4  ;;  %v4717_v34 = vpop.eup %4716  ;;  %v3693_v56 = vsel %vm3646_vm14, %v3625_v3, -inf  ;;  %v3683_v28 = vsel %vm3646_vm14, %v3588_v43, -inf  ;;  %v3204_v57 = vadd.f32 %v3133_v8, %v7938_v15 }
 0x3d5   :  { %v3193_v17 = vadd.f32 %v3111_v44, %v7945_v62  ;;  %v4719_v21 = vpop.eup %4718  ;;  %v3685_v39 = vmax.f32 %v3683_v28, %v8047_v49  ;;  %v3605_v19 = vmul.f32 %v4717_v34, %v9092_v6  ;;  %v2984_v52 = vmax.f32 %v2982_v29, %v2983_v40 }
 0x3d6   :  { %v3045_v48 = vmax.f32 %v3043_v10, %v3044_v51  ;;  %v3602_v5 = vmul.f32 %v4719_v21, %v9093_v47  ;;  %4728 = vtanh.f32 %v3204_v57  ;;  %v8116_v24 = vsel %vm3809_vm9, %v3745_v12, %v8021_v46 }
 0x3d7   :  { %v8118_v36 = vmax.f32 %v2268_v54, %v2269_v4  ;;  %v3686_v50 = vrot.slane %v3685_v39, 4  ;;  %v3639_v15 = vsel %vm3613_vm13, %v3605_v19, -1e+30  ;;  %4730 = vtanh.f32 %v3193_v17  ;;  %v2422_v62 = vpop.permute.xlu1 %2421  ;;  %v9095_v4 = vld [vmem:[#allocation160_spill] sm:$0xff] }
 0x3d8   :  { %v2985_v49 = vrot.slane %v2984_v52, 1  ;;  %v4721_v25 = vpop.eup %4720  ;;  %v8123_v58 = vsel %vm3646_vm14, %v3639_v15, -inf  ;;  %v3746_v30 = vsel %vm3646_vm14, %v3602_v5, -inf  ;;  %v8127_v10 = vadd.f32 %v2422_v62, %v7988_v26  ;;  %v3139_v46 = vpop.permute.xlu0 %3138  ;;  %v9096_v19 = vld [vmem:[#allocation20_spill] sm:$0xff] }
 0x3d9   :  { %v3046_v1 = vrot.slane %v3045_v48, 2  ;;  %v4723_v54 = vpop.eup %4722  ;;  %v8129_v60 = vmax.f32 %v3685_v39, %v3686_v50  ;;  %v3748_v29 = vmax.f32 %v3746_v30, %v8062_v2  ;;  %v2885_v43 = vmul.f32 %v4721_v25, %v9094_v7  ;;  %v9097_v5 = vld [vmem:[#allocation148_spill] sm:$0xff]  ;;  %v3909_v30 = vld [vmem:[%s8282_s2 + $0x10] sm:$0xff]  ;;  %s4782_s2 = smov 88  }
 0x3da   :  { %v3207_v12 = vadd.f32 %v3139_v46, %v7964_v37  ;;  %v2871_v3 = vmul.f32 %v4723_v54, %v9095_v4  ;;  %4732 = vtanh.f32 %v8127_v10  ;;  %v2986_v8 = vmax.f32 %v2984_v52, %v2985_v49  ;;  %4145 = vmatprep.subr.mxu1 %v3909_v30  ;;  %v9098_v7 = vld [vmem:[#allocation116_spill] sm:$0xff] }
 0x3db   :  { %v3047_v44 = vmax.f32 %v3045_v48, %v3046_v1  ;;  %v3749_v40 = vrot.slane %v3748_v29, 4  ;;  %v3050_v26 = vsel %vm2923_vm12, %v2885_v43, -inf  ;;  %v3115_v51 = vpop.permute.xlu1 %3114  ;;  %v3688_v34 = vrot.slane %v8129_v60, 2  ;;  %4146 = vmatpush3.msra.mxu1 %v3909_v30 }
 0x3dc   :  { %4734 = vtanh.f32 %v3207_v12  ;;  %v4725_v28 = vpop.eup %4724  ;;  %v3195_v2 = vadd.f32 %v3115_v51, %v8004_v45  ;;  %v3109_v57 = vpop.permute.xlu0 %3108  ;;  %v2987_v17 = vsel %vm2923_vm12, %v2871_v3, -inf  ;;  %v8142_v37 = vsel %vm3817_vm1, %v2986_v8, %v8055_v13  ;;  %v9099_v8 = vld [vmem:[#allocation150_spill] sm:$0xff] }
 0x3dd   :  { %v3048_v21 = vrot.slane %v3047_v44, 1  ;;  %v4727_v39 = vpop.eup %4726  ;;  %v8144_v6 = vmax.f32 %v3748_v29, %v3749_v40  ;;  %v3590_v52 = vmul.f32 %v4725_v28, %v9096_v19  ;;  %v3192_v48 = vadd.f32 %v3109_v57, %v8007_v11 }
 0x3de   :  { %v2989_v47 = vmax.f32 %v2987_v17, %v8078_v9  ;;  %v2888_v50 = vmul.f32 %v4727_v39, %v9097_v5  ;;  %4736 = vtanh.f32 %v3195_v2  ;;  %v3052_v15 = vmax.f32 %v3050_v26, %v8090_v27 }
 0x3df   :  { %v3049_v45 = vmax.f32 %v3047_v44, %v3048_v21  ;;  %v3751_v62 = vrot.slane %v8144_v6, 2  ;;  %v3692_v13 = vsel %vm3646_vm14, %v3590_v52, -inf  ;;  %4738 = vtanh.f32 %v3192_v48  ;;  %v3143_v49 = vpop.permute.xlu1 %3142  ;;  %v9100_v48 = vld [vmem:[#allocation149_spill] sm:$0xff] }
 0x3e0   :  { %v2990_v25 = vrot.slane %v2989_v47, 4  ;;  %v4729_v11 = vpop.eup %4728  ;;  %v8156_v46 = vmax.f32 %v3692_v13, %v3693_v56  ;;  %v2922_v9 = vsel %vm2890_vm11, %v2888_v50, -1e+30  ;;  %v3209_v1 = vadd.f32 %v3143_v49, %v8025_v32  ;;  %v3137_v27 = vpop.permute.xlu0 %3136 }
 0x3e1   :  { %v3053_v54 = vrot.slane %v3052_v15, 4  ;;  %v4731_v29 = vpop.eup %4730  ;;  %v3604_v43 = vmul.f32 %v4729_v11, %v9098_v7  ;;  %v3206_v12 = vadd.f32 %v3137_v27, %v8028_v61  ;;  %v3060_v3 = vsel %vm2923_vm12, %v2922_v9, -inf  ;;  %v9102_v7 = vld [vmem:[#allocation154_spill] sm:$0xff] }
 0x3e2   :  { %v2991_v4 = vmax.f32 %v2989_v47, %v2990_v25  ;;  %v3695_v56 = vrot.slane %v8156_v46, 4  ;;  %v3593_v44 = vmul.f32 %v4731_v29, %v9099_v8  ;;  %4740 = vtanh.f32 %v3209_v1  ;;  %v9103_v8 = vld [vmem:[#allocation152_spill] sm:$0xff] }
 0x3e3   :  { %v3054_v40 = vmax.f32 %v3052_v15, %v3053_v54  ;;  %v3755_v32 = vsel %vm3646_vm14, %v3604_v43, -inf  ;;  %4742 = vtanh.f32 %v3206_v12  ;;  %v3141_v26 = vpop.permute.xlu1 %3140  ;;  %v3857_v28 = vsel %vm3815_vm0, %v3049_v45, %v8082_v35  ;;  %v9101_v35 = vld [vmem:[#allocation130_spill] sm:$0xff] }
 0x3e4   :  { %v2992_v51 = vrot.slane %v2991_v4, 2  ;;  %v4733_v61 = vpop.eup %4732  ;;  %v3757_v2 = vmax.f32 %v3755_v32, %v8123_v58  ;;  %v3627_v57 = vsel %vm3613_vm13, %v3593_v44, -1e+30  ;;  %v3208_v17 = vadd.f32 %v3141_v26, %v8070_v16  ;;  %v3113_v21 = vpop.permute.xlu0 %3112 }
 0x3e5   :  { %v3055_v39 = vrot.slane %v3054_v40, 2  ;;  %v3702_v52 = vsel %vm3646_vm14, %v3627_v57, -inf  ;;  %v2887_v47 = vmul.f32 %v4733_v61, %v9100_v48  ;;  %v3194_v5 = vadd.f32 %v3113_v21, %v8073_v31  ;;  %v9105_v48 = vld [vmem:[#allocation131_spill] sm:$0xff] }
 0x3e6   :  { %v4735_v19 = vpop.eup %4734  ;;  %v2993_v50 = vmax.f32 %v2991_v4, %v2992_v51  ;;  %v3758_v15 = vrot.slane %v3757_v2, 4  ;;  %4744 = vtanh.f32 %v3208_v17  ;;  %v3689_v25 = vmax.f32 %v8129_v60, %v3688_v34  ;;  %v9104_v17 = vld [vmem:[#allocation141_spill] sm:$0xff] }
 0x3e7   :  { %v3607_v45 = vmul.f32 %v4735_v19, %v9101_v35  ;;  %v3056_v58 = vmax.f32 %v3054_v40, %v3055_v39  ;;  %4746 = vtanh.f32 %v3194_v5  ;;  %v3145_v13 = vpop.permute.xlu1 %3144  ;;  %v3059_v16 = vsel %vm2923_vm12, %v2887_v47, -inf }
 0x3e8   :  { %v2994_v49 = vrot.slane %v2993_v50, 1  ;;  %v4737_v30 = vpop.eup %4736  ;;  %v3759_v11 = vmax.f32 %v3757_v2, %v3758_v15  ;;  %v3210_v9 = vadd.f32 %v3145_v13, %v8127_v10  ;;  %v3147_v1 = vpop.permute.xlu0 %3146  ;;  %v3061_v34 = vmax.f32 %v3059_v16, %v3060_v3 }
 0x3e9   :  { %v3641_v31 = vsel %vm3613_vm13, %v3607_v45, -1e+30  ;;  %v3057_v27 = vrot.slane %v3056_v58, 1  ;;  %v4739_v54 = vpop.eup %4738  ;;  %v3595_v43 = vmul.f32 %v4737_v30, %v9102_v7  ;;  %v3211_v12 = vadd.f32 %v3147_v1, %v8095_v63 }
 0x3ea   :  { %v3765_v29 = vsel %vm3646_vm14, %v3641_v31, -inf  ;;  %v2995_v4 = vmax.f32 %v2993_v50, %v2994_v49  ;;  %v3592_v44 = vmul.f32 %v4739_v54, %v9103_v8  ;;  %4748 = vtanh.f32 %v3210_v9  ;;  %v9107_v31 = vld [vmem:[#allocation158_spill] sm:$0xff] }
 0x3eb   :  { %v3058_v60 = vmax.f32 %v3056_v58, %v3057_v27  ;;  %v3629_v40 = vsel %vm3613_vm13, %v3595_v43, -1e+30  ;;  %4750 = vtanh.f32 %v3211_v12  ;;  %v3690_v32 = vrot.slane %v3689_v25, 1 }
 0x3ec   :  { %v3852_v10 = vsel %vm3819_vm3, %v2995_v4, %v8142_v37  ;;  %v4741_v26 = vpop.eup %4740  ;;  %v3701_v51 = vsel %vm3646_vm14, %v3592_v44, -inf  ;;  %v3062_v63 = vrot.slane %v3061_v34, 4  ;;  %v3696_v2 = vmax.f32 %v8156_v46, %v3695_v56 }
 0x3ed   :  { %3860 = vrot.lane.b32.xlu0 %v3852_v10, %s4779_s7  ;;  %v3858_v61 = vsel %vm3817_vm1, %v3058_v60, %v3857_v28  ;;  %v4743_v57 = vpop.eup %4742  ;;  %v3703_v3 = vmax.f32 %v3701_v51, %v3702_v52  ;;  %v3609_v21 = vmul.f32 %v4741_v26, %v9104_v17  ;;  %v3691_v39 = vmax.f32 %v3689_v25, %v3690_v32  ;;  %v9106_v25 = vld [vmem:[#allocation139_spill] sm:$0xff] }
 0x3ee   :  { %v3711_v19 = vsel %vm3646_vm14, %v3629_v40, -inf  ;;  %v3606_v37 = vmul.f32 %v4743_v57, %v9105_v48  ;;  %v3063_v47 = vmax.f32 %v3061_v34, %v3062_v63  ;;  %v3697_v5 = vrot.slane %v3696_v2, 2  ;;  %v9108_v40 = vld [vmem:[#allocation151_spill] sm:$0xff]  ;;  %v9109_v63 = vld [vmem:[#allocation33_spill] sm:$0xff] }
 0x3ef   :  { %v3752_v50 = vmax.f32 %v8144_v6, %v3751_v62  ;;  %v3643_v28 = vsel %vm3613_vm13, %v3609_v21, -1e+30  ;;  %v3704_v15 = vrot.slane %v3703_v3, 4  ;;  %v3885_v46 = vsel %vm3813_vm15, %v3691_v39, %v8101_v33 }
 0x3f0   :  { %v3760_v56 = vrot.slane %v3759_v11, 2  ;;  %v4745_v52 = vpop.eup %4744  ;;  %v3774_v35 = vsel %vm3646_vm14, %v3643_v28, -inf  ;;  %v3764_v45 = vsel %vm3646_vm14, %v3606_v37, -inf  ;;  %v3064_v58 = vrot.slane %v3063_v47, 2 }
 0x3f1   :  { %v3698_v13 = vmax.f32 %v3696_v2, %v3697_v5  ;;  %v4747_v49 = vpop.eup %4746  ;;  %v3766_v16 = vmax.f32 %v3764_v45, %v3765_v29  ;;  %v3608_v30 = vmul.f32 %v4745_v52, %v9106_v25  ;;  %v3705_v6 = vmax.f32 %v3703_v3, %v3704_v15 }
 0x3f2   :  { %v3753_v62 = vrot.slane %v3752_v50, 1  ;;  %v3594_v9 = vmul.f32 %v4747_v49, %v9107_v31  ;;  %v3065_v1 = vmax.f32 %v3063_v47, %v3064_v58  ;;  %v3761_v54 = vmax.f32 %v3759_v11, %v3760_v56 }
 0x3f3   :  { %v3699_v27 = vrot.slane %v3698_v13, 1  ;;  %v3767_v33 = vrot.slane %v3766_v16, 4  ;;  %v3773_v7 = vsel %vm3646_vm14, %v3608_v30, -inf  ;;  %v3706_v43 = vrot.slane %v3705_v6, 2 }
 0x3f4   :  { %v3754_v12 = vmax.f32 %v3752_v50, %v3753_v62  ;;  %v4749_v4 = vpop.eup %4748  ;;  %v3775_v8 = vmax.f32 %v3773_v7, %v3774_v35  ;;  %v3710_v44 = vsel %vm3646_vm14, %v3594_v9, -inf  ;;  %v3066_v60 = vrot.slane %v3065_v1, 1 }
 0x3f5   :  { %v3700_v29 = vmax.f32 %v3698_v13, %v3699_v27  ;;  %v4751_v34 = vpop.eup %4750  ;;  %v3610_v10 = vmul.f32 %v4749_v4, %v9108_v40  ;;  %v3707_v32 = vmax.f32 %v3705_v6, %v3706_v43  ;;  %v3712_v26 = vmax.f32 %v3710_v44, %v3711_v19  ;;  %v9110_v13 = vld [vmem:[#allocation86_spill] sm:$0xff] }
 0x3f6   :  { %v3762_v51 = vrot.slane %v3761_v54, 1  ;;  %v3611_v2 = vmul.f32 %v4751_v34, %v9109_v63  ;;  %v3067_v11 = vmax.f32 %v3065_v1, %v3066_v60  ;;  %v3768_v3 = vmax.f32 %v3766_v16, %v3767_v33  ;;  %v9111_v63 = vld [vmem:[#allocation28_spill] sm:$0xff] }
 0x3f7   :  { %v3886_v57 = vsel %vm3815_vm0, %v3700_v29, %v3885_v46  ;;  %v3782_v17 = vsel %vm3646_vm14, %v3610_v10, -inf  ;;  %v3708_v21 = vrot.slane %v3707_v32, 1  ;;  %v3713_v39 = vrot.slane %v3712_v26, 4 }
 0x3f8   :  { %v3763_v48 = vmax.f32 %v3761_v54, %v3762_v51  ;;  %v3645_v37 = vsel %vm3613_vm13, %v3611_v2, -1e+30  ;;  %v3859_v47 = vsel %vm3819_vm3, %v3067_v11, %v3858_v61  ;;  %v3769_v5 = vrot.slane %v3768_v3, 2 }
 0x3f9   :  { %v3776_v50 = vrot.slane %v3775_v8, 4  ;;  %3862 = vrot.lane.b32.xlu1 %v3859_v47, %s4779_s7  ;;  %v3709_v19 = vmax.f32 %v3707_v32, %v3708_v21  ;;  %v3714_v28 = vmax.f32 %v3712_v26, %v3713_v39  ;;  %v3783_v15 = vsel %vm3646_vm14, %v3645_v37, -inf }
 0x3fa   :  { %v3891_v46 = vsel %vm3811_vm10, %v3754_v12, %v8116_v24  ;;  %v3770_v56 = vmax.f32 %v3768_v3, %v3769_v5  ;;  %v3784_v35 = vmax.f32 %v3782_v17, %v3783_v15  ;;  %v2271_v61 = vrot.slane %v8118_v36, 1  ;;  %v9112_v3 = vld [vmem:[#allocation156_spill] sm:$0xff] }
 0x3fb   :  { %v3777_v52 = vmax.f32 %v3775_v8, %v3776_v50  ;;  %v3892_v45 = vsel %vm3813_vm15, %v3763_v48, %v3891_v46  ;;  %v3715_v38 = vrot.slane %v3714_v28, 2  ;;  %v3887_v58 = vsel %vm3817_vm1, %v3709_v19, %v3886_v57 }
 0x3fc   :  { %v3814_v49 = vsel %vm3813_vm15, %v7813_v23, %v9110_v13  ;;  %v3771_v16 = vrot.slane %v3770_v56, 1  ;;  %v3785_v30 = vrot.slane %v3784_v35, 4  ;;  %v2272_v62 = vmax.f32 %v8118_v36, %v2271_v61 }
 0x3fd   :  { %v3778_v25 = vrot.slane %v3777_v52, 2  ;;  %v3816_v24 = vsel %vm3815_vm0, %v7914_v53, %v3814_v49  ;;  %v3716_v6 = vmax.f32 %v3714_v28, %v3715_v38  ;;  %v2280_v9 = vrot.slane %v7801_v18, 1 }
 0x3fe   :  { %v3818_v31 = vsel %vm3817_vm1, %v8012_v20, %v3816_v24  ;;  %v3772_v1 = vmax.f32 %v3770_v56, %v3771_v16  ;;  %v3786_v54 = vmax.f32 %v3784_v35, %v3785_v30  ;;  %v2307_v33 = vrot.slane %v7707_v55, 1 }
 0x3ff   :  { %v3779_v27 = vmax.f32 %v3777_v52, %v3778_v25  ;;  %v3717_v23 = vrot.slane %v3716_v6, 1  ;;  %v3820_v7 = vsel %vm3819_vm3, %v2272_v62, %v3818_v31  ;;  %v2281_v43 = vmax.f32 %v7801_v18, %v2280_v9 }
 0x400   :  { %v2314_v53 = vrot.slane %v7774_v59, 2  ;;  %v3787_v4 = vrot.slane %v3786_v54, 2  ;;  %v3893_v36 = vsel %vm3815_vm0, %v3772_v1, %v3892_v45  ;;  %v2308_v20 = vmax.f32 %v7707_v55, %v2307_v33 }
 0x401   :  { %v3780_v12 = vrot.slane %v3779_v27, 1  ;;  %v3718_v8 = vmax.f32 %v3716_v6, %v3717_v23  ;;  %v2322_v60 = vmax.f32 %v7864_v42, %v2321_v14  ;;  %v2330_v29 = vrot.slane %v7970_v0, 4  ;;  %v4133_v6 = vld [vmem:[%s8283_s3] ss:$0 sm:$0xff] }
 0x402   :  { %v2315_v44 = vmax.f32 %v7774_v59, %v2314_v53  ;;  %v3788_v40 = vmax.f32 %v3786_v54, %v3787_v4  ;;  %v2336_v18 = vsel %vm2200_vm7, %v8050_v22, -inf  ;;  %v2337_v10 = vsel %vm2200_vm7, %v7985_v41, -inf }
 0x403   :  { %v3781_v34 = vmax.f32 %v3779_v27, %v3780_v12  ;;  %v3888_v32 = vsel %vm3819_vm3, %v3718_v8, %v3887_v58  ;;  %v2323_v26 = vrot.slane %v2322_v60, 2  ;;  %v2331_v59 = vmax.f32 %v7970_v0, %v2330_v29 }
 0x404   :  { %v2316_v55 = vrot.slane %v2315_v44, 1  ;;  %3896 = vrot.lane.b32.xlu0 %v3888_v32, %s4782_s2  ;;  %v3789_v51 = vrot.slane %v3788_v40, 1  ;;  %v2338_v14 = vmax.f32 %v2336_v18, %v2337_v10  ;;  %v3821_v2 = vsel %vm3807_vm8, %v9111_v63, %v2281_v43 }
 0x405   :  { %v3894_v42 = vsel %vm3817_vm1, %v3781_v34, %v3893_v36  ;;  %v2324_v22 = vmax.f32 %v2322_v60, %v2323_v26  ;;  %v2332_v57 = vrot.slane %v2331_v59, 2  ;;  %v3822_v41 = vsel %vm3809_vm9, %v9112_v3, %v3821_v2 }
 0x406   :  { %v2317_v11 = vmax.f32 %v2315_v44, %v2316_v55  ;;  %v3790_v17 = vmax.f32 %v3788_v40, %v3789_v51  ;;  %v2339_v21 = vrot.slane %v2338_v14, 4  ;;  %v3823_v39 = vsel %vm3811_vm10, %v2308_v20, %v3822_v41 }
 0x407   :  { %v2325_v0 = vrot.slane %v2324_v22, 1  ;;  %v2333_v48 = vmax.f32 %v2331_v59, %v2332_v57 }
 0x408   :  { %v3824_v37 = vsel %vm3813_vm15, %v2317_v11, %v3823_v39  ;;  %v3895_v47 = vsel %vm3819_vm3, %v3790_v17, %v3894_v42  ;;  %v2340_v5 = vmax.f32 %v2338_v14, %v2339_v21 }
 0x409   :  { %3898 = vrot.lane.b32.xlu1 %v3895_v47, %s4782_s2  ;;  %v2326_v50 = vmax.f32 %v2324_v22, %v2325_v0  ;;  %v2334_v19 = vrot.slane %v2333_v48, 1 }
 0x40a   :  { %v2341_v28 = vrot.slane %v2340_v5, 2 }
 0x40b   :  { %v2335_v15 = vmax.f32 %v2333_v48, %v2334_v19  ;;  %v3825_v46 = vsel %vm3815_vm0, %v2326_v50, %v3824_v37 }
 0x40c   :  { %v2342_v56 = vmax.f32 %v2340_v5, %v2341_v28 }
 0x40d   :  { %v3826_v52 = vsel %vm3817_vm1, %v2335_v15, %v3825_v46 }
 0x40e   :  { %v2343_v35 = vrot.slane %v2342_v56, 1 }
 0x410   :  { %v2344_v45 = vmax.f32 %v2342_v56, %v2343_v35 }
 0x412   :  { %v3827_v38 = vsel %vm3819_vm3, %v2344_v45, %v3826_v52 }
 0x45f   :  { %v3861_v58 = vpop.permute.xlu0 %3860 }
 0x460   :  { %v3902_v61 = vsel %vm2200_vm7, %v3820_v7, %v3861_v58 }
 0x46b   :  { %v3863_v49 = vpop.permute.xlu1 %3862 }
 0x46c   :  { %v3903_v25 = vsel %vm2200_vm7, %v3827_v38, %v3863_v49 }
 0x476   :  { %v3897_v13 = vpop.permute.xlu0 %3896 }
 0x477   :  { %v3905_v16 = vsel %vm3904_vm4, %v3902_v61, %v3897_v13 }
 0x478   :  { %4147 = vmatprep.mubr.msk.f32.mxu1 %vm3917_vm5, %v3905_v16 }
 0x47b   :  { %v3899_v30 = vpop.permute.xlu1 %3898 }
 0x47c   :  { %v3906_v24 = vsel %vm3904_vm4, %v3903_v25, %v3899_v30 }
 0x47d   :  { %4148 = vmatmul.mubr.msk.f32.vlgmr.msra.gmra.mrb[28].mxu1 %vm3917_vm5, %v3906_v24 }
 0x550   :  { %v4149_v62 = vpop.f32.mrb[28].mxu1 }
 0x551   :  { %v3996_v31 = vadd.f32 %v4149_v62, %v4133_v6  ;;  %v3990_v9 = vpop.f32.mrb[29].mxu1 }
 0x552   :  { %v3991_v1 = vadd.f32 %v4133_v6, %v3990_v9 }
 0x553   :  { %4000 = vst [vmem:[#allocation2 + $0x8] sm:$0xff] %v3996_v31 }
 0x554   :  { %3999 = vst [vmem:[#allocation2] sm:$0xff] %v3991_v1 }
 0x555   :  { %4763 = shalt.err (!%p4760_p4)
}
 0x556   :  { %s4764_s3 = scalar_lea.hbm %s8284_s4, 256 }
 0x557   :  { %p4765_p5 = scmp.ne.s32.totalorder %s8284_s4, %s4764_s3  ;;  %p4768_p6 = scmp.lt.u32.totalorder %s4764_s3, %s8284_s4 }
 0x559   :  { %p4770_p7 = pnand %p4768_p6, %p4765_p5 }
 0x55b   :  { %4773 = shalt.err (!%p4770_p7)
}
 0x55c   :  { %s4784_s26 = smov 128   ;;  %s4785_s27 = smov 8  }
 0x55d   :  { %4012 = dma.vmem_to_hbm [thread:$0]  %s4007_s19, 256, %s8284_s4, [#allocation3], %s4784_s26, %s4784_s26, %s4785_s27  }
 0x55e   :  { %4774 = dma.done.wait [#allocation3], 256  }
 0x55f   :  { %4775 = vsyncadd [#allocation3], 4294967040 }
 0x560   :  { %4016 = vsyncpa [#allocation3], 1 }

</bundles_post_ra>
